<compile_context>
chip_gen: v5e
topology: v5e:2x2
jax: 0.10.0
libtpu: 0.0.40
codegen_flags: <defaults>
</compile_context>

<pallas_src>
import functools

import numpy as np
import jax
import jax.numpy as jnp
from jax.experimental import pallas as pl
from jax.experimental.pallas import tpu as pltpu


# ----------------------------- network constants ---------------------------- #
C1, C2 = 6, 16              # conv output channels
CP1 = 8                     # conv1 channels padded 6 -> 8 lanes per x position
K = 5                       # conv kernel size
H0 = W0 = 28                # input spatial size (1 channel)
H1 = W1 = 24                # conv1 output spatial
Q1 = H1 // 2                # 12, pool1 output spatial
H2 = W2 = 8                 # conv2 output spatial
Q2 = H2 // 2                # 4,  pool2 output spatial
F1, F2, F3 = 120, 84, 10    # fc sizes

LHALF = 128                 # lane width of one x-parity half (one vreg lane tile)
L1 = 2 * LHALF              # conv1 output lanes: parity*128 + (x//2)*8  + oc
L2 = 2 * LHALF              # conv2 output lanes: parity*128 + (x//2)*16 + oc
OUT_LANES = 128             # padded logits / softmax lane width
NEG_INF = -1e30


def _sigmoid(z):
    # sigmoid(z) = 0.5*(tanh(z/2)+1): tanh runs on the EUP transcendental slot.
    return 0.5 * (jnp.tanh(0.5 * z) + 1.0)


# ------------------------------ fused kernel -------------------------------- #

def lenet_kernel(x_ref, wb1_ref, bc1_ref, sd1_ref,
                 wb2_ref, bc2_ref, sd2_ref,
                 fw1_ref, fb1_ref, fw2_ref, fb2_ref, fw3_ref, fb3_ref,
                 out_ref):
    f32, bf16 = jnp.float32, jnp.bfloat16
    B = x_ref.shape[0]

    # ---- conv1 + bias + sigmoid --------------------------------------------
    # 5 banded matmuls (kw folded into the weight), M = B*24 rows each.
    # Output lane layout: parity(x)*128 + (x//2)*8 + oc.
    xb = x_ref[...].astype(bf16)                                     # (B,28,28)
    acc1 = jnp.zeros((B * H1, L1), f32)
    for kh in range(K):
        patch = xb[:, kh:kh + H1, :].reshape(B * H1, W0)             # (B*24,28)
        acc1 = acc1 + jnp.dot(patch, wb1_ref[kh],
                              preferred_element_type=f32)            # (B*24,256)
    h1 = _sigmoid(acc1 + bc1_ref[...]).reshape(B, H1, L1)            # (B,24,256)

    # ---- maxpool1 2x2 --------------------------------------------------------
    # x direction: even/odd x live in separate 128-lane tiles -> aligned max.
    p1x = jnp.maximum(h1[:, :, :LHALF], h1[:, :, LHALF:])            # (B,24,128)
    # y direction: pairwise max + 0/1 row decimation (small batched matmul).
    mh1 = jnp.maximum(p1x[:, :H1 - 1, :], p1x[:, 1:, :])             # (B,23,128)
    sd1 = jnp.broadcast_to(sd1_ref[...], (B, Q1, H1 - 1))            # (B,12,23)
    p1 = jnp.einsum('bqy,byc->bqc', sd1, mh1.astype(bf16),
                    preferred_element_type=f32)                      # (B,12,128)

    # ---- conv2 + bias + sigmoid ----------------------------------------------
    # input lanes: (x_pool)*8 + ic ; output lanes: parity(x2)*128 + (x2//2)*16+oc
    p1b = p1.astype(bf16)
    acc2 = jnp.zeros((B * H2, L2), f32)
    for kh in range(K):
        patch = p1b[:, kh:kh + H2, :].reshape(B * H2, LHALF)         # (B*8,128)
        acc2 = acc2 + jnp.dot(patch, wb2_ref[kh],
                              preferred_element_type=f32)            # (B*8,256)
    h2 = _sigmoid(acc2 + bc2_ref[...]).reshape(B, H2, L2)            # (B,8,256)

    # ---- maxpool2 2x2 --------------------------------------------------------
    p2x = jnp.maximum(h2[:, :, :LHALF], h2[:, :, LHALF:])            # (B,8,128)
    mh2 = jnp.maximum(p2x[:, :H2 - 1, :], p2x[:, 1:, :])             # (B,7,128)
    sd2 = jnp.broadcast_to(sd2_ref[...], (B, Q2, H2 - 1))            # (B,4,7)
    p2 = jnp.einsum('bqy,byc->bqc', sd2, mh2.astype(bf16),
                    preferred_element_type=f32)                      # (B,4,128)

    # ---- fc1 (256 -> 120) + sigmoid ------------------------------------------
    # weights pre-permuted to the pooled layout; padding lanes have zero rows.
    p2b = p2.astype(bf16)
    z1 = jnp.zeros((B, F1), f32)
    for u in range(Q2):
        z1 = z1 + jnp.dot(p2b[:, u, :], fw1_ref[u],
                          preferred_element_type=f32)                # (B,120)
    a1 = _sigmoid(z1 + fb1_ref[...])

    # ---- fc2 (120 -> 84) + sigmoid -------------------------------------------
    a2 = _sigmoid(jnp.dot(a1.astype(bf16), fw2_ref[...],
                          preferred_element_type=f32) + fb2_ref[...])

    # ---- fc3 (84 -> 10, padded to 128 lanes) + softmax(dim=1) ----------------
    # padding lanes carry a -1e30 bias so they contribute exp(.) == 0.
    z3 = jnp.dot(a2.astype(bf16), fw3_ref[...],
                 preferred_element_type=f32) + fb3_ref[...]          # (B,128)
    z3 = z3 - jnp.max(z3, axis=-1, keepdims=True)
    e = jnp.exp(z3)
    out_ref[...] = e / jnp.sum(e, axis=-1, keepdims=True)            # (B,128)


# --------------------- one-time weight preprocessing (host) ----------------- #

def prepare_lenet_weights(params):
    """Repack PyTorch-layout weights into the kernel's lane-dense layouts.

    Pure numpy, run once outside jit so the repack is never re-executed as
    XLA ops on the forward path.
    """
    w1 = np.asarray(params["w1"], np.float32)     # (6, 1, 5, 5)
    b1 = np.asarray(params["b1"], np.float32)     # (6,)
    w2 = np.asarray(params["w2"], np.float32)     # (16, 6, 5, 5)
    b2 = np.asarray(params["b2"], np.float32)     # (16,)
    fw1 = np.asarray(params["fw1"], np.float32)   # (120, 256)
    fb1 = np.asarray(params["fb1"], np.float32)
    fw2 = np.asarray(params["fw2"], np.float32)   # (84, 120)
    fb2 = np.asarray(params["fb2"], np.float32)
    fw3 = np.asarray(params["fw3"], np.float32)   # (10, 84)
    fb3 = np.asarray(params["fb3"], np.float32)

    # conv1 banded weights: wb1[kh, x_in, parity*128 + (x//2)*8 + oc]
    wb1 = np.zeros((K, W0, L1), np.float32)
    bc1 = np.zeros((1, L1), np.float32)
    for x1 in range(W1):
        base = (x1 % 2) * LHALF + (x1 // 2) * CP1
        bc1[0, base:base + C1] = b1
        for kh in range(K):
            for kw in range(K):
                wb1[kh, x1 + kw, base:base + C1] = w1[:, 0, kh, kw]

    # conv2 banded weights: wb2[kh, (x_pool)*8 + ic, parity*128 + (x2//2)*16+oc]
    # rows for padding input lanes (ic >= 6 or lane >= 96) stay zero.
    wb2 = np.zeros((K, LHALF, L2), np.float32)
    bc2 = np.zeros((1, L2), np.float32)
    for x2 in range(W2):
        base = (x2 % 2) * LHALF + (x2 // 2) * C2
        bc2[0, base:base + C2] = b2
        for kh in range(K):
            for kw in range(K):
                for ic in range(C1):
                    wb2[kh, (x2 + kw) * CP1 + ic, base:base + C2] = w2[:, ic, kh, kw]

    # 0/1 row-decimation matrices for the stride-2 part of max-pooling.
    sd1 = np.zeros((Q1, H1 - 1), np.float32)
    sd1[np.arange(Q1), 2 * np.arange(Q1)] = 1.0
    sd2 = np.zeros((Q2, H2 - 1), np.float32)
    sd2[np.arange(Q2), 2 * np.arange(Q2)] = 1.0

    # fc1 weights permuted to the pooled layout:
    #   fw1r[u, x*16 + c, j] = fw1[j, c*16 + u*4 + x]  (torch .view flatten order)
    fw1r = np.zeros((Q2, LHALF, F1), np.float32)
    for u in range(Q2):
        for x in range(Q2):
            for c in range(C2):
                fw1r[u, x * C2 + c, :] = fw1[:, c * (Q2 * Q2) + u * Q2 + x]

    # fc3 padded to 128 output lanes; padding bias of -1e30 kills those lanes
    # in the fused softmax.
    fw3p = np.zeros((F2, OUT_LANES), np.float32)
    fw3p[:, :F3] = fw3.T
    fb3p = np.full((1, OUT_LANES), NEG_INF, np.float32)
    fb3p[0, :F3] = fb3

    bf16, f32 = jnp.bfloat16, jnp.float32
    return [
        jnp.asarray(wb1, dtype=bf16), jnp.asarray(bc1, dtype=f32),
        jnp.asarray(sd1, dtype=bf16),
        jnp.asarray(wb2, dtype=bf16), jnp.asarray(bc2, dtype=f32),
        jnp.asarray(sd2, dtype=bf16),
        jnp.asarray(fw1r, dtype=bf16), jnp.asarray(fb1[None, :], dtype=f32),
        jnp.asarray(fw2.T, dtype=bf16), jnp.asarray(fb2[None, :], dtype=f32),
        jnp.asarray(fw3p, dtype=bf16), jnp.asarray(fb3p, dtype=f32),
    ]


# --------------------------------- wrapper ----------------------------------- #

def _full_spec(arr):
    zeros = (0,) * arr.ndim

    def index_map(i):
        return zeros

    return pl.BlockSpec(arr.shape, index_map)


@functools.partial(jax.jit, static_argnames=("block_b",))
def _lenet_pallas(x2d, weights, block_b):
    n = x2d.shape[0]
    num_blocks = n // block_b
    out = pl.pallas_call(
        lenet_kernel,
        out_shape=jax.ShapeDtypeStruct((num_blocks, block_b, OUT_LANES),
                                       jnp.float32),
        grid=(num_blocks,),
        in_specs=[pl.BlockSpec((block_b, H0, W0), lambda i: (i, 0, 0))]
                 + [_full_spec(a) for a in weights],
        out_specs=pl.BlockSpec((None, block_b, OUT_LANES), lambda i: (i, 0, 0)),
        compiler_params=pltpu.CompilerParams(
            dimension_semantics=("parallel",)),
    )(x2d, *weights)
    return out.reshape(n, OUT_LANES)[:, :F3]


def lenet_forward(x, weights, block_b=None):
    """x: (N, 1, 28, 28) float -> softmax probabilities (N, 10)."""
    n = x.shape[0]
    if block_b is None:
        block_b = 1
        for cand in (32, 16, 8, 4, 2):          # keep grid length >= 2 (v7x)
            if n % cand == 0 and n // cand >= 2:
                block_b = cand
                break
    x2d = x.reshape(n, H0, W0)                  # single input channel
    pad = (-n) % block_b
    if pad:
        x2d = jnp.concatenate(
            [x2d, jnp.zeros((pad, H0, W0), x2d.dtype)], axis=0)
    out = _lenet_pallas(x2d, weights, block_b)
    return out[:n]


# ------------------------- plain-JAX reference model ------------------------ #

def lenet_reference(x, params):
    def conv(a, w, b):
        y = jax.lax.conv_general_dilated(
            a, w, window_strides=(1, 1), padding="VALID",
            dimension_numbers=("NCHW", "OIHW", "NCHW"))
        return y + b[None, :, None, None]

    def pool(a):
        return jax.lax.reduce_window(a, -jnp.inf, jax.lax.max,
                                     (1, 1, 2, 2), (1, 1, 2, 2), "VALID")

    h = pool(jax.nn.sigmoid(conv(x, params["w1"], params["b1"])))
    h = pool(jax.nn.sigmoid(conv(h, params["w2"], params["b2"])))
    f = h.reshape(x.shape[0], -1)
    f = jax.nn.sigmoid(f @ params["fw1"].T + params["fb1"])
    f = jax.nn.sigmoid(f @ params["fw2"].T + params["fb2"])
    logits = f @ params["fw3"].T + params["fb3"]
    return jax.nn.softmax(logits, axis=1)


# ------------------------------ parameter init ------------------------------ #

def init_params(key):
    """Deterministic init mimicking PyTorch's U(-1/sqrt(fan_in), 1/sqrt(fan_in))."""
    def uni(k, shape, fan_in):
        bound = 1.0 / jnp.sqrt(jnp.float32(fan_in))
        return jax.random.uniform(k, shape, jnp.float32, -bound, bound)

    ks = jax.random.split(key, 10)
    return {
        "w1": uni(ks[0], (6, 1, 5, 5), 1 * 5 * 5),   "b1": uni(ks[1], (6,), 1 * 5 * 5),
        "w2": uni(ks[2], (16, 6, 5, 5), 6 * 5 * 5),  "b2": uni(ks[3], (16,), 6 * 5 * 5),
        "fw1": uni(ks[4], (120, 256), 256),          "fb1": uni(ks[5], (120,), 256),
        "fw2": uni(ks[6], (84, 120), 120),           "fb2": uni(ks[7], (84,), 120),
        "fw3": uni(ks[8], (10, 84), 84),             "fb3": uni(ks[9], (10,), 84),
    }


# ----------------------------------- main ----------------------------------- #

if __name__ == "__main__":
    key = jax.random.PRNGKey(0)
    k_param, k_x = jax.random.split(key)
    params = init_params(k_param)

    # LeNet's fc stage requires 16*4*4 features => input is (N, 1, 28, 28).
    # N=8 with a batch block of 4 gives a grid of 2 (exercises megacore path).
    x = jax.random.normal(k_x, (8, 1, 28, 28), dtype=jnp.float32)

    weights = prepare_lenet_weights(params)        # one-time host-side repack
    out = jax.block_until_ready(lenet_forward(x, weights))
    ref = jax.block_until_ready(jax.jit(lenet_reference)(x, params))

    assert out.shape == (8, F3)
    # Softmax rows must sum to 1.
    assert jnp.allclose(jnp.sum(out, axis=1), 1.0, atol=1e-4)
    # bf16 MXU operands (f32 accumulation): tolerance deliberately loosened
    # from the exact-f32 ~1e-5 level to absorb bf16 rounding.
    assert jnp.allclose(out, ref, atol=2e-2), (out, ref)
    print("KERNEL_OK")
</pallas_src>

<mosaic_0001>
module attributes {stable_mosaic.version = 11 : i64} {
  func.func @lenet_kernel(%arg0: i32, %arg1: memref<4x28x28xf32, #tpu.memory_space<vmem>>, %arg2: memref<5x28x256xbf16, #tpu.memory_space<vmem>>, %arg3: memref<1x256xf32, #tpu.memory_space<vmem>>, %arg4: memref<12x23xbf16, #tpu.memory_space<vmem>>, %arg5: memref<5x128x256xbf16, #tpu.memory_space<vmem>>, %arg6: memref<1x256xf32, #tpu.memory_space<vmem>>, %arg7: memref<4x7xbf16, #tpu.memory_space<vmem>>, %arg8: memref<4x128x120xbf16, #tpu.memory_space<vmem>>, %arg9: memref<1x120xf32, #tpu.memory_space<vmem>>, %arg10: memref<120x84xbf16, #tpu.memory_space<vmem>>, %arg11: memref<1x84xf32, #tpu.memory_space<vmem>>, %arg12: memref<84x128xbf16, #tpu.memory_space<vmem>>, %arg13: memref<1x128xf32, #tpu.memory_space<vmem>>, %arg14: memref<1x4x128xf32, #tpu.memory_space<vmem>>) attributes {dimension_semantics = [#tpu.dimension_semantics<parallel>], iteration_bounds = array<i64: 2>, scalar_prefetch = 0 : i64, scratch_operands = 0 : i64, tpu.core_type = #tpu.core_type<tc>, window_params = [{transform_indices = @transform_0, window_bounds = array<i64: 4, 28, 28>}, {pipeline_mode = #tpu.pipeline_mode<synchronous>, transform_indices = @transform_1, window_bounds = array<i64: 5, 28, 256>}, {pipeline_mode = #tpu.pipeline_mode<synchronous>, transform_indices = @transform_2, window_bounds = array<i64: 1, 256>}, {pipeline_mode = #tpu.pipeline_mode<synchronous>, transform_indices = @transform_3, window_bounds = array<i64: 12, 23>}, {pipeline_mode = #tpu.pipeline_mode<synchronous>, transform_indices = @transform_4, window_bounds = array<i64: 5, 128, 256>}, {pipeline_mode = #tpu.pipeline_mode<synchronous>, transform_indices = @transform_5, window_bounds = array<i64: 1, 256>}, {pipeline_mode = #tpu.pipeline_mode<synchronous>, transform_indices = @transform_6, window_bounds = array<i64: 4, 7>}, {pipeline_mode = #tpu.pipeline_mode<synchronous>, transform_indices = @transform_7, window_bounds = array<i64: 4, 128, 120>}, {pipeline_mode = #tpu.pipeline_mode<synchronous>, transform_indices = @transform_8, window_bounds = array<i64: 1, 120>}, {pipeline_mode = #tpu.pipeline_mode<synchronous>, transform_indices = @transform_9, window_bounds = array<i64: 120, 84>}, {pipeline_mode = #tpu.pipeline_mode<synchronous>, transform_indices = @transform_10, window_bounds = array<i64: 1, 84>}, {pipeline_mode = #tpu.pipeline_mode<synchronous>, transform_indices = @transform_11, window_bounds = array<i64: 84, 128>}, {pipeline_mode = #tpu.pipeline_mode<synchronous>, transform_indices = @transform_12, window_bounds = array<i64: 1, 128>}, {transform_indices = @transform_13, window_bounds = array<i64: 1, 4, 128>}]} {
    %c0 = arith.constant 0 : index
    %c0_0 = arith.constant 0 : index
    %c0_1 = arith.constant 0 : index
    %0 = vector.load %arg1[%c0, %c0_0, %c0_1] : memref<4x28x28xf32, #tpu.memory_space<vmem>>, vector<4x28x28xf32>
    %1 = arith.truncf %0 : vector<4x28x28xf32> to vector<4x28x28xbf16>
    %cst = arith.constant 0.000000e+00 : f32
    %2 = vector.broadcast %cst : f32 to vector<96x256xf32>
    %3 = vector.extract_strided_slice %1 {offsets = [0, 0, 0], sizes = [4, 24, 28], strides = [1, 1, 1]} : vector<4x28x28xbf16> to vector<4x24x28xbf16>
    %4 = vector.shape_cast %3 : vector<4x24x28xbf16> to vector<96x28xbf16>
    %c0_2 = arith.constant 0 : index
    %c0_3 = arith.constant 0 : index
    %c0_4 = arith.constant 0 : index
    %5 = vector.load %arg2[%c0_2, %c0_3, %c0_4] : memref<5x28x256xbf16, #tpu.memory_space<vmem>>, vector<1x28x256xbf16>
    %6 = vector.shape_cast %5 : vector<1x28x256xbf16> to vector<28x256xbf16>
    %cst_5 = arith.constant dense<0.000000e+00> : vector<96x256xf32>
    %7 = tpu.matmul %4, %6, %cst_5 {dimension_numbers = #tpu.dot_dimension_numbers<[1], [0], [0], [1], [0, 0, 1, 1], [], []>} : vector<96x28xbf16>, vector<28x256xbf16>, vector<96x256xf32> -> vector<96x256xf32>
    %8 = arith.addf %2, %7 : vector<96x256xf32>
    %9 = vector.extract_strided_slice %1 {offsets = [0, 1, 0], sizes = [4, 24, 28], strides = [1, 1, 1]} : vector<4x28x28xbf16> to vector<4x24x28xbf16>
    %10 = vector.shape_cast %9 : vector<4x24x28xbf16> to vector<96x28xbf16>
    %c1 = arith.constant 1 : index
    %c0_6 = arith.constant 0 : index
    %c0_7 = arith.constant 0 : index
    %11 = vector.load %arg2[%c1, %c0_6, %c0_7] : memref<5x28x256xbf16, #tpu.memory_space<vmem>>, vector<1x28x256xbf16>
    %12 = vector.shape_cast %11 : vector<1x28x256xbf16> to vector<28x256xbf16>
    %cst_8 = arith.constant dense<0.000000e+00> : vector<96x256xf32>
    %13 = tpu.matmul %10, %12, %cst_8 {dimension_numbers = #tpu.dot_dimension_numbers<[1], [0], [0], [1], [0, 0, 1, 1], [], []>} : vector<96x28xbf16>, vector<28x256xbf16>, vector<96x256xf32> -> vector<96x256xf32>
    %14 = arith.addf %8, %13 : vector<96x256xf32>
    %15 = vector.extract_strided_slice %1 {offsets = [0, 2, 0], sizes = [4, 24, 28], strides = [1, 1, 1]} : vector<4x28x28xbf16> to vector<4x24x28xbf16>
    %16 = vector.shape_cast %15 : vector<4x24x28xbf16> to vector<96x28xbf16>
    %c2 = arith.constant 2 : index
    %c0_9 = arith.constant 0 : index
    %c0_10 = arith.constant 0 : index
    %17 = vector.load %arg2[%c2, %c0_9, %c0_10] : memref<5x28x256xbf16, #tpu.memory_space<vmem>>, vector<1x28x256xbf16>
    %18 = vector.shape_cast %17 : vector<1x28x256xbf16> to vector<28x256xbf16>
    %cst_11 = arith.constant dense<0.000000e+00> : vector<96x256xf32>
    %19 = tpu.matmul %16, %18, %cst_11 {dimension_numbers = #tpu.dot_dimension_numbers<[1], [0], [0], [1], [0, 0, 1, 1], [], []>} : vector<96x28xbf16>, vector<28x256xbf16>, vector<96x256xf32> -> vector<96x256xf32>
    %20 = arith.addf %14, %19 : vector<96x256xf32>
    %21 = vector.extract_strided_slice %1 {offsets = [0, 3, 0], sizes = [4, 24, 28], strides = [1, 1, 1]} : vector<4x28x28xbf16> to vector<4x24x28xbf16>
    %22 = vector.shape_cast %21 : vector<4x24x28xbf16> to vector<96x28xbf16>
    %c3 = arith.constant 3 : index
    %c0_12 = arith.constant 0 : index
    %c0_13 = arith.constant 0 : index
    %23 = vector.load %arg2[%c3, %c0_12, %c0_13] : memref<5x28x256xbf16, #tpu.memory_space<vmem>>, vector<1x28x256xbf16>
    %24 = vector.shape_cast %23 : vector<1x28x256xbf16> to vector<28x256xbf16>
    %cst_14 = arith.constant dense<0.000000e+00> : vector<96x256xf32>
    %25 = tpu.matmul %22, %24, %cst_14 {dimension_numbers = #tpu.dot_dimension_numbers<[1], [0], [0], [1], [0, 0, 1, 1], [], []>} : vector<96x28xbf16>, vector<28x256xbf16>, vector<96x256xf32> -> vector<96x256xf32>
    %26 = arith.addf %20, %25 : vector<96x256xf32>
    %27 = vector.extract_strided_slice %1 {offsets = [0, 4, 0], sizes = [4, 24, 28], strides = [1, 1, 1]} : vector<4x28x28xbf16> to vector<4x24x28xbf16>
    %28 = vector.shape_cast %27 : vector<4x24x28xbf16> to vector<96x28xbf16>
    %c4 = arith.constant 4 : index
    %c0_15 = arith.constant 0 : index
    %c0_16 = arith.constant 0 : index
    %29 = vector.load %arg2[%c4, %c0_15, %c0_16] : memref<5x28x256xbf16, #tpu.memory_space<vmem>>, vector<1x28x256xbf16>
    %30 = vector.shape_cast %29 : vector<1x28x256xbf16> to vector<28x256xbf16>
    %cst_17 = arith.constant dense<0.000000e+00> : vector<96x256xf32>
    %31 = tpu.matmul %28, %30, %cst_17 {dimension_numbers = #tpu.dot_dimension_numbers<[1], [0], [0], [1], [0, 0, 1, 1], [], []>} : vector<96x28xbf16>, vector<28x256xbf16>, vector<96x256xf32> -> vector<96x256xf32>
    %32 = arith.addf %26, %31 : vector<96x256xf32>
    %c0_18 = arith.constant 0 : index
    %c0_19 = arith.constant 0 : index
    %33 = vector.load %arg3[%c0_18, %c0_19] : memref<1x256xf32, #tpu.memory_space<vmem>>, vector<1x256xf32>
    %34 = vector.broadcast %33 : vector<1x256xf32> to vector<96x256xf32>
    %35 = arith.addf %32, %34 : vector<96x256xf32>
    %cst_20 = arith.constant 5.000000e-01 : f32
    %36 = vector.broadcast %cst_20 : f32 to vector<96x256xf32>
    %37 = arith.mulf %36, %35 : vector<96x256xf32>
    %38 = math.tanh %37 : vector<96x256xf32>
    %cst_21 = arith.constant 1.000000e+00 : f32
    %39 = vector.broadcast %cst_21 : f32 to vector<96x256xf32>
    %40 = arith.addf %38, %39 : vector<96x256xf32>
    %cst_22 = arith.constant 5.000000e-01 : f32
    %41 = vector.broadcast %cst_22 : f32 to vector<96x256xf32>
    %42 = arith.mulf %41, %40 : vector<96x256xf32>
    %43 = vector.shape_cast %42 : vector<96x256xf32> to vector<4x24x256xf32>
    %44 = vector.extract_strided_slice %43 {offsets = [0, 0, 0], sizes = [4, 24, 128], strides = [1, 1, 1]} : vector<4x24x256xf32> to vector<4x24x128xf32>
    %45 = vector.extract_strided_slice %43 {offsets = [0, 0, 128], sizes = [4, 24, 128], strides = [1, 1, 1]} : vector<4x24x256xf32> to vector<4x24x128xf32>
    %46 = arith.maximumf %44, %45 : vector<4x24x128xf32>
    %47 = vector.extract_strided_slice %46 {offsets = [0, 0, 0], sizes = [4, 23, 128], strides = [1, 1, 1]} : vector<4x24x128xf32> to vector<4x23x128xf32>
    %48 = vector.extract_strided_slice %46 {offsets = [0, 1, 0], sizes = [4, 23, 128], strides = [1, 1, 1]} : vector<4x24x128xf32> to vector<4x23x128xf32>
    %49 = arith.maximumf %47, %48 : vector<4x23x128xf32>
    %c0_23 = arith.constant 0 : index
    %c0_24 = arith.constant 0 : index
    %50 = vector.load %arg4[%c0_23, %c0_24] : memref<12x23xbf16, #tpu.memory_space<vmem>>, vector<12x23xbf16>
    %51 = vector.shape_cast %50 : vector<12x23xbf16> to vector<1x12x23xbf16>
    %52 = vector.broadcast %51 : vector<1x12x23xbf16> to vector<4x12x23xbf16>
    %53 = arith.truncf %49 : vector<4x23x128xf32> to vector<4x23x128xbf16>
    "tpu.trace_start"() <{level = 10 : i32, message = "bqy,byc->bqc"}> : () -> ()
    %cst_25 = arith.constant dense<0.000000e+00> : vector<4x12x128xf32>
    %54 = tpu.matmul %52, %53, %cst_25 {dimension_numbers = #tpu.dot_dimension_numbers<[2], [1], [1], [2], [0, 0, 0, 1, 1, 2], [0], [0]>} : vector<4x12x23xbf16>, vector<4x23x128xbf16>, vector<4x12x128xf32> -> vector<4x12x128xf32>
    "tpu.trace_stop"() : () -> ()
    %55 = arith.truncf %54 : vector<4x12x128xf32> to vector<4x12x128xbf16>
    %cst_26 = arith.constant 0.000000e+00 : f32
    %56 = vector.broadcast %cst_26 : f32 to vector<32x256xf32>
    %57 = vector.extract_strided_slice %55 {offsets = [0, 0, 0], sizes = [4, 8, 128], strides = [1, 1, 1]} : vector<4x12x128xbf16> to vector<4x8x128xbf16>
    %58 = vector.shape_cast %57 : vector<4x8x128xbf16> to vector<32x128xbf16>
    %c0_27 = arith.constant 0 : index
    %c0_28 = arith.constant 0 : index
    %c0_29 = arith.constant 0 : index
    %59 = vector.load %arg5[%c0_27, %c0_28, %c0_29] : memref<5x128x256xbf16, #tpu.memory_space<vmem>>, vector<1x128x256xbf16>
    %60 = vector.shape_cast %59 : vector<1x128x256xbf16> to vector<128x256xbf16>
    %cst_30 = arith.constant dense<0.000000e+00> : vector<32x256xf32>
    %61 = tpu.matmul %58, %60, %cst_30 {dimension_numbers = #tpu.dot_dimension_numbers<[1], [0], [0], [1], [0, 0, 1, 1], [], []>} : vector<32x128xbf16>, vector<128x256xbf16>, vector<32x256xf32> -> vector<32x256xf32>
    %62 = arith.addf %56, %61 : vector<32x256xf32>
    %63 = vector.extract_strided_slice %55 {offsets = [0, 1, 0], sizes = [4, 8, 128], strides = [1, 1, 1]} : vector<4x12x128xbf16> to vector<4x8x128xbf16>
    %64 = vector.shape_cast %63 : vector<4x8x128xbf16> to vector<32x128xbf16>
    %c1_31 = arith.constant 1 : index
    %c0_32 = arith.constant 0 : index
    %c0_33 = arith.constant 0 : index
    %65 = vector.load %arg5[%c1_31, %c0_32, %c0_33] : memref<5x128x256xbf16, #tpu.memory_space<vmem>>, vector<1x128x256xbf16>
    %66 = vector.shape_cast %65 : vector<1x128x256xbf16> to vector<128x256xbf16>
    %cst_34 = arith.constant dense<0.000000e+00> : vector<32x256xf32>
    %67 = tpu.matmul %64, %66, %cst_34 {dimension_numbers = #tpu.dot_dimension_numbers<[1], [0], [0], [1], [0, 0, 1, 1], [], []>} : vector<32x128xbf16>, vector<128x256xbf16>, vector<32x256xf32> -> vector<32x256xf32>
    %68 = arith.addf %62, %67 : vector<32x256xf32>
    %69 = vector.extract_strided_slice %55 {offsets = [0, 2, 0], sizes = [4, 8, 128], strides = [1, 1, 1]} : vector<4x12x128xbf16> to vector<4x8x128xbf16>
    %70 = vector.shape_cast %69 : vector<4x8x128xbf16> to vector<32x128xbf16>
    %c2_35 = arith.constant 2 : index
    %c0_36 = arith.constant 0 : index
    %c0_37 = arith.constant 0 : index
    %71 = vector.load %arg5[%c2_35, %c0_36, %c0_37] : memref<5x128x256xbf16, #tpu.memory_space<vmem>>, vector<1x128x256xbf16>
    %72 = vector.shape_cast %71 : vector<1x128x256xbf16> to vector<128x256xbf16>
    %cst_38 = arith.constant dense<0.000000e+00> : vector<32x256xf32>
    %73 = tpu.matmul %70, %72, %cst_38 {dimension_numbers = #tpu.dot_dimension_numbers<[1], [0], [0], [1], [0, 0, 1, 1], [], []>} : vector<32x128xbf16>, vector<128x256xbf16>, vector<32x256xf32> -> vector<32x256xf32>
    %74 = arith.addf %68, %73 : vector<32x256xf32>
    %75 = vector.extract_strided_slice %55 {offsets = [0, 3, 0], sizes = [4, 8, 128], strides = [1, 1, 1]} : vector<4x12x128xbf16> to vector<4x8x128xbf16>
    %76 = vector.shape_cast %75 : vector<4x8x128xbf16> to vector<32x128xbf16>
    %c3_39 = arith.constant 3 : index
    %c0_40 = arith.constant 0 : index
    %c0_41 = arith.constant 0 : index
    %77 = vector.load %arg5[%c3_39, %c0_40, %c0_41] : memref<5x128x256xbf16, #tpu.memory_space<vmem>>, vector<1x128x256xbf16>
    %78 = vector.shape_cast %77 : vector<1x128x256xbf16> to vector<128x256xbf16>
    %cst_42 = arith.constant dense<0.000000e+00> : vector<32x256xf32>
    %79 = tpu.matmul %76, %78, %cst_42 {dimension_numbers = #tpu.dot_dimension_numbers<[1], [0], [0], [1], [0, 0, 1, 1], [], []>} : vector<32x128xbf16>, vector<128x256xbf16>, vector<32x256xf32> -> vector<32x256xf32>
    %80 = arith.addf %74, %79 : vector<32x256xf32>
    %81 = vector.extract_strided_slice %55 {offsets = [0, 4, 0], sizes = [4, 8, 128], strides = [1, 1, 1]} : vector<4x12x128xbf16> to vector<4x8x128xbf16>
    %82 = vector.shape_cast %81 : vector<4x8x128xbf16> to vector<32x128xbf16>
    %c4_43 = arith.constant 4 : index
    %c0_44 = arith.constant 0 : index
    %c0_45 = arith.constant 0 : index
    %83 = vector.load %arg5[%c4_43, %c0_44, %c0_45] : memref<5x128x256xbf16, #tpu.memory_space<vmem>>, vector<1x128x256xbf16>
    %84 = vector.shape_cast %83 : vector<1x128x256xbf16> to vector<128x256xbf16>
    %cst_46 = arith.constant dense<0.000000e+00> : vector<32x256xf32>
    %85 = tpu.matmul %82, %84, %cst_46 {dimension_numbers = #tpu.dot_dimension_numbers<[1], [0], [0], [1], [0, 0, 1, 1], [], []>} : vector<32x128xbf16>, vector<128x256xbf16>, vector<32x256xf32> -> vector<32x256xf32>
    %86 = arith.addf %80, %85 : vector<32x256xf32>
    %c0_47 = arith.constant 0 : index
    %c0_48 = arith.constant 0 : index
    %87 = vector.load %arg6[%c0_47, %c0_48] : memref<1x256xf32, #tpu.memory_space<vmem>>, vector<1x256xf32>
    %88 = vector.broadcast %87 : vector<1x256xf32> to vector<32x256xf32>
    %89 = arith.addf %86, %88 : vector<32x256xf32>
    %cst_49 = arith.constant 5.000000e-01 : f32
    %90 = vector.broadcast %cst_49 : f32 to vector<32x256xf32>
    %91 = arith.mulf %90, %89 : vector<32x256xf32>
    %92 = math.tanh %91 : vector<32x256xf32>
    %cst_50 = arith.constant 1.000000e+00 : f32
    %93 = vector.broadcast %cst_50 : f32 to vector<32x256xf32>
    %94 = arith.addf %92, %93 : vector<32x256xf32>
    %cst_51 = arith.constant 5.000000e-01 : f32
    %95 = vector.broadcast %cst_51 : f32 to vector<32x256xf32>
    %96 = arith.mulf %95, %94 : vector<32x256xf32>
    %97 = vector.shape_cast %96 : vector<32x256xf32> to vector<4x8x256xf32>
    %98 = vector.extract_strided_slice %97 {offsets = [0, 0, 0], sizes = [4, 8, 128], strides = [1, 1, 1]} : vector<4x8x256xf32> to vector<4x8x128xf32>
    %99 = vector.extract_strided_slice %97 {offsets = [0, 0, 128], sizes = [4, 8, 128], strides = [1, 1, 1]} : vector<4x8x256xf32> to vector<4x8x128xf32>
    %100 = arith.maximumf %98, %99 : vector<4x8x128xf32>
    %101 = vector.extract_strided_slice %100 {offsets = [0, 0, 0], sizes = [4, 7, 128], strides = [1, 1, 1]} : vector<4x8x128xf32> to vector<4x7x128xf32>
    %102 = vector.extract_strided_slice %100 {offsets = [0, 1, 0], sizes = [4, 7, 128], strides = [1, 1, 1]} : vector<4x8x128xf32> to vector<4x7x128xf32>
    %103 = arith.maximumf %101, %102 : vector<4x7x128xf32>
    %c0_52 = arith.constant 0 : index
    %c0_53 = arith.constant 0 : index
    %104 = vector.load %arg7[%c0_52, %c0_53] : memref<4x7xbf16, #tpu.memory_space<vmem>>, vector<4x7xbf16>
    %105 = vector.shape_cast %104 : vector<4x7xbf16> to vector<1x4x7xbf16>
    %106 = vector.broadcast %105 : vector<1x4x7xbf16> to vector<4x4x7xbf16>
    %107 = arith.truncf %103 : vector<4x7x128xf32> to vector<4x7x128xbf16>
    "tpu.trace_start"() <{level = 10 : i32, message = "bqy,byc->bqc"}> : () -> ()
    %cst_54 = arith.constant dense<0.000000e+00> : vector<4x4x128xf32>
    %108 = tpu.matmul %106, %107, %cst_54 {dimension_numbers = #tpu.dot_dimension_numbers<[2], [1], [1], [2], [0, 0, 0, 1, 1, 2], [0], [0]>} : vector<4x4x7xbf16>, vector<4x7x128xbf16>, vector<4x4x128xf32> -> vector<4x4x128xf32>
    "tpu.trace_stop"() : () -> ()
    %109 = arith.truncf %108 : vector<4x4x128xf32> to vector<4x4x128xbf16>
    %cst_55 = arith.constant 0.000000e+00 : f32
    %110 = vector.broadcast %cst_55 : f32 to vector<4x120xf32>
    %111 = vector.extract_strided_slice %109 {offsets = [0, 0, 0], sizes = [4, 1, 128], strides = [1, 1, 1]} : vector<4x4x128xbf16> to vector<4x1x128xbf16>
    %112 = vector.shape_cast %111 : vector<4x1x128xbf16> to vector<4x128xbf16>
    %c0_56 = arith.constant 0 : index
    %c0_57 = arith.constant 0 : index
    %c0_58 = arith.constant 0 : index
    %113 = vector.load %arg8[%c0_56, %c0_57, %c0_58] : memref<4x128x120xbf16, #tpu.memory_space<vmem>>, vector<1x128x120xbf16>
    %114 = vector.shape_cast %113 : vector<1x128x120xbf16> to vector<128x120xbf16>
    %cst_59 = arith.constant dense<0.000000e+00> : vector<4x120xf32>
    %115 = tpu.matmul %112, %114, %cst_59 {dimension_numbers = #tpu.dot_dimension_numbers<[1], [0], [0], [1], [0, 0, 1, 1], [], []>} : vector<4x128xbf16>, vector<128x120xbf16>, vector<4x120xf32> -> vector<4x120xf32>
    %116 = arith.addf %110, %115 : vector<4x120xf32>
    %117 = vector.extract_strided_slice %109 {offsets = [0, 1, 0], sizes = [4, 1, 128], strides = [1, 1, 1]} : vector<4x4x128xbf16> to vector<4x1x128xbf16>
    %118 = vector.shape_cast %117 : vector<4x1x128xbf16> to vector<4x128xbf16>
    %c1_60 = arith.constant 1 : index
    %c0_61 = arith.constant 0 : index
    %c0_62 = arith.constant 0 : index
    %119 = vector.load %arg8[%c1_60, %c0_61, %c0_62] : memref<4x128x120xbf16, #tpu.memory_space<vmem>>, vector<1x128x120xbf16>
    %120 = vector.shape_cast %119 : vector<1x128x120xbf16> to vector<128x120xbf16>
    %cst_63 = arith.constant dense<0.000000e+00> : vector<4x120xf32>
    %121 = tpu.matmul %118, %120, %cst_63 {dimension_numbers = #tpu.dot_dimension_numbers<[1], [0], [0], [1], [0, 0, 1, 1], [], []>} : vector<4x128xbf16>, vector<128x120xbf16>, vector<4x120xf32> -> vector<4x120xf32>
    %122 = arith.addf %116, %121 : vector<4x120xf32>
    %123 = vector.extract_strided_slice %109 {offsets = [0, 2, 0], sizes = [4, 1, 128], strides = [1, 1, 1]} : vector<4x4x128xbf16> to vector<4x1x128xbf16>
    %124 = vector.shape_cast %123 : vector<4x1x128xbf16> to vector<4x128xbf16>
    %c2_64 = arith.constant 2 : index
    %c0_65 = arith.constant 0 : index
    %c0_66 = arith.constant 0 : index
    %125 = vector.load %arg8[%c2_64, %c0_65, %c0_66] : memref<4x128x120xbf16, #tpu.memory_space<vmem>>, vector<1x128x120xbf16>
    %126 = vector.shape_cast %125 : vector<1x128x120xbf16> to vector<128x120xbf16>
    %cst_67 = arith.constant dense<0.000000e+00> : vector<4x120xf32>
    %127 = tpu.matmul %124, %126, %cst_67 {dimension_numbers = #tpu.dot_dimension_numbers<[1], [0], [0], [1], [0, 0, 1, 1], [], []>} : vector<4x128xbf16>, vector<128x120xbf16>, vector<4x120xf32> -> vector<4x120xf32>
    %128 = arith.addf %122, %127 : vector<4x120xf32>
    %129 = vector.extract_strided_slice %109 {offsets = [0, 3, 0], sizes = [4, 1, 128], strides = [1, 1, 1]} : vector<4x4x128xbf16> to vector<4x1x128xbf16>
    %130 = vector.shape_cast %129 : vector<4x1x128xbf16> to vector<4x128xbf16>
    %c3_68 = arith.constant 3 : index
    %c0_69 = arith.constant 0 : index
    %c0_70 = arith.constant 0 : index
    %131 = vector.load %arg8[%c3_68, %c0_69, %c0_70] : memref<4x128x120xbf16, #tpu.memory_space<vmem>>, vector<1x128x120xbf16>
    %132 = vector.shape_cast %131 : vector<1x128x120xbf16> to vector<128x120xbf16>
    %cst_71 = arith.constant dense<0.000000e+00> : vector<4x120xf32>
    %133 = tpu.matmul %130, %132, %cst_71 {dimension_numbers = #tpu.dot_dimension_numbers<[1], [0], [0], [1], [0, 0, 1, 1], [], []>} : vector<4x128xbf16>, vector<128x120xbf16>, vector<4x120xf32> -> vector<4x120xf32>
    %134 = arith.addf %128, %133 : vector<4x120xf32>
    %c0_72 = arith.constant 0 : index
    %c0_73 = arith.constant 0 : index
    %135 = vector.load %arg9[%c0_72, %c0_73] : memref<1x120xf32, #tpu.memory_space<vmem>>, vector<1x120xf32>
    %136 = vector.broadcast %135 : vector<1x120xf32> to vector<4x120xf32>
    %137 = arith.addf %134, %136 : vector<4x120xf32>
    %cst_74 = arith.constant 5.000000e-01 : f32
    %138 = vector.broadcast %cst_74 : f32 to vector<4x120xf32>
    %139 = arith.mulf %138, %137 : vector<4x120xf32>
    %140 = math.tanh %139 : vector<4x120xf32>
    %cst_75 = arith.constant 1.000000e+00 : f32
    %141 = vector.broadcast %cst_75 : f32 to vector<4x120xf32>
    %142 = arith.addf %140, %141 : vector<4x120xf32>
    %cst_76 = arith.constant 5.000000e-01 : f32
    %143 = vector.broadcast %cst_76 : f32 to vector<4x120xf32>
    %144 = arith.mulf %143, %142 : vector<4x120xf32>
    %145 = arith.truncf %144 : vector<4x120xf32> to vector<4x120xbf16>
    %c0_77 = arith.constant 0 : index
    %c0_78 = arith.constant 0 : index
    %146 = vector.load %arg10[%c0_77, %c0_78] : memref<120x84xbf16, #tpu.memory_space<vmem>>, vector<120x84xbf16>
    %cst_79 = arith.constant dense<0.000000e+00> : vector<4x84xf32>
    %147 = tpu.matmul %145, %146, %cst_79 {dimension_numbers = #tpu.dot_dimension_numbers<[1], [0], [0], [1], [0, 0, 1, 1], [], []>} : vector<4x120xbf16>, vector<120x84xbf16>, vector<4x84xf32> -> vector<4x84xf32>
    %c0_80 = arith.constant 0 : index
    %c0_81 = arith.constant 0 : index
    %148 = vector.load %arg11[%c0_80, %c0_81] : memref<1x84xf32, #tpu.memory_space<vmem>>, vector<1x84xf32>
    %149 = vector.broadcast %148 : vector<1x84xf32> to vector<4x84xf32>
    %150 = arith.addf %147, %149 : vector<4x84xf32>
    %cst_82 = arith.constant 5.000000e-01 : f32
    %151 = vector.broadcast %cst_82 : f32 to vector<4x84xf32>
    %152 = arith.mulf %151, %150 : vector<4x84xf32>
    %153 = math.tanh %152 : vector<4x84xf32>
    %cst_83 = arith.constant 1.000000e+00 : f32
    %154 = vector.broadcast %cst_83 : f32 to vector<4x84xf32>
    %155 = arith.addf %153, %154 : vector<4x84xf32>
    %cst_84 = arith.constant 5.000000e-01 : f32
    %156 = vector.broadcast %cst_84 : f32 to vector<4x84xf32>
    %157 = arith.mulf %156, %155 : vector<4x84xf32>
    %158 = arith.truncf %157 : vector<4x84xf32> to vector<4x84xbf16>
    %c0_85 = arith.constant 0 : index
    %c0_86 = arith.constant 0 : index
    %159 = vector.load %arg12[%c0_85, %c0_86] : memref<84x128xbf16, #tpu.memory_space<vmem>>, vector<84x128xbf16>
    %cst_87 = arith.constant dense<0.000000e+00> : vector<4x128xf32>
    %160 = tpu.matmul %158, %159, %cst_87 {dimension_numbers = #tpu.dot_dimension_numbers<[1], [0], [0], [1], [0, 0, 1, 1], [], []>} : vector<4x84xbf16>, vector<84x128xbf16>, vector<4x128xf32> -> vector<4x128xf32>
    %c0_88 = arith.constant 0 : index
    %c0_89 = arith.constant 0 : index
    %161 = vector.load %arg13[%c0_88, %c0_89] : memref<1x128xf32, #tpu.memory_space<vmem>>, vector<1x128xf32>
    %162 = vector.broadcast %161 : vector<1x128xf32> to vector<4x128xf32>
    %163 = arith.addf %160, %162 : vector<4x128xf32>
    %cst_90 = arith.constant dense<0xFF800000> : vector<4xf32>
    %164 = vector.multi_reduction <maximumf>, %163, %cst_90 [1] : vector<4x128xf32> to vector<4xf32>
    %165 = vector.shape_cast %164 : vector<4xf32> to vector<4x1xf32>
    %166 = vector.broadcast %165 : vector<4x1xf32> to vector<4x128xf32>
    %167 = arith.subf %163, %166 : vector<4x128xf32>
    %168 = math.exp %167 : vector<4x128xf32>
    %cst_91 = arith.constant dense<0.000000e+00> : vector<4xf32>
    %169 = vector.multi_reduction <add>, %168, %cst_91 [1] : vector<4x128xf32> to vector<4xf32>
    %170 = vector.shape_cast %169 : vector<4xf32> to vector<4x1xf32>
    %171 = vector.broadcast %170 : vector<4x1xf32> to vector<4x128xf32>
    %172 = arith.divf %168, %171 : vector<4x128xf32>
    %c0_92 = arith.constant 0 : index
    %c0_93 = arith.constant 0 : index
    %c0_94 = arith.constant 0 : index
    %173 = vector.load %arg14[%c0_92, %c0_93, %c0_94] : memref<1x4x128xf32, #tpu.memory_space<vmem>>, vector<1x4x128xf32>
    %174 = vector.shape_cast %173 : vector<1x4x128xf32> to vector<4x128xf32>
    %175 = vector.shape_cast %172 : vector<4x128xf32> to vector<1x4x128xf32>
    tpu.vector_store %arg14[%c0_92, %c0_93, %c0_94], %175 {strides = array<i32>} : memref<1x4x128xf32, #tpu.memory_space<vmem>>, vector<1x4x128xf32>,
    return
  }
  func.func @transform_0(%arg0: i32) -> (i32, i32, i32) {
    %c0_i32 = arith.constant 0 : i32
    %c0_i32_0 = arith.constant 0 : i32
    %c0_i32_1 = arith.constant 0 : i32
    return %arg0, %c0_i32, %c0_i32_0 : i32, i32, i32
  }
  func.func @transform_1(%arg0: i32) -> (i32, i32, i32) {
    %c0_i32 = arith.constant 0 : i32
    %c0_i32_0 = arith.constant 0 : i32
    %c0_i32_1 = arith.constant 0 : i32
    %c0_i32_2 = arith.constant 0 : i32
    return %c0_i32, %c0_i32_0, %c0_i32_1 : i32, i32, i32
  }
  func.func @transform_2(%arg0: i32) -> (i32, i32) {
    %c0_i32 = arith.constant 0 : i32
    %c0_i32_0 = arith.constant 0 : i32
    %c0_i32_1 = arith.constant 0 : i32
    return %c0_i32, %c0_i32_0 : i32, i32
  }
  func.func @transform_3(%arg0: i32) -> (i32, i32) {
    %c0_i32 = arith.constant 0 : i32
    %c0_i32_0 = arith.constant 0 : i32
    %c0_i32_1 = arith.constant 0 : i32
    return %c0_i32, %c0_i32_0 : i32, i32
  }
  func.func @transform_4(%arg0: i32) -> (i32, i32, i32) {
    %c0_i32 = arith.constant 0 : i32
    %c0_i32_0 = arith.constant 0 : i32
    %c0_i32_1 = arith.constant 0 : i32
    %c0_i32_2 = arith.constant 0 : i32
    return %c0_i32, %c0_i32_0, %c0_i32_1 : i32, i32, i32
  }
  func.func @transform_5(%arg0: i32) -> (i32, i32) {
    %c0_i32 = arith.constant 0 : i32
    %c0_i32_0 = arith.constant 0 : i32
    %c0_i32_1 = arith.constant 0 : i32
    return %c0_i32, %c0_i32_0 : i32, i32
  }
  func.func @transform_6(%arg0: i32) -> (i32, i32) {
    %c0_i32 = arith.constant 0 : i32
    %c0_i32_0 = arith.constant 0 : i32
    %c0_i32_1 = arith.constant 0 : i32
    return %c0_i32, %c0_i32_0 : i32, i32
  }
  func.func @transform_7(%arg0: i32) -> (i32, i32, i32) {
    %c0_i32 = arith.constant 0 : i32
    %c0_i32_0 = arith.constant 0 : i32
    %c0_i32_1 = arith.constant 0 : i32
    %c0_i32_2 = arith.constant 0 : i32
    return %c0_i32, %c0_i32_0, %c0_i32_1 : i32, i32, i32
  }
  func.func @transform_8(%arg0: i32) -> (i32, i32) {
    %c0_i32 = arith.constant 0 : i32
    %c0_i32_0 = arith.constant 0 : i32
    %c0_i32_1 = arith.constant 0 : i32
    return %c0_i32, %c0_i32_0 : i32, i32
  }
  func.func @transform_9(%arg0: i32) -> (i32, i32) {
    %c0_i32 = arith.constant 0 : i32
    %c0_i32_0 = arith.constant 0 : i32
    %c0_i32_1 = arith.constant 0 : i32
    return %c0_i32, %c0_i32_0 : i32, i32
  }
  func.func @transform_10(%arg0: i32) -> (i32, i32) {
    %c0_i32 = arith.constant 0 : i32
    %c0_i32_0 = arith.constant 0 : i32
    %c0_i32_1 = arith.constant 0 : i32
    return %c0_i32, %c0_i32_0 : i32, i32
  }
  func.func @transform_11(%arg0: i32) -> (i32, i32) {
    %c0_i32 = arith.constant 0 : i32
    %c0_i32_0 = arith.constant 0 : i32
    %c0_i32_1 = arith.constant 0 : i32
    return %c0_i32, %c0_i32_0 : i32, i32
  }
  func.func @transform_12(%arg0: i32) -> (i32, i32) {
    %c0_i32 = arith.constant 0 : i32
    %c0_i32_0 = arith.constant 0 : i32
    %c0_i32_1 = arith.constant 0 : i32
    return %c0_i32, %c0_i32_0 : i32, i32
  }
  func.func @transform_13(%arg0: i32) -> (i32, i32, i32) {
    %c0_i32 = arith.constant 0 : i32
    %c0_i32_0 = arith.constant 0 : i32
    %c0_i32_1 = arith.constant 0 : i32
    return %arg0, %c0_i32, %c0_i32_0 : i32, i32, i32
  }
}

</mosaic_0001>

<bundles_post_ra>
// kernel: _lenet_pallas.1
= control target key start
LH: loop header
LB: loop body
LE: loop exit
PB: predicated region body
PF: predicated region fallthrough
CT: control target
= control target key end

     0   :  { %s6503_s0 = inlined_call_operand.vmem [shape: f32[8,28,28], index: 0, kind: input, shape index: {}]   ;;  %s6504_s1 = inlined_call_operand.vmem [shape: bf16[5,28,256], index: 1, kind: input, shape index: {}]   ;;  %s6505_s2 = inlined_call_operand.vmem [shape: f32[1,256], index: 2, kind: input, shape index: {}]   ;;  %s6506_s3 = inlined_call_operand.vmem [shape: bf16[12,23], index: 3, kind: input, shape index: {}]   ;;  %s6507_s4 = inlined_call_operand.vmem [shape: bf16[5,128,256], index: 4, kind: input, shape index: {}]   ;;  %s6508_s5 = inlined_call_operand.vmem [shape: f32[1,256], index: 5, kind: input, shape index: {}]   ;;  %s6509_s6 = inlined_call_operand.vmem [shape: bf16[4,7], index: 6, kind: input, shape index: {}]   ;;  %s6510_s7 = inlined_call_operand.vmem [shape: bf16[4,128,120], index: 7, kind: input, shape index: {}]   ;;  %s6511_s8 = inlined_call_operand.vmem [shape: f32[1,120], index: 8, kind: input, shape index: {}]   ;;  %s6512_s9 = inlined_call_operand.vmem [shape: bf16[120,84], index: 9, kind: input, shape index: {}]   ;;  %s6513_s10 = inlined_call_operand.vmem [shape: f32[1,84], index: 10, kind: input, shape index: {}]   ;;  %s6514_s11 = inlined_call_operand.hbm [shape: bf16[84,128], index: 11, kind: input, shape index: {}]   ;;  %s6515_s12 = inlined_call_operand.vmem [shape: f32[1,128], index: 12, kind: input, shape index: {}]   ;;  %s6516_s13 = inlined_call_operand.hbm [shape: f32[2,4,128], index: 13, kind: output, shape index: {}]  }
   0x1   :  { %6528 = sst [smem:[#allocation21_spill]] %s6514_s11 }
   0x2   :  { %18 = vsyncpa [#allocation3], 0 }
   0x3   :  { %19 = vsyncpa [#allocation4], 0 }
   0x4   :  { %21 = vsyncpa [#allocation4 + $0x1], 0  ;;  %s4859_s25 = smov 0   ;;  %s4861_s26 = smov 0  }
   0x5   :  { %s4863_s27 = smov 0   ;;  %s4865_s28 = smov 0  }
   0x6 LB: > { %6529 = sst [smem:[#allocation8_spill]] %s4779_s27  ;;  %s4880_s29 = sadd.s32 4294967295, %s4783_s28   ;;  %s4783_s28 = sphi %s4865_s28, %s6563_s28   ;;  %s4779_s27 = sphi %s4863_s27, %s6565_s27   ;;  %s4775_s26 = sphi %s4861_s26, %s6567_s26   ;;  %s4771_s25 = sphi %s4859_s25, %s6566_s25  }
   0x7   : > { %s3601_s30 = sadd.s32 4294967294, %s4783_s28   ;;  %s4884_s14 = sadd.s32 1, %s4783_s28  }
   0x8   : > { %6530 = sst [smem:[#allocation9_spill]] %s4884_s14  ;;  %s312_s15 = sadd.s32 1, %s4779_s27 }
   0x9   : > { %s309_s16 = ssub.s32 %s4783_s28, %s4884_s14  ;;  %p322_p0 = scmp.ne.s32.totalorder %s4779_s27, %s4775_s26 }
   0xa   : > { %p310_p1 = scmp.eq.s32.totalorder %s309_s16, 0  ;;  %p323_p2 = scmp.eq.s32.totalorder %s4880_s29, 1 }
   0xb   : > { %p328_p3 = scmp.ne.s32.totalorder %s4775_s26, %s4771_s25  ;;  %p329_p4 = scmp.eq.s32.totalorder %s3601_s30, 1 }
   0xc   : > { %s4895_s17 = scalar_select %p310_p1, %s4779_s27, %s312_s15  }
   0xd   : > { %p4897_p5 = por %p323_p2, %p322_p0  ;;  %p4901_p6 = por %p329_p4, %p328_p3 }
   0xe   : > { %6531 = sst [smem:[#allocation10_spill]] %s4895_s17  ;;  %p3602_p7 = scmp.ge.s32.totalorder %s4783_s28, 1 }
   0xf   : > { %p336_p8 = scmp.lt.s32.totalorder %s4783_s28, 3  ;;  %p4573_p9 = scmp.eq.s32.totalorder %s4880_s29, 0 }
  0x10   : > { %s6534_s11 = sld [smem:[#allocation21_spill]]  ;;  %s4785_s23 = smov [#allocation2]  }
  0x11   : > { %p337_p10 = pnand %p3602_p7, %p336_p8  ;;  %s379_s24 = sshll.u32 %s4785_s23, 4  ;;  %s380_s24 = int_to_ptr.vmem [resolvable:$true] %s379_s24 }
  0x12   : > { %s4786_s30 = smov 64   ;;  %s4787_s15 = smov 4  }
  0x13   : > { %p4565_p11 = pneg %p337_p10  ;;  %408 = sbr.rel (%p337_p10) target bundleno = 1724 (0x6bc), region = 72 }
  0x15   : > { %p4566_p12 = pnand %p4573_p9, %p4565_p11 }
  0x16   : > { %s377_s22 = sshll.u32 %s6534_s11, 4  ;;  %s378_s22 = int_to_ptr.hbm [resolvable:$true] %s377_s22 }
  0x17   : > { %4568 = dma.hbm_to_vmem [thread:$0]  (!%p4566_p12), %s378_s22, 704, %s380_s24, [#allocation3], %s4786_s30, %s4786_s30, %s4787_s15  }
  0x18   : > { %4762 = dma.done.wait (%p4573_p9), [#allocation3], 704  }
  0x19   : > { %4764 = vsyncadd (%p4573_p9), [#allocation3], 4294966592  ;;  %s4918_s16 = sshll.u32 %s4880_s29, 2  ;;  %vm697_vm0 = vcmask 1045504   ;;  %v3653_v0 = vld [vmem:[%s6504_s1 + $0x10] sm:$0xf] }
  0x1a   : > { %p455_p13 = scmp.lt.s32.totalorder %s4918_s16, 7  ;;  %v4417_v1 = vld [vmem:[%s6504_s1 + $0x14] sm:$0x30]  ;;  %v4416_v2 = vld [vmem:[%s6504_s1 + $0x14] sm:$0xf]  ;;  %vm678_vm1 = vcmask 228352  }
  0x1b   : > { %v3654_v3 = vor.u32 %v4417_v1, %v3653_v0  ;;  %v3655_v4 = vld [vmem:[%s6504_s1 + $0x18] sm:$0x30]  ;;  %v3645_v5 = vld [vmem:[%s6504_s1] sm:$0xf]  ;;  %v4415_v6 = vld [vmem:[%s6504_s1 + $0x4] sm:$0xf0] }
  0x1c   : > { %s456_s20 = scalar_select %p455_p13, %s4918_s16, 7  ;;  %v3658_v7 = vor.u32 %v4416_v2, %v3655_v4  ;;  %v4414_v8 = vld [vmem:[%s6504_s1 + $0x4] sm:$0xf]  ;;  %v3647_v9 = vld [vmem:[%s6504_s1 + $0x8] sm:$0xf0]  ;;  %v3646_v16 = vor.u32 %v4415_v6, %v3645_v5  ;;  %v6535_v54 = vmov 0 }
  0x1d   : > { %v3625_v10 = vld [vmem:[%s6504_s1 + $0x30] sm:$0xf]  ;;  %vm498_vm2 = vsmask.f32 3328  ;;  %v849_v11 = vsel %vm697_vm0, %v3654_v3, 0  ;;  %v3650_v22 = vor.u32 %v4414_v8, %v3647_v9  ;;  %vm936_vm8 = vcmask 1042432  }
  0x1e   : > { %s4413_s21 = sshll.u32 %s456_s20, 5  ;;  %v4421_v12 = vld [vmem:[%s6504_s1 + $0x34] sm:$0x30]  ;;  %v4420_v13 = vld [vmem:[%s6504_s1 + $0x34] sm:$0xf]  ;;  %860 = vmatpush.bf16.msra.mxu2 %v849_v11  ;;  %v852_v15 = vsel %vm697_vm0, %v3658_v7, 0 }
  0x1f   : > { %s4934_s27 = scalar_lea.vmem %s6503_s0, %s4413_s21  ;;  %v3626_v17 = vor.u32 %v4421_v12, %v3625_v10  ;;  %v3627_v18 = vld [vmem:[%s6504_s1 + $0x38] sm:$0x30]  ;;  %v3617_v21 = vld [vmem:[%s6504_s1 + $0x20] sm:$0xf]  ;;  %899 = vmatpush.bf16.msra.mxu3 %v852_v15  ;;  %v4419_v25 = vld [vmem:[%s6504_s1 + $0x24] sm:$0xf0] }
  0x20   : > { %v462_v14 = vld [vmem:[%s4934_s27] sm:$0xff]  ;;  %v463_v19 = vld [vmem:[%s4934_s27 + $0x8] sm:$0xff]  ;;  %v3630_v23 = vor.u32 %v4420_v13, %v3627_v18  ;;  %v3618_v30 = vor.u32 %v4419_v25, %v3617_v21  ;;  %v464_v31 = vld [vmem:[%s4934_s27 + $0x10] sm:$0xff]  ;;  %vm499_vm3 = vsmask.f32 7440  ;;  %vm937_vm9 = vcmask 1046532  }
  0x21   : > { %v4967_v20 = vpack.c.bf16 %v462_v14, %v462_v14  ;;  %v4972_v24 = vpack.c.bf16 %v463_v19, %v463_v19  ;;  %v4418_v26 = vld [vmem:[%s6504_s1 + $0x24] sm:$0xf]  ;;  %v3619_v27 = vld [vmem:[%s6504_s1 + $0x28] sm:$0xf0]  ;;  %v699_v28 = vsel %vm697_vm0, %v3626_v17, 0  ;;  %v4989_v35 = vpack.c.bf16 %v464_v31, %v464_v31  ;;  %vm5015_vm4 = vmor %vm498_vm2, %vm499_vm3  ;;  %s451_s11 = sand.u32 1, %s4775_s26  }
  0x22   : > { %v466_v32 = vld [vmem:[%s4934_s27 + $0x20] sm:$0xff]  ;;  %710 = vmatpush.bf16.msra.mxu0 %v699_v28  ;;  %v702_v33 = vsel %vm697_vm0, %v3630_v23, 0  ;;  %861 = vmatpush.bf16.msra.mxu2 %v3646_v16  ;;  %v3622_v37 = vor.u32 %v4418_v26, %v3619_v27  ;;  %v465_v48 = vld [vmem:[%s4934_s27 + $0x18] sm:$0xf]  ;;  %v467_v49 = vld [vmem:[%s4934_s27 + $0x28] sm:$0xff]  ;;  %v6536_v54 = vsel %vm5015_vm4, 4294967295, %v6535_v54 }
  0x23   : > { %v794_v29 = vunpack.c.l.b16 %v4967_v20  ;;  %v795_v34 = vunpack.c.l.b16 %v4972_v24  ;;  %v502_v36 = vshrl.u32 %v4967_v20, 16  ;;  %749 = vmatpush.bf16.msra.mxu1 %v702_v33  ;;  %v505_v38 = vshll.u32 %v4967_v20, 16  ;;  %900 = vmatpush.bf16.msra.mxu3 %v3650_v22  ;;  %6537 = vst [vmem:[#allocation11_spill] sm:$0xff] %v6536_v54  ;;  %v468_v11 = vld [vmem:[%s4934_s27 + $0x30] sm:$0xff]  ;;  %v469_v18 = vld [vmem:[%s4934_s27 + $0x38] sm:$0xf]  ;;  %vm5266_vm10 = vmor %vm936_vm8, %vm937_vm9 }
  0x24   : > { %v511_v39 = vshll.u32 %v4972_v24, 16  ;;  %v515_v40 = vshrl.u32 %v4972_v24, 16  ;;  %v521_v43 = vshll.u32 %v4989_v35, 16  ;;  %v4998_v44 = vpack.c.bf16 %v466_v32, %v466_v32  ;;  %s3607_s23 = sshll.u32 %s451_s11, 2  ;;  %s3515_s15 = scalar_lea.sflag [#allocation4], %s451_s11 }
  0x25   : > { %v806_v41 = vpack.c.b16 %v795_v34, %v794_v29  ;;  %v504_v42 = vrot.slane %v502_v36, 4  ;;  %v507_v45 = vrot.slane %v505_v38, 5  ;;  %v525_v53 = vshrl.u32 %v4989_v35, 16  ;;  %s453_s17 = scalar_lea.vmem [#allocation5], %s3607_s23  ;;  %s4737_s23 = scalar_lea.hbm %s6516_s13, 8 }
  0x26   : > { %v513_v46 = vrot.slane %v511_v39, 5  ;;  %v517_v47 = vrot.slane %v515_v40, 4  ;;  %711 = vmatpush.bf16.msra.mxu0 %v3618_v30  ;;  %v523_v52 = vrot.slane %v521_v43, 5  ;;  %v5019_v55 = vpack.c.bf16 %v465_v48, %v465_v48  ;;  %s3527_s21 = sshll.u32 %s453_s17, 4  ;;  %s3528_s21 = int_to_ptr.vmem [resolvable:$true] %s3527_s21 }
  0x27   : > { %3659 = vmatmul.msk.bf16.vlgmr.msra.gmra.mxu2 %vm678_vm1, %v806_v41  ;;  %3665 = vmatmul.msk.bf16.vlgmr.msra.gmra.mxu3 %vm678_vm1, %v806_v41  ;;  %v508_v50 = vor.u32 %v507_v45, %v504_v42  ;;  %v536_v56 = vshrl.u32 %v4998_v44, 16  ;;  %v539_v57 = vshll.u32 %v4998_v44, 16  ;;  %v5023_v60 = vpack.c.bf16 %v467_v49, %v467_v49  ;;  %v470_v41 = vld [vmem:[%s4934_s27 + $0x40] sm:$0xff]  ;;  %v3689_v49 = vld [vmem:[%s6504_s1 + $0x50] sm:$0xf] }
  0x28   : > { %750 = vmatpush.bf16.msra.mxu1 %v3622_v37  ;;  %v518_v51 = vor.u32 %v517_v47, %v513_v46  ;;  %v527_v61 = vrot.slane %v525_v53, 4  ;;  %v531_v4 = vshll.u32 %v5019_v55, 16  ;;  %v796_v9 = vunpack.c.l.b16 %v4989_v35 }
  0x29   : > { %v509_v58 = vrot.slane %v508_v50, 4  ;;  %v538_v62 = vrot.slane %v536_v56, 4  ;;  %v541_v63 = vrot.slane %v539_v57, 5  ;;  %v545_v7 = vshll.u32 %v5023_v60, 16  ;;  %v4425_v50 = vld [vmem:[%s6504_s1 + $0x54] sm:$0x30] }
  0x2a   : > { %v519_v59 = vrot.slane %v518_v51, 4  ;;  %v528_v5 = vor.u32 %v527_v61, %v523_v52  ;;  %v797_v10 = vunpack.c.l.b16 %v4998_v44  ;;  %v533_v12 = vrot.slane %v531_v4, 5  ;;  %v4424_v51 = vld [vmem:[%s6504_s1 + $0x54] sm:$0xf] }
  0x2b   : > { %v514_v0 = vsel %vm5015_vm4, %v509_v58, %v513_v46  ;;  %v542_v6 = vor.u32 %v541_v63, %v538_v62  ;;  %v547_v15 = vrot.slane %v545_v7, 5  ;;  %v5046_v16 = vpack.c.bf16 %v468_v11, %v468_v11  ;;  %v471_v46 = vld [vmem:[%s4934_s27 + $0x48] sm:$0xff]  ;;  %v3691_v62 = vld [vmem:[%s6504_s1 + $0x58] sm:$0x30] }
  0x2c   : > { %v524_v1 = vsel %vm5015_vm4, %v519_v59, %v523_v52  ;;  %v642_v2 = vunpack.c.l.b16 %v514_v0  ;;  %v529_v13 = vrot.slane %v528_v5, 4  ;;  %v807_v17 = vpack.c.b16 %v797_v10, %v796_v9  ;;  %v472_v9 = vld [vmem:[%s4934_s27 + $0x50] sm:$0xff] }
  0x2d   : > { %v643_v3 = vunpack.c.l.b16 %v524_v1  ;;  %v543_v14 = vrot.slane %v542_v6, 4  ;;  %v549_v19 = vshrl.u32 %v5023_v60, 16  ;;  %v555_v23 = vshll.u32 %v5046_v16, 16 }
  0x2e   : > { %v534_v21 = vsel %vm5015_vm4, %v529_v13, %v533_v12  ;;  %v559_v25 = vshrl.u32 %v5046_v16, 16  ;;  %v5058_v26 = vpack.c.bf16 %v469_v18, %v469_v18  ;;  %v798_v42 = vunpack.c.l.b16 %v5023_v60 }
  0x2f   : > { %v654_v8 = vpack.c.b16 %v643_v3, %v642_v2  ;;  %v548_v22 = vsel %vm5015_vm4, %v543_v14, %v547_v15  ;;  %v644_v27 = vunpack.c.l.b16 %v534_v21  ;;  %v551_v29 = vrot.slane %v549_v19, 4 }
  0x30   : > { %v645_v28 = vunpack.c.l.b16 %v548_v22  ;;  %v557_v30 = vrot.slane %v555_v23, 5  ;;  %v561_v31 = vrot.slane %v559_v25, 4  ;;  %v565_v32 = vshll.u32 %v5058_v26, 16  ;;  %v474_v22 = vld [vmem:[%s4934_s27 + $0x60] sm:$0xff] }
  0x31   : > { %3631 = vmatmul.msk.bf16.vlgmr.msra.gmra.mxu0 %vm678_vm1, %v654_v8  ;;  %3637 = vmatmul.msk.bf16.vlgmr.msra.gmra.mxu1 %vm678_vm1, %v654_v8  ;;  %v552_v34 = vor.u32 %v551_v29, %v547_v15  ;;  %v799_v45 = vunpack.c.l.b16 %v5046_v16  ;;  %v5075_v48 = vpack.c.bf16 %v470_v41, %v470_v41  ;;  %v5086_v59 = vpack.c.bf16 %v471_v46, %v471_v46  ;;  %v473_v46 = vld [vmem:[%s4934_s27 + $0x58] sm:$0xf] }
  0x32   : > { %v655_v33 = vpack.c.b16 %v645_v28, %v644_v27  ;;  %v562_v37 = vor.u32 %v561_v31, %v557_v30  ;;  %v567_v47 = vrot.slane %v565_v32, 5  ;;  %v3690_v61 = vor.u32 %v4425_v50, %v3689_v49 }
  0x33   : > { %v553_v52 = vrot.slane %v552_v34, 4  ;;  %v808_v63 = vpack.c.b16 %v799_v45, %v798_v42  ;;  %v3694_v0 = vor.u32 %v4424_v51, %v3691_v62  ;;  %v570_v2 = vshrl.u32 %v5075_v48, 16  ;;  %v475_v51 = vld [vmem:[%s4934_s27 + $0x68] sm:$0xff] }
  0x34   : > { %v563_v58 = vrot.slane %v562_v37, 4  ;;  %v1039_v1 = vsel %vm697_vm0, %v3690_v61, 0  ;;  %v573_v3 = vshll.u32 %v5075_v48, 16  ;;  %v579_v10 = vshll.u32 %v5086_v59, 16 }
  0x35   : > { %1050 = vmatpush.bf16.msrb.mxu0 %v1039_v1  ;;  %v1042_v5 = vsel %vm697_vm0, %v3694_v0, 0  ;;  %v558_v6 = vsel %vm5015_vm4, %v553_v52, %v557_v30  ;;  %v583_v11 = vshrl.u32 %v5086_v59, 16  ;;  %v5104_v14 = vpack.c.bf16 %v472_v9, %v472_v9 }
  0x36   : > { %v568_v8 = vsel %vm5015_vm4, %v563_v58, %v567_v47  ;;  %1089 = vmatpush.bf16.msrb.mxu1 %v1042_v5  ;;  %v646_v12 = vunpack.c.l.b16 %v558_v6  ;;  %v572_v15 = vrot.slane %v570_v2, 4  ;;  %v581_v18 = vrot.slane %v579_v10, 5 }
  0x37   : > { %3660 = vmatmul.msk.bf16.gmra.mxu2 %vm678_vm1, %v807_v17  ;;  %3666 = vmatmul.msk.bf16.gmra.mxu3 %vm678_vm1, %v807_v17  ;;  %v647_v13 = vunpack.c.l.b16 %v568_v8  ;;  %v575_v17 = vrot.slane %v573_v3, 5  ;;  %v585_v21 = vrot.slane %v583_v11, 4  ;;  %v589_v30 = vshll.u32 %v5104_v14, 16 }
  0x38   : > { %v800_v31 = vunpack.c.l.b16 %v5075_v48  ;;  %v5118_v34 = vpack.c.bf16 %v474_v22, %v474_v22  ;;  %v593_v47 = vshrl.u32 %v5104_v14, 16  ;;  %v5133_v61 = vpack.c.bf16 %v473_v46, %v473_v46  ;;  %v3723_v46 = vld [vmem:[%s6504_s1 + $0x78] sm:$0x30] }
  0x39   : > { %v656_v27 = vpack.c.b16 %v647_v13, %v646_v12  ;;  %v576_v28 = vor.u32 %v575_v17, %v572_v15  ;;  %v586_v29 = vor.u32 %v585_v21, %v581_v18  ;;  %v591_v42 = vrot.slane %v589_v30, 5 }
  0x3a   : > { %v604_v49 = vshrl.u32 %v5118_v34, 16  ;;  %v607_v50 = vshll.u32 %v5118_v34, 16  ;;  %v5136_v62 = vpack.c.bf16 %v475_v51, %v475_v51  ;;  %v599_v9 = vshll.u32 %v5133_v61, 16  ;;  %v3713_v51 = vld [vmem:[%s6504_s1 + $0x60] sm:$0xf] }
  0x3b   : > { %v577_v37 = vrot.slane %v576_v28, 4  ;;  %v587_v41 = vrot.slane %v586_v29, 4  ;;  %v802_v17 = vunpack.c.l.b16 %v5104_v14  ;;  %v476_v29 = vld [vmem:[%s4934_s27 + $0x70] sm:$0xff]  ;;  %vm1146_vm5 = vsmask.f32 2304 }
  0x3c   : > { %v606_v0 = vrot.slane %v604_v49, 4  ;;  %v609_v1 = vrot.slane %v607_v50, 5  ;;  %v613_v13 = vshll.u32 %v5136_v62, 16  ;;  %v601_v22 = vrot.slane %v599_v9, 5 }
  0x3d   : > { %v582_v52 = vsel %vm5015_vm4, %v577_v37, %v581_v18  ;;  %v592_v58 = vsel %vm5015_vm4, %v587_v41, %v591_v42  ;;  %v803_v18 = vunpack.c.l.b16 %v5118_v34  ;;  %v3721_v37 = vld [vmem:[%s6504_s1 + $0x70] sm:$0xf]  ;;  %v4429_v41 = vld [vmem:[%s6504_s1 + $0x74] sm:$0x30]  ;;  %vm1147_vm6 = vsmask.f32 6416 }
  0x3e   : > { %v648_v5 = vunpack.c.l.b16 %v582_v52  ;;  %v649_v6 = vunpack.c.l.b16 %v592_v58  ;;  %v610_v12 = vor.u32 %v609_v1, %v606_v0  ;;  %v5153_v28 = vrot.slane %v613_v13, 5  ;;  %v4427_v52 = vld [vmem:[%s6504_s1 + $0x64] sm:$0xf0]  ;;  %vm5209_vm7 = vmor %vm1146_vm5, %vm1147_vm6 }
  0x3f   : > { %v3714_v1 = vor.u32 %v4427_v52, %v3713_v51  ;;  %v4423_v51 = vld [vmem:[%s6504_s1 + $0x44] sm:$0xf0]  ;;  %v4422_v52 = vld [vmem:[%s6504_s1 + $0x44] sm:$0xf]  ;;  %vm1396_vm11 = vcmask 1041408   ;;  %vm1397_vm12 = vcmask 1045508  }
  0x40   : > { %v657_v15 = vpack.c.b16 %v649_v6, %v648_v5  ;;  %v4426_v5 = vld [vmem:[%s6504_s1 + $0x64] sm:$0xf]  ;;  %v3715_v6 = vld [vmem:[%s6504_s1 + $0x68] sm:$0xf0]  ;;  %vm5469_vm13 = vmor %vm1396_vm11, %vm1397_vm12  ;;  %vm1756_vm14 = vcmask 1046528   ;;  %vm1834_vm15 = vcmask 1043456  }
  0x41   : > { %3632 = vmatmul.msk.bf16.gmra.mxu0 %vm678_vm1, %v655_v33  ;;  %3638 = vmatmul.msk.bf16.gmra.mxu1 %vm678_vm1, %v655_v33  ;;  %v801_v33 = vunpack.c.l.b16 %v5086_v59  ;;  %vm3007_vm2 = vcmask 1041409   ;;  %vm3010_vm3 = vcmask 1042434   ;;  %vm3395_vm5 = vcmask 982016  }
  0x42   : > { %vm3468_vm6 = vcmask 687104  }
  0x43   : > { %v809_v45 = vpack.c.b16 %v801_v33, %v800_v31  ;;  %v1154_v31 = vrot.slane %v511_v39, 6  ;;  %v1159_v33 = vrot.slane %v521_v43, 6  ;;  %v810_v39 = vpack.c.b16 %v803_v18, %v802_v17 }
  0x44   : > { %v3722_v43 = vor.u32 %v4429_v41, %v3721_v37  ;;  %v1150_v17 = vrot.slane %v505_v38, 6  ;;  %v1153_v18 = vrot.slane %v515_v40, 5  ;;  %v6538_v38 = vmov 0 }
  0x45   : > { %v6539_v38 = vsel %vm5209_vm7, 4294967295, %v6538_v38 }
  0x46   : > { %6540 = vst [vmem:[#allocation12_spill] sm:$0xff] %v6539_v38  ;;  %v1155_v41 = vor.u32 %v1154_v31, %v1153_v18 }
  0x47   : > { %3661 = vmatmul.msk.bf16.gmra.mxu2 %vm678_vm1, %v808_v63  ;;  %3667 = vmatmul.msk.bf16.gmra.mxu3 %vm678_vm1, %v808_v63  ;;  %v595_v63 = vrot.slane %v593_v47, 4 }
  0x49   : > { %v596_v8 = vor.u32 %v595_v63, %v591_v42  ;;  %v4428_v42 = vld [vmem:[%s6504_s1 + $0x74] sm:$0xf] }
  0x4a   : > { %v3726_v0 = vor.u32 %v4428_v42, %v3723_v46  ;;  %v3681_v46 = vld [vmem:[%s6504_s1 + $0x40] sm:$0xf] }
  0x4b   : > { %v597_v21 = vrot.slane %v596_v8, 4  ;;  %v1289_v8 = vsel %vm697_vm0, %v3722_v43, 0 }
  0x4c   : > { %1300 = vmatpush.bf16.msrb.mxu2 %v1289_v8 }
  0x4d   : > { %v602_v58 = vsel %vm5015_vm4, %v597_v21, %v601_v22  ;;  %v1158_v21 = vrot.slane %v525_v53, 5  ;;  %v477_v22 = vld [vmem:[%s4934_s27 + $0x78] sm:$0xf]  ;;  %s3525_s27 = scalar_lea.hbm %s6516_s13, %s4918_s16 }
  0x4e   : > { %v650_v53 = vunpack.c.l.b16 %v602_v58  ;;  %v3683_v58 = vld [vmem:[%s6504_s1 + $0x48] sm:$0xf0]  ;;  %s3529_s30 = sshll.u32 %s3525_s27, 4  ;;  %s3530_s30 = int_to_ptr.hbm [resolvable:$true] %s3529_s30 }
  0x4f   : > { %v5213_v42 = vor.u32 %v1159_v33, %v1158_v21  ;;  %v1157_v33 = vrot.slane %v1155_v41, 4  ;;  %v3686_v8 = vor.u32 %v4422_v52, %v3683_v58  ;;  %s4731_s14 = sshra.s32 %s3530_s30, 4  ;;  %s4732_s14 = int_to_ptr.hbm [resolvable:$true] %s4731_s14 }
  0x50   : > { %1301 = vmatpush.bf16.msrb.mxu2 %v3714_v1  ;;  %s4733_s29 = scalar_lea.hbm %s4732_s14, 4  ;;  %p4738_p3 = scmp.lt.s32.totalorder %s4732_s14, %s6516_s13 }
  0x51   : > { %3633 = vmatmul.msk.bf16.gmra.mxu0 %vm678_vm1, %v656_v27  ;;  %3639 = vmatmul.msk.bf16.gmra.mxu1 %vm678_vm1, %v656_v27  ;;  %v611_v27 = vrot.slane %v610_v12, 4  ;;  %v1149_v12 = vrot.slane %v502_v36, 5  ;;  %v3718_v36 = vor.u32 %v4426_v5, %v3715_v6  ;;  %p4734_p0 = scmp.ne.s32.totalorder %s4732_s14, %s4733_s29  ;;  %p4739_p4 = scmp.lt.s32.totalorder %s4737_s23, %s4733_s29 }
  0x52   : > { %1090 = vmatpush.bf16.msrb.mxu1 %v3686_v8  ;;  %v1169_v8 = vrot.slane %v536_v56, 5  ;;  %v1166_v56 = vrot.slane %v531_v4, 6  ;;  %v1162_v4 = vrot.slane %v5213_v42, 4 }
  0x53   : > { %v616_v63 = vsel %vm5015_vm4, %v611_v27, %v5153_v28  ;;  %v617_v27 = vshrl.u32 %v5136_v62, 16  ;;  %v1151_v40 = vor.u32 %v1150_v17, %v1149_v12  ;;  %v1161_v12 = vsel %vm5209_vm7, %v1157_v33, %v5213_v42  ;;  %p4735_p1 = pnand %p4734_p0, %p4897_p5  ;;  %p4740_p7 = por %p4739_p4, %p4738_p3 }
  0x54   : > { %v651_v43 = vunpack.c.l.b16 %v616_v63  ;;  %v1235_v17 = vunpack.c.l.b16 %v1161_v12  ;;  %v1179_v42 = vrot.slane %v555_v23, 6 }
  0x55   : > { %v1152_v31 = vrot.slane %v1151_v40, 4  ;;  %v619_v63 = vrot.slane %v617_v27, 4  ;;  %p4736_p2 = pneg %p4735_p1 }
  0x56   : > { %v658_v18 = vpack.c.b16 %v651_v43, %v650_v53 }
  0x57   : > { %3662 = vmatmul.msk.bf16.gmra.mxu2 %vm678_vm1, %v809_v45  ;;  %3668 = vmatmul.msk.bf16.gmra.mxu3 %vm678_vm1, %v809_v45  ;;  %v5171_v45 = vpack.c.bf16 %v476_v29, %v476_v29  ;;  %v1156_v1 = vsel %vm5209_vm7, %v1152_v31, %v1155_v41  ;;  %v620_v21 = vor.u32 %v619_v63, %v5153_v28  ;;  %v941_v63 = vrot.slane %v4972_v24, 5  ;;  %p4741_p8 = pnand %p4740_p7, %p4736_p2 }
  0x59   : > { %v623_v29 = vshll.u32 %v5171_v45, 16  ;;  %v627_v37 = vshrl.u32 %v5171_v45, 16  ;;  %v621_v41 = vrot.slane %v620_v21, 4  ;;  %v943_v12 = vrot.slane %v941_v63, 4 }
  0x5b   : > { %v625_v5 = vrot.slane %v623_v29, 5  ;;  %v629_v6 = vrot.slane %v627_v37, 4 }
  0x5d   : > { %v626_v28 = vsel %vm5015_vm4, %v621_v41, %v625_v5 }
  0x5e   : > { %v652_v33 = vunpack.c.l.b16 %v626_v28 }
  0x61   : > { %3634 = vmatmul.msk.bf16.gmra.mxu0 %vm678_vm1, %v657_v15  ;;  %3640 = vmatmul.msk.bf16.gmra.mxu1 %vm678_vm1, %v657_v15  ;;  %v1292_v15 = vsel %vm697_vm0, %v3726_v0, 0  ;;  %v5225_v0 = vpack.c.bf16 %v477_v22, %v477_v22  ;;  %v630_v22 = vor.u32 %v629_v6, %v625_v5  ;;  %v1163_v6 = vshrl.u32 %v5019_v55, 16 }
  0x62   : > { %1339 = vmatpush.bf16.msrb.mxu3 %v1292_v15  ;;  %v1234_v15 = vunpack.c.l.b16 %v1156_v1  ;;  %v1170_v5 = vrot.slane %v539_v57, 6  ;;  %v3671_v1 = vrot.slane %v4967_v20, 9  ;;  %v1173_v57 = vrot.slane %v549_v19, 5 }
  0x63   : > { %v633_v40 = vshll.u32 %v5225_v0, 16  ;;  %v631_v52 = vrot.slane %v630_v22, 4  ;;  %v1174_v22 = vrot.slane %v545_v7, 6 }
  0x64   : > { %v1171_v21 = vor.u32 %v1170_v5, %v1169_v8  ;;  %v3672_v8 = vrot.slane %v4998_v44, 9  ;;  %v951_v5 = vrot.slane %v5023_v60, 5 }
  0x65   : > { %v635_v31 = vrot.slane %v633_v40, 5 }
  0x66   : > { %1340 = vmatpush.bf16.msrb.mxu3 %v3718_v36  ;;  %v804_v36 = vunpack.c.l.b16 %v5136_v62 }
  0x67   : > { %3663 = vmatmul.msk.bf16.gmra.mxu2 %vm678_vm1, %v810_v39  ;;  %3669 = vmatmul.msk.bf16.gmra.mxu3 %vm678_vm1, %v810_v39  ;;  %v3682_v39 = vor.u32 %v4423_v51, %v3681_v46  ;;  %v1246_v46 = vpack.c.b16 %v1235_v17, %v1234_v15  ;;  %v805_v51 = vunpack.c.l.b16 %v5171_v45  ;;  %v636_v43 = vsel %vm5015_vm4, %v631_v52, %v635_v31 }
  0x68   : > { %v944_v15 = vrot.slane %v4989_v35, 5  ;;  %v6541_v17 = vmov 0  ;;  %v1172_v52 = vrot.slane %v1171_v21, 4  ;;  %v1175_v31 = vor.u32 %v1174_v22, %v1173_v57 }
  0x69   : > { %1051 = vmatpush.bf16.msrb.mxu0 %v3682_v39  ;;  %v811_v53 = vpack.c.b16 %v805_v51, %v804_v36  ;;  %v653_v39 = vunpack.c.l.b16 %v636_v43  ;;  %v6542_v17 = vsel %vm5266_vm10, 4294967295, %v6541_v17  ;;  %v942_v36 = vsel %vm5266_vm10, %v3671_v1, %v941_v63 }
  0x6a   : > { %6543 = vst [vmem:[#allocation13_spill] sm:$0xff] %v6542_v17  ;;  %v945_v51 = vsel %vm5266_vm10, %v943_v12, %v944_v15  ;;  %v1176_v28 = vsel %vm5209_vm7, %v1172_v52, %v1175_v31  ;;  %v946_v63 = vrot.slane %v944_v15, 4  ;;  %v1177_v15 = vrot.slane %v1175_v31, 4 }
  0x6b   : > { %v659_v58 = vpack.c.b16 %v653_v39, %v652_v33  ;;  %v985_v19 = vunpack.c.l.b16 %v945_v51  ;;  %v1237_v39 = vunpack.c.l.b16 %v1176_v28  ;;  %v1189_v52 = vrot.slane %v570_v2, 5 }
  0x6c   : > { %v1194_v28 = vrot.slane %v579_v10, 6 }
  0x71   : > { %3635 = vmatmul.msk.bf16.gmra.mxu0 %vm678_vm1, %v658_v18  ;;  %3641 = vmatmul.msk.bf16.gmra.mxu1 %vm678_vm1, %v658_v18  ;;  %v1165_v18 = vrot.slane %v1163_v6, 5  ;;  %v947_v6 = vrot.slane %v5019_v55, 5 }
  0x73   : > { %v1167_v41 = vor.u32 %v1166_v56, %v1165_v18  ;;  %v948_v23 = vsel %vm5266_vm10, %v946_v63, %v947_v6  ;;  %v952_v18 = vsel %vm5266_vm10, %v3672_v8, %v951_v5  ;;  %v3757_v6 = vld [vmem:[%s6504_s1 + $0x90] sm:$0xf] }
  0x74   : > { %v986_v22 = vunpack.c.l.b16 %v948_v23 }
  0x75   : > { %v1168_v7 = vsel %vm5209_vm7, %v1162_v4, %v1167_v41  ;;  %v954_v41 = vrot.slane %v5046_v16, 5 }
  0x76   : > { %v1236_v33 = vunpack.c.l.b16 %v1168_v7  ;;  %v1193_v7 = vrot.slane %v583_v11, 5  ;;  %v1199_v11 = vrot.slane %v589_v30, 6  ;;  %v4432_v30 = vld [vmem:[%s6504_s1 + $0x94] sm:$0xf] }
  0x77   : > { %3664 = vmatmul.msk.bf16.gmra.mxu2 %vm678_vm1, %v811_v53  ;;  %3670 = vmatmul.msk.bf16.gmra.mxu3 %vm678_vm1, %v811_v53  ;;  %v984_v53 = vunpack.c.l.b16 %v942_v36  ;;  %v987_v36 = vunpack.c.l.b16 %v952_v18 }
  0x78   : > { %v1247_v1 = vpack.c.b16 %v1237_v39, %v1236_v33  ;;  %v956_v33 = vrot.slane %v954_v41, 4  ;;  %v957_v39 = vrot.slane %v5058_v26, 5 }
  0x79   : > { %v996_v43 = vpack.c.b16 %v985_v19, %v984_v53  ;;  %v997_v4 = vpack.c.b16 %v987_v36, %v986_v22  ;;  %v1190_v53 = vrot.slane %v573_v3, 6  ;;  %v1198_v3 = vrot.slane %v593_v47, 5  ;;  %v4433_v47 = vld [vmem:[%s6504_s1 + $0x94] sm:$0x30] }
  0x7b   : > { %v1191_v2 = vor.u32 %v1190_v53, %v1189_v52  ;;  %v961_v52 = vrot.slane %v5086_v59, 5 }
  0x7d   : > { %v1192_v63 = vrot.slane %v1191_v2, 4  ;;  %v963_v2 = vrot.slane %v961_v52, 4 }
  0x81   : > { %3636 = vmatmul.msk.bf16.gmra.mxu0 %vm678_vm1, %v659_v58  ;;  %3642 = vmatmul.msk.bf16.gmra.mxu1 %vm678_vm1, %v659_v58  ;;  %v1178_v58 = vrot.slane %v559_v25, 5  ;;  %v1186_v25 = vrot.slane %v565_v32, 6 }
  0x83   : > { %v1180_v12 = vor.u32 %v1179_v42, %v1178_v58  ;;  %v1195_v42 = vor.u32 %v1194_v28, %v1193_v7  ;;  %v1203_v7 = vshrl.u32 %v5133_v61, 16  ;;  %v1209_v28 = vrot.slane %v604_v49, 5 }
  0x84   : > { %v1206_v49 = vrot.slane %v599_v9, 6 }
  0x85   : > { %v1182_v21 = vrot.slane %v1180_v12, 4  ;;  %v1181_v51 = vsel %vm5209_vm7, %v1177_v15, %v1180_v12  ;;  %v1197_v8 = vrot.slane %v1195_v42, 4  ;;  %v3759_v12 = vld [vmem:[%s6504_s1 + $0x98] sm:$0x30] }
  0x86   : > { %v1238_v31 = vunpack.c.l.b16 %v1181_v51  ;;  %v3762_v23 = vor.u32 %v4432_v30, %v3759_v12 }
  0x87   : > { %3727 = vmatmul.msk.bf16.vlgmr.msrb.gmra.mxu2 %vm678_vm1, %v1246_v46  ;;  %3733 = vmatmul.msk.bf16.vlgmr.msrb.gmra.mxu3 %vm678_vm1, %v1246_v46  ;;  %v1183_v46 = vshrl.u32 %v5058_v26, 16 }
  0x88   : > { %v1502_v22 = vsel %vm697_vm0, %v3762_v23, 0 }
  0x89   : > { %v1185_v56 = vrot.slane %v1183_v46, 5  ;;  %v958_v46 = vsel %vm5266_vm10, %v956_v33, %v957_v39  ;;  %1549 = vmatpush.bf16.msra.mxu1 %v1502_v22  ;;  %v3673_v39 = vrot.slane %v5075_v48, 9 }
  0x8b   : > { %v1187_v57 = vor.u32 %v1186_v25, %v1185_v56  ;;  %v989_v25 = vunpack.c.l.b16 %v958_v46  ;;  %v1214_v46 = vrot.slane %v613_v13, 6 }
  0x8d   : > { %v1188_v32 = vsel %vm5209_vm7, %v1182_v21, %v1187_v57  ;;  %v1196_v57 = vsel %vm5209_vm7, %v1192_v63, %v1195_v42 }
  0x8e   : > { %v1239_v19 = vunpack.c.l.b16 %v1188_v32 }
  0x90   : > { %v1248_v58 = vpack.c.b16 %v1239_v19, %v1238_v31 }
  0x91   : > { %3695 = vmatmul.msk.bf16.vlgmr.msrb.gmra.mxu0 %vm678_vm1, %v996_v43  ;;  %3701 = vmatmul.msk.bf16.vlgmr.msrb.gmra.mxu1 %vm678_vm1, %v996_v43  ;;  %v953_v43 = vrot.slane %v951_v5, 4  ;;  %v1200_v5 = vor.u32 %v1199_v11, %v1198_v3  ;;  %v1205_v11 = vrot.slane %v1203_v7, 5  ;;  %v967_v7 = vrot.slane %v5133_v61, 5 }
  0x93   : > { %v955_v10 = vsel %vm5266_vm10, %v953_v43, %v954_v41  ;;  %v1201_v36 = vsel %vm5209_vm7, %v1197_v8, %v1200_v5  ;;  %v1240_v41 = vunpack.c.l.b16 %v1196_v57  ;;  %v1210_v43 = vrot.slane %v607_v50, 6 }
  0x94   : > { %v988_v56 = vunpack.c.l.b16 %v955_v10  ;;  %v1241_v19 = vunpack.c.l.b16 %v1201_v36  ;;  %v1213_v50 = vrot.slane %v617_v27, 5  ;;  %v1202_v9 = vrot.slane %v1200_v5, 4 }
  0x95   : > { %v1211_v10 = vor.u32 %v1210_v43, %v1209_v28  ;;  %v1207_v8 = vor.u32 %v1206_v49, %v1205_v11  ;;  %v3674_v28 = vrot.slane %v5118_v34, 9  ;;  %v971_v43 = vrot.slane %v5136_v62, 5 }
  0x96   : > { %v998_v51 = vpack.c.b16 %v989_v25, %v988_v56  ;;  %v1249_v3 = vpack.c.b16 %v1241_v19, %v1240_v41  ;;  %v1223_v41 = vshrl.u32 %v5225_v0, 16 }
  0x97   : > { %3728 = vmatmul.msk.bf16.gmra.mxu2 %vm678_vm1, %v1247_v1  ;;  %3734 = vmatmul.msk.bf16.gmra.mxu3 %vm678_vm1, %v1247_v1  ;;  %v3758_v1 = vor.u32 %v4433_v47, %v3757_v6  ;;  %v962_v47 = vsel %vm5266_vm10, %v3673_v39, %v961_v52  ;;  %v1212_v27 = vrot.slane %v1211_v10, 4  ;;  %v1208_v23 = vsel %vm5209_vm7, %v1202_v9, %v1207_v8 }
  0x98   : > { %v990_v12 = vunpack.c.l.b16 %v962_v47  ;;  %v1242_v5 = vunpack.c.l.b16 %v1208_v23  ;;  %v972_v10 = vsel %vm5266_vm10, %v3674_v28, %v971_v43  ;;  %v3751_v23 = vld [vmem:[%s6504_s1 + $0x88] sm:$0xf0] }
  0x99   : > { %v1499_v15 = vsel %vm697_vm0, %v3758_v1, 0  ;;  %v1215_v1 = vor.u32 %v1214_v46, %v1213_v50  ;;  %v993_v9 = vunpack.c.l.b16 %v972_v10  ;;  %vm1829_vm0 = vcmask 187392  }
  0x9a   : > { %1510 = vmatpush.bf16.msra.mxu0 %v1499_v15 }
  0x9b   : > { %v1217_v50 = vrot.slane %v1215_v1, 4 }
  0xa1   : > { %3696 = vmatmul.msk.bf16.gmra.mxu0 %vm678_vm1, %v997_v4  ;;  %3702 = vmatmul.msk.bf16.gmra.mxu1 %vm678_vm1, %v997_v4 }
  0xa7   : > { %3729 = vmatmul.msk.bf16.gmra.mxu2 %vm678_vm1, %v1248_v58  ;;  %3735 = vmatmul.msk.bf16.gmra.mxu3 %vm678_vm1, %v1248_v58  ;;  %v964_v58 = vrot.slane %v5104_v14, 5 }
  0xa9   : > { %v965_v30 = vsel %vm5266_vm10, %v963_v2, %v964_v58  ;;  %v966_v19 = vrot.slane %v964_v58, 4 }
  0xaa   : > { %v863_v18 = vpop.f32.mrf.mxu2  ;;  %v902_v21 = vpop.f32.mrf.mxu3  ;;  %v991_v13 = vunpack.c.l.b16 %v965_v30 }
  0xab   : > { %v968_v58 = vsel %vm5266_vm10, %v966_v19, %v967_v7  ;;  %v973_v7 = vrot.slane %v971_v43, 4 }
  0xac   : > { %v999_v15 = vpack.c.b16 %v991_v13, %v990_v12  ;;  %v992_v30 = vunpack.c.l.b16 %v968_v58  ;;  %v4431_v12 = vld [vmem:[%s6504_s1 + $0x84] sm:$0xf0]  ;;  %v4430_v13 = vld [vmem:[%s6504_s1 + $0x84] sm:$0xf] }
  0xae   : > { %v713_v32 = vpop.f32.mrf.mxu0  ;;  %v752_v4 = vpop.f32.mrf.mxu1 }
  0xaf   : > { %v5350_v53 = vadd.f32 %v863_v18, %v713_v32  ;;  %v5352_v31 = vadd.f32 %v902_v21, %v752_v4  ;;  %v1216_v18 = vsel %vm5209_vm7, %v1212_v27, %v1215_v1  ;;  %v1218_v32 = vrot.slane %v627_v37, 5  ;;  %v3749_v27 = vld [vmem:[%s6504_s1 + $0x80] sm:$0xf] }
  0xb0   : > { %v1219_v4 = vrot.slane %v623_v29, 6  ;;  %v1225_v29 = vrot.slane %v1223_v41, 5 }
  0xb1   : > { %3697 = vmatmul.msk.bf16.gmra.mxu0 %vm678_vm1, %v998_v51  ;;  %3703 = vmatmul.msk.bf16.gmra.mxu1 %vm678_vm1, %v998_v51  ;;  %v1243_v51 = vunpack.c.l.b16 %v1216_v18  ;;  %v1000_v18 = vpack.c.b16 %v993_v9, %v992_v30 }
  0xb2   : > { %v5361_v33 = vpop.f32.mrf.mxu2  ;;  %v5365_v42 = vpop.f32.mrf.mxu3  ;;  %v1220_v2 = vor.u32 %v1219_v4, %v1218_v32 }
  0xb3   : > { %v1250_v37 = vpack.c.b16 %v1243_v51, %v1242_v5  ;;  %v974_v5 = vrot.slane %v5171_v45, 5 }
  0xb4   : > { %v1222_v46 = vrot.slane %v1220_v2, 4  ;;  %v1221_v1 = vsel %vm5209_vm7, %v1217_v50, %v1220_v2 }
  0xb5   : > { %v1244_v4 = vunpack.c.l.b16 %v1221_v1  ;;  %v976_v28 = vrot.slane %v974_v5, 4  ;;  %v975_v10 = vsel %vm5266_vm10, %v973_v7, %v974_v5 }
  0xb6   : > { %v5373_v63 = vpop.f32.mrf.mxu0  ;;  %v5375_v6 = vpop.f32.mrf.mxu1  ;;  %v994_v43 = vunpack.c.l.b16 %v975_v10 }
  0xb7   : > { %3730 = vmatmul.msk.bf16.gmra.mxu2 %vm678_vm1, %v1249_v3  ;;  %3736 = vmatmul.msk.bf16.gmra.mxu3 %vm678_vm1, %v1249_v3  ;;  %v1226_v3 = vrot.slane %v633_v40, 6  ;;  %v905_v17 = vadd.f32 %v5365_v42, %v5375_v6 }
  0xb9   : > { %v1227_v47 = vor.u32 %v1226_v3, %v1225_v29 }
  0xba   : > { %v868_v56 = vpop.f32.mrf.mxu2  ;;  %v907_v25 = vpop.f32.mrf.mxu3 }
  0xbe   : > { %v718_v21 = vpop.f32.mrf.mxu0  ;;  %v757_v57 = vpop.f32.mrf.mxu1 }
  0xbf   : > { %v5387_v22 = vadd.f32 %v868_v56, %v718_v21  ;;  %v5389_v36 = vadd.f32 %v907_v25, %v757_v57  ;;  %v1228_v56 = vsel %vm5209_vm7, %v1222_v46, %v1227_v47  ;;  %v3750_v25 = vor.u32 %v4431_v12, %v3749_v27 }
  0xc0   : > { %v1245_v41 = vunpack.c.l.b16 %v1228_v56  ;;  %v1401_v27 = vrot.slane %v4972_v24, 6  ;;  %v3739_v56 = vrot.slane %v4967_v20, 10  ;;  %v6544_v24 = vmov 0 }
  0xc1   : > { %3698 = vmatmul.msk.bf16.gmra.mxu0 %vm678_vm1, %v999_v15  ;;  %3704 = vmatmul.msk.bf16.gmra.mxu1 %vm678_vm1, %v999_v15  ;;  %v3754_v15 = vor.u32 %v4430_v13, %v3751_v23  ;;  %v1404_v23 = vrot.slane %v4989_v35, 6  ;;  %v6545_v24 = vsel %vm5469_vm13, 4294967295, %v6544_v24 }
  0xc2   : > { %v5398_v52 = vpop.f32.mrf.mxu2  ;;  %v5403_v39 = vpop.f32.mrf.mxu3  ;;  %1511 = vmatpush.bf16.msra.mxu0 %v3750_v25  ;;  %v1251_v29 = vpack.c.b16 %v1245_v41, %v1244_v4  ;;  %v1403_v25 = vrot.slane %v1401_v27, 4  ;;  %6546 = vst [vmem:[#allocation14_spill] sm:$0xff] %v6545_v24 }
  0xc3   : > { %1550 = vmatpush.bf16.msra.mxu1 %v3754_v15 }
  0xc4   : > { %v1405_v20 = vsel %vm5469_vm13, %v1403_v25, %v1404_v23 }
  0xc5   : > { %v1445_v4 = vunpack.c.l.b16 %v1405_v20 }
  0xc6   : > { %v5407_v11 = vpop.f32.mrf.mxu0  ;;  %v5409_v49 = vpop.f32.mrf.mxu1 }
  0xc7   : > { %3731 = vmatmul.msk.bf16.gmra.mxu2 %vm678_vm1, %v1250_v37  ;;  %3737 = vmatmul.msk.bf16.gmra.mxu3 %vm678_vm1, %v1250_v37  ;;  %v977_v37 = vrot.slane %v5225_v0, 5 }
  0xc9   : > { %v978_v50 = vsel %vm5266_vm10, %v976_v28, %v977_v37 }
  0xca   : > { %v873_v40 = vpop.f32.mrf.mxu2  ;;  %v912_v8 = vpop.f32.mrf.mxu3  ;;  %v995_v46 = vunpack.c.l.b16 %v978_v50 }
  0xcc   : > { %v1001_v9 = vpack.c.b16 %v995_v46, %v994_v43  ;;  %v1406_v43 = vrot.slane %v1404_v23, 4  ;;  %v1407_v46 = vrot.slane %v5019_v55, 6 }
  0xce   : > { %v723_v21 = vpop.f32.mrf.mxu0  ;;  %v762_v57 = vpop.f32.mrf.mxu1 }
  0xcf   : > { %v5434_v51 = vadd.f32 %v873_v40, %v723_v21  ;;  %v5436_v32 = vadd.f32 %v912_v8, %v762_v57  ;;  %v1402_v57 = vsel %vm5469_vm13, %v3739_v56, %v1401_v27  ;;  %v1408_v27 = vsel %vm5469_vm13, %v1406_v43, %v1407_v46 }
  0xd0   : > { %v1444_v5 = vunpack.c.l.b16 %v1402_v57  ;;  %v1446_v25 = vunpack.c.l.b16 %v1408_v27 }
  0xd1   : > { %3699 = vmatmul.msk.bf16.gmra.mxu0 %vm678_vm1, %v1000_v18  ;;  %3705 = vmatmul.msk.bf16.gmra.mxu1 %vm678_vm1, %v1000_v18 }
  0xd2   : > { %v5440_v19 = vpop.f32.mrf.mxu2  ;;  %v5443_v2 = vpop.f32.mrf.mxu3  ;;  %v1456_v7 = vpack.c.b16 %v1445_v4, %v1444_v5 }
  0xd6   : > { %v5445_v3 = vpop.f32.mrf.mxu0  ;;  %v5447_v58 = vpop.f32.mrf.mxu1 }
  0xd7   : > { %3732 = vmatmul.msk.bf16.gmra.mxu2 %vm678_vm1, %v1251_v29  ;;  %3738 = vmatmul.msk.bf16.gmra.mxu3 %vm678_vm1, %v1251_v29 }
  0xda   : > { %v878_v47 = vpop.f32.mrf.mxu2  ;;  %v917_v30 = vpop.f32.mrf.mxu3 }
  0xde   : > { %v728_v40 = vpop.f32.mrf.mxu0  ;;  %v767_v8 = vpop.f32.mrf.mxu1 }
  0xdf   : > { %v5456_v12 = vadd.f32 %v878_v47, %v728_v40  ;;  %v5458_v13 = vadd.f32 %v917_v30, %v767_v8  ;;  %v3740_v47 = vrot.slane %v4998_v44, 10  ;;  %v1411_v30 = vrot.slane %v5023_v60, 6 }
  0xe0   : > { %v1414_v60 = vrot.slane %v5046_v16, 6 }
  0xe1   : > { %3700 = vmatmul.msk.bf16.gmra.mxu0 %vm678_vm1, %v1001_v9  ;;  %3706 = vmatmul.msk.bf16.gmra.mxu1 %vm678_vm1, %v1001_v9  ;;  %v1412_v56 = vsel %vm5469_vm13, %v3740_v47, %v1411_v30 }
  0xe2   : > { %v5462_v1 = vpop.f32.mrf.mxu2  ;;  %v5466_v18 = vpop.f32.mrf.mxu3  ;;  %v1447_v23 = vunpack.c.l.b16 %v1412_v56 }
  0xe4   : > { %v1457_v20 = vpack.c.b16 %v1447_v23, %v1446_v25 }
  0xe6   : > { %v5473_v15 = vpop.f32.mrf.mxu0  ;;  %v5475_v21 = vpop.f32.mrf.mxu1 }
  0xea   : > { %v883_v35 = vpop.f32.mrf.mxu2  ;;  %v922_v41 = vpop.f32.mrf.mxu3 }
  0xee   : > { %v733_v28 = vpop.f32.mrf.mxu0  ;;  %v772_v37 = vpop.f32.mrf.mxu1 }
  0xef   : > { %v5481_v29 = vadd.f32 %v883_v35, %v733_v28  ;;  %v5483_v10 = vadd.f32 %v922_v41, %v772_v37  ;;  %v1413_v41 = vrot.slane %v1411_v30, 4  ;;  %v1417_v28 = vrot.slane %v5058_v26, 6 }
  0xf0   : > { %v1421_v30 = vrot.slane %v5086_v59, 6 }
  0xf1   : > { %3763 = vmatmul.msk.bf16.vlgmr.msra.gmra.mxu0 %vm678_vm1, %v1456_v7  ;;  %3769 = vmatmul.msk.bf16.vlgmr.msra.gmra.mxu1 %vm678_vm1, %v1456_v7  ;;  %v1416_v7 = vrot.slane %v1414_v60, 4  ;;  %v1415_v46 = vsel %vm5469_vm13, %v1413_v41, %v1414_v60 }
  0xf2   : > { %v5487_v50 = vpop.f32.mrf.mxu2  ;;  %v5492_v9 = vpop.f32.mrf.mxu3  ;;  %v1448_v47 = vunpack.c.l.b16 %v1415_v46 }
  0xf3   : > { %v1418_v16 = vsel %vm5469_vm13, %v1416_v7, %v1417_v28 }
  0xf4   : > { %v1449_v27 = vunpack.c.l.b16 %v1418_v16 }
  0xf6   : > { %v5494_v40 = vpop.f32.mrf.mxu0  ;;  %v5496_v8 = vpop.f32.mrf.mxu1  ;;  %v1458_v56 = vpack.c.b16 %v1449_v27, %v1448_v47  ;;  %v1427_v47 = vrot.slane %v5133_v61, 6  ;;  %v3742_v27 = vrot.slane %v5118_v34, 10  ;;  %v1434_v61 = vrot.slane %v5171_v45, 6 }
  0xfa   : > { %v888_v57 = vpop.f32.mrf.mxu2  ;;  %v927_v55 = vpop.f32.mrf.mxu3 }
  0xfe   : > { %v738_v44 = vpop.f32.mrf.mxu0  ;;  %v777_v5 = vpop.f32.mrf.mxu1 }
  0xff   : > { %v5503_v4 = vadd.f32 %v888_v57, %v738_v44  ;;  %v5505_v35 = vadd.f32 %v927_v55, %v777_v5  ;;  %v3741_v55 = vrot.slane %v5075_v48, 10  ;;  %v1424_v44 = vrot.slane %v5104_v14, 6 }
 0x101   : > { %3764 = vmatmul.msk.bf16.gmra.mxu0 %vm678_vm1, %v1457_v20  ;;  %3770 = vmatmul.msk.bf16.gmra.mxu1 %vm678_vm1, %v1457_v20  ;;  %v1423_v20 = vrot.slane %v1421_v30, 4  ;;  %v1422_v59 = vsel %vm5469_vm13, %v3741_v55, %v1421_v30  ;;  %v1426_v16 = vrot.slane %v1424_v44, 4 }
 0x106   : > { %v5510_v37 = vpop.f32.mrf.mxu0  ;;  %v5512_v43 = vpop.f32.mrf.mxu1 }
 0x107   : > { %6547 = vst [vmem:[#allocation15_spill] sm:$0xff] %v5512_v43 }
 0x10e   : > { %v1053_v25 = vpop.f32.mrf.mxu0  ;;  %v1092_v23 = vpop.f32.mrf.mxu1 }
 0x10f   : > { %v5520_v57 = vadd.f32 %v1053_v25, %v5350_v53  ;;  %v5523_v26 = vadd.f32 %v1092_v23, %v5352_v31  ;;  %v1425_v53 = vsel %vm5469_vm13, %v1423_v20, %v1424_v44  ;;  %v1450_v31 = vunpack.c.l.b16 %v1422_v59 }
 0x110   : > { %v1451_v41 = vunpack.c.l.b16 %v1425_v53 }
 0x111   : > { %3765 = vmatmul.msk.bf16.gmra.mxu0 %vm678_vm1, %v1458_v56  ;;  %3771 = vmatmul.msk.bf16.gmra.mxu1 %vm678_vm1, %v1458_v56  ;;  %v1431_v56 = vrot.slane %v5136_v62, 6 }
 0x112   : > { %v1459_v7 = vpack.c.b16 %v1451_v41, %v1450_v31  ;;  %v1436_v31 = vrot.slane %v1434_v61, 4  ;;  %v1437_v41 = vrot.slane %v5225_v0, 6 }
 0x113   : > { %v1433_v53 = vrot.slane %v1431_v56, 4 }
 0x115   : > { %v1435_v45 = vsel %vm5469_vm13, %v1433_v53, %v1434_v61 }
 0x116   : > { %v5529_v5 = vpop.f32.mrf.mxu0  ;;  %v5531_v60 = vpop.f32.mrf.mxu1 }
 0x11e   : > { %v1058_v28 = vpop.f32.mrf.mxu0  ;;  %v1097_v46 = vpop.f32.mrf.mxu1 }
 0x11f   : > { %v5538_v48 = vadd.f32 %v1058_v28, %v5387_v22  ;;  %v5541_v14 = vadd.f32 %v1097_v46, %v5389_v36  ;;  %v1428_v22 = vsel %vm5469_vm13, %v1426_v16, %v1427_v47  ;;  %v1432_v36 = vsel %vm5469_vm13, %v3742_v27, %v1431_v56 }
 0x120   : > { %v1452_v30 = vunpack.c.l.b16 %v1428_v22  ;;  %v1453_v55 = vunpack.c.l.b16 %v1432_v36 }
 0x121   : > { %3766 = vmatmul.msk.bf16.gmra.mxu0 %vm678_vm1, %v1459_v7  ;;  %3772 = vmatmul.msk.bf16.gmra.mxu1 %vm678_vm1, %v1459_v7 }
 0x122   : > { %v1460_v20 = vpack.c.b16 %v1453_v55, %v1452_v30  ;;  %v5586_v30 = vpop.f32.mrf.mxu2  ;;  %v5588_v55 = vpop.f32.mrf.mxu3 }
 0x123   : > { %6548 = vst [vmem:[#allocation16_spill] sm:$0xff] %v5588_v55 }
 0x126   : > { %v5548_v25 = vpop.f32.mrf.mxu0  ;;  %v5550_v23 = vpop.f32.mrf.mxu1 }
 0x12a   : > { %v1342_v61 = vpop.f32.mrf.mxu3 }
 0x12b   : > { %v1373_v38 = vadd.f32 %v1342_v61, %v5523_v26 }
 0x12e   : > { %v1063_v44 = vpop.f32.mrf.mxu0  ;;  %v1102_v59 = vpop.f32.mrf.mxu1 }
 0x12f   : > { %v5558_v34 = vadd.f32 %v1063_v44, %v5434_v51  ;;  %v5561_v62 = vadd.f32 %v1102_v59, %v5436_v32  ;;  %v1438_v51 = vsel %vm5469_vm13, %v1436_v31, %v1437_v41  ;;  %v1454_v32 = vunpack.c.l.b16 %v1435_v45  ;;  %v1303_v59 = vpop.f32.mrf.mxu2 }
 0x130   : > { %v1455_v46 = vunpack.c.l.b16 %v1438_v51 }
 0x131   : > { %3767 = vmatmul.msk.bf16.gmra.mxu0 %vm678_vm1, %v1460_v20  ;;  %3773 = vmatmul.msk.bf16.gmra.mxu1 %vm678_vm1, %v1460_v20 }
 0x132   : > { %v1461_v16 = vpack.c.b16 %v1455_v46, %v1454_v32  ;;  %v1344_v45 = vpop.f32.mrf.mxu3 }
 0x136   : > { %v5566_v7 = vpop.f32.mrf.mxu0  ;;  %v5568_v28 = vpop.f32.mrf.mxu1 }
 0x137   : > { %v1305_v41 = vpop.f32.mrf.mxu2 }
 0x13e   : > { %v1068_v47 = vpop.f32.mrf.mxu0  ;;  %v1107_v27 = vpop.f32.mrf.mxu1 }
 0x13f   : > { %v5575_v56 = vadd.f32 %v1068_v47, %v5456_v12  ;;  %v5578_v0 = vadd.f32 %v1107_v27, %v5458_v13  ;;  %v1308_v47 = vpop.f32.mrf.mxu2  ;;  %v1347_v27 = vpop.f32.mrf.mxu3 }
 0x141   : > { %3768 = vmatmul.msk.bf16.gmra.mxu0 %vm678_vm1, %v1461_v16  ;;  %3774 = vmatmul.msk.bf16.gmra.mxu1 %vm678_vm1, %v1461_v16  ;;  %vm2885_vm1 = vcmask 56320  }
 0x146   : > { %v5582_v22 = vpop.f32.mrf.mxu0  ;;  %v5584_v36 = vpop.f32.mrf.mxu1 }
 0x147   : > { %v1349_v26 = vpop.f32.mrf.mxu3 }
 0x14e   : > { %v1073_v20 = vpop.f32.mrf.mxu0  ;;  %v1112_v44 = vpop.f32.mrf.mxu1 }
 0x14f   : > { %v5591_v12 = vadd.f32 %v1073_v20, %v5481_v29  ;;  %v5594_v13 = vadd.f32 %v1112_v44, %v5483_v10  ;;  %v1606_v20 = vld [vmem:[%s6505_s2] sm:$0x3]  ;;  %v1372_v44 = vadd.f32 %v1303_v59, %v5520_v57  ;;  %v1125_v57 = vadd.f32 %v5531_v60, %v905_v17  ;;  %v1310_v59 = vpop.f32.mrf.mxu2 }
 0x150   : > { %v5615_v54 = vperm.slane %v1606_v20, 0 }
 0x156   : > { %v5596_v53 = vpop.f32.mrf.mxu0  ;;  %v5598_v31 = vpop.f32.mrf.mxu1 }
 0x157   : > { %v1313_v60 = vpop.f32.mrf.mxu2 }
 0x15e   : > { %v1078_v51 = vpop.f32.mrf.mxu0  ;;  %v1117_v32 = vpop.f32.mrf.mxu1 }
 0x15f   : > { %v5601_v46 = vadd.f32 %v1078_v51, %v5503_v4  ;;  %v5604_v16 = vadd.f32 %v1117_v32, %v5505_v35  ;;  %v5617_v4 = vperm.slane %v1606_v20, 1  ;;  %v866_v32 = vadd.f32 %v5361_v33, %v5373_v63 }
 0x161   : > { %6549 = vst [vmem:[#allocation17_spill] sm:$0xff] %v5601_v46  ;;  %v1375_v46 = vadd.f32 %v1344_v45, %v1125_v57  ;;  %v871_v45 = vadd.f32 %v5398_v52, %v5407_v11 }
 0x162   : > { %6550 = vst [vmem:[#allocation18_spill] sm:$0xff] %v5604_v16 }
 0x166   : > { %v5606_v29 = vpop.f32.mrf.mxu0  ;;  %v5608_v10 = vpop.f32.mrf.mxu1 }
 0x167   : > { %6551 = vst [vmem:[#allocation19_spill] sm:$0xff] %v5606_v29  ;;  %v1124_v29 = vadd.f32 %v5529_v5, %v866_v32  ;;  %v910_v32 = vadd.f32 %v5403_v39, %v5409_v49  ;;  %v1315_v39 = vpop.f32.mrf.mxu2 }
 0x168   : > { %6552 = vst [vmem:[#allocation20_spill] sm:$0xff] %v5608_v10 }
 0x169   : > { %v1374_v16 = vadd.f32 %v1305_v41, %v1124_v29  ;;  %v1376_v41 = vadd.f32 %v1308_v47, %v5538_v48  ;;  %v1129_v48 = vadd.f32 %v5550_v23, %v910_v32  ;;  %v876_v32 = vadd.f32 %v5440_v19, %v5445_v3 }
 0x16e   : > { %v1513_v35 = vpop.f32.mrf.mxu0  ;;  %v1552_v51 = vpop.f32.mrf.mxu1 }
 0x16f   : > { %v1582_v24 = vadd.f32 %v1513_v35, %v1372_v44  ;;  %v1583_v10 = vadd.f32 %v1552_v51, %v1373_v38  ;;  %v1352_v44 = vpop.f32.mrf.mxu3  ;;  %v1318_v19 = vpop.f32.mrf.mxu2 }
 0x171   : > { %v1612_v61 = vadd.f32 %v5615_v54, %v1582_v24  ;;  %v1613_v20 = vadd.f32 %v5617_v4, %v1583_v10 }
 0x173   : > { %v1636_v55 = vmul.f32 0.5, %v1612_v61  ;;  %v1637_v43 = vmul.f32 0.5, %v1613_v20 }
 0x175   : > { %4615 = vtanh.f32 %v1636_v55  ;;  %v1377_v55 = vadd.f32 %v1347_v27, %v5541_v14 }
 0x176   : > { %4617 = vtanh.f32 %v1637_v43  ;;  %v1515_v33 = vpop.f32.mrf.mxu0  ;;  %v1554_v42 = vpop.f32.mrf.mxu1 }
 0x177   : > { %v1584_v63 = vadd.f32 %v1515_v33, %v1374_v16  ;;  %v1585_v38 = vadd.f32 %v1554_v42, %v1375_v46  ;;  %v1128_v33 = vadd.f32 %v5548_v25, %v871_v45  ;;  %v1354_v49 = vpop.f32.mrf.mxu3 }
 0x179   : > { %v1614_v6 = vadd.f32 %v5615_v54, %v1584_v63  ;;  %v1615_v17 = vadd.f32 %v5617_v4, %v1585_v38 }
 0x17b   : > { %v4616_v5 = vpop.eup %4615  ;;  %v1638_v24 = vmul.f32 0.5, %v1614_v6  ;;  %v1639_v35 = vmul.f32 0.5, %v1615_v17  ;;  %v1378_v6 = vadd.f32 %v1310_v59, %v1128_v33  ;;  %v1379_v17 = vadd.f32 %v1349_v26, %v1129_v48 }
 0x17c   : > { %v4618_v10 = vpop.eup %4617  ;;  %v1684_v51 = vadd.f32 1.0, %v4616_v5 }
 0x17d   : > { %v1685_v43 = vadd.f32 1.0, %v4618_v10  ;;  %4619 = vtanh.f32 %v1638_v24 }
 0x17e   : > { %v1708_v46 = vmul.f32 0.5, %v1684_v51  ;;  %4621 = vtanh.f32 %v1639_v35  ;;  %v1518_v16 = vpop.f32.mrf.mxu0  ;;  %v1557_v29 = vpop.f32.mrf.mxu1 }
 0x17f   : > { %v1709_v57 = vmul.f32 0.5, %v1685_v43  ;;  %v1586_v61 = vadd.f32 %v1518_v16, %v1376_v41  ;;  %v1587_v20 = vadd.f32 %v1557_v29, %v1377_v55  ;;  %v1357_v3 = vpop.f32.mrf.mxu3 }
 0x181   : > { %v1732_v14 = vmax.f32 %v1708_v46, %v1709_v57  ;;  %v1616_v47 = vadd.f32 %v5615_v54, %v1586_v61  ;;  %v1617_v27 = vadd.f32 %v5617_v4, %v1587_v20  ;;  %v1380_v57 = vadd.f32 %v1313_v60, %v5558_v34 }
 0x182   : > { %v1381_v20 = vadd.f32 %v1352_v44, %v5561_v62 }
 0x183   : > { %v4620_v52 = vpop.eup %4619  ;;  %v1640_v11 = vmul.f32 0.5, %v1616_v47  ;;  %v1641_v42 = vmul.f32 0.5, %v1617_v27  ;;  %v1757_v59 = vrot.slane %v1732_v14, 1  ;;  %v915_v47 = vadd.f32 %v5443_v2, %v5447_v58 }
 0x184   : > { %v4622_v63 = vpop.eup %4621  ;;  %v1686_v38 = vadd.f32 1.0, %v4620_v52 }
 0x185   : > { %v1687_v5 = vadd.f32 1.0, %v4622_v63  ;;  %4623 = vtanh.f32 %v1640_v11  ;;  %v1132_v63 = vadd.f32 %v5566_v7, %v876_v32  ;;  %v1133_v62 = vadd.f32 %v5568_v28, %v915_v47 }
 0x186   : > { %v1710_v24 = vmul.f32 0.5, %v1686_v38  ;;  %4625 = vtanh.f32 %v1641_v42  ;;  %v1520_v25 = vpop.f32.mrf.mxu0  ;;  %v1559_v23 = vpop.f32.mrf.mxu1 }
 0x187   : > { %v1711_v35 = vmul.f32 0.5, %v1687_v5  ;;  %v1588_v10 = vadd.f32 %v1520_v25, %v1378_v6  ;;  %v1589_v51 = vadd.f32 %v1559_v23, %v1379_v17  ;;  %v1382_v58 = vadd.f32 %v1315_v39, %v1132_v63 }
 0x188   : > { %v1383_v23 = vadd.f32 %v1354_v49, %v1133_v62 }
 0x189   : > { %v1733_v41 = vmax.f32 %v1710_v24, %v1711_v35  ;;  %v1618_v55 = vadd.f32 %v5615_v54, %v1588_v10  ;;  %v1619_v43 = vadd.f32 %v5617_v4, %v1589_v51  ;;  %v4788_v35 = vmov 65535  }
 0x18a   : > { %v1835_v10 = vsel %vm936_vm8, 4294967295, %v4788_v35 }
 0x18b   : > { %v4624_v45 = vpop.eup %4623  ;;  %v1758_v26 = vrot.slane %v1733_v41, 1  ;;  %v1642_v46 = vmul.f32 0.5, %v1618_v55  ;;  %v1643_v16 = vmul.f32 0.5, %v1619_v43 }
 0x18c   : > { %v4626_v29 = vpop.eup %4625  ;;  %v1688_v61 = vadd.f32 1.0, %v4624_v45 }
 0x18d   : > { %v1689_v33 = vadd.f32 1.0, %v4626_v29  ;;  %4627 = vtanh.f32 %v1642_v46  ;;  %v1759_v48 = vsel %vm1756_vm14, %v1757_v59, %v1758_v26 }
 0x18e   : > { %v1712_v27 = vmul.f32 0.5, %v1688_v61  ;;  %4629 = vtanh.f32 %v1643_v16  ;;  %v1523_v52 = vpop.f32.mrf.mxu0  ;;  %v1562_v11 = vpop.f32.mrf.mxu1  ;;  %v1789_v42 = vmax.f32 %v1732_v14, %v1759_v48 }
 0x18f   : > { %v1713_v34 = vmul.f32 0.5, %v1689_v33  ;;  %v1590_v60 = vadd.f32 %v1523_v52, %v1380_v57  ;;  %v1591_v38 = vadd.f32 %v1562_v11, %v1381_v20  ;;  %v1320_v61 = vpop.f32.mrf.mxu2  ;;  %v1359_v20 = vpop.f32.mrf.mxu3 }
 0x190   : > { %v1803_v46 = vpack.c.bf16 %v1789_v42, %v1789_v42 }
 0x191   : > { %v1734_v44 = vmax.f32 %v1712_v27, %v1713_v34  ;;  %v1620_v6 = vadd.f32 %v5615_v54, %v1590_v60  ;;  %v1621_v17 = vadd.f32 %v5617_v4, %v1591_v38  ;;  %v1384_v38 = vadd.f32 %v1318_v19, %v5575_v56 }
 0x192   : > { %v1823_v52 = vunpack.c.l.b16 %v1803_v46 }
 0x193   : > { %v4628_v2 = vpop.eup %4627  ;;  %v1760_v5 = vrot.slane %v1734_v44, 1  ;;  %v1644_v24 = vmul.f32 0.5, %v1620_v6  ;;  %v1645_v25 = vmul.f32 0.5, %v1621_v17  ;;  %v1385_v6 = vadd.f32 %v1357_v3, %v5578_v0 }
 0x194   : > { %v4630_v14 = vpop.eup %4629  ;;  %v1690_v7 = vadd.f32 1.0, %v4628_v2 }
 0x195   : > { %v1791_v51 = vmax.f32 %v1734_v44, %v1760_v5  ;;  %v1691_v55 = vadd.f32 1.0, %v4630_v14  ;;  %4631 = vtanh.f32 %v1644_v24  ;;  %v1761_v28 = vsel %vm1756_vm14, %v1758_v26, %v1760_v5 }
 0x196   : > { %v1714_v43 = vmul.f32 0.5, %v1690_v7  ;;  %4633 = vtanh.f32 %v1645_v25  ;;  %v1525_v45 = vpop.f32.mrf.mxu0  ;;  %v1564_v59 = vpop.f32.mrf.mxu1  ;;  %v1790_v39 = vmax.f32 %v1733_v41, %v1761_v28  ;;  %v5657_v26 = vsel %vm1834_vm15, %v1835_v10, 0 }
 0x197   : > { %v1805_v16 = vpack.c.bf16 %v1791_v51, %v1791_v51  ;;  %v1715_v29 = vmul.f32 0.5, %v1691_v55  ;;  %v1592_v32 = vadd.f32 %v1525_v45, %v1382_v58  ;;  %v1593_v49 = vadd.f32 %v1564_v59, %v1383_v23  ;;  %v1323_v10 = vpop.f32.mrf.mxu2  ;;  %v1362_v51 = vpop.f32.mrf.mxu3 }
 0x198   : > { %v1804_v57 = vpack.c.bf16 %v1790_v39, %v1790_v39  ;;  %v881_v58 = vadd.f32 %v5462_v1, %v5473_v15  ;;  %v920_v14 = vadd.f32 %v5466_v18, %v5475_v21 }
 0x199   : > { %v1735_v33 = vmax.f32 %v1714_v43, %v1715_v29  ;;  %v1622_v48 = vadd.f32 %v5615_v54, %v1592_v32  ;;  %v1623_v47 = vadd.f32 %v5617_v4, %v1593_v49  ;;  %v1825_v27 = vunpack.c.l.b16 %v1805_v16 }
 0x19a   : > { %v1824_v11 = vunpack.c.l.b16 %v1804_v57  ;;  %v1136_v0 = vadd.f32 %v5582_v22, %v881_v58  ;;  %v1137_v3 = vadd.f32 %v5584_v36, %v920_v14 }
 0x19b   : > { %v4632_v41 = vpop.eup %4631  ;;  %v1646_v42 = vmul.f32 0.5, %v1622_v48  ;;  %v1647_v63 = vmul.f32 0.5, %v1623_v47  ;;  %v1827_v34 = vpack.c.b16 %v1825_v27, %v1825_v27  ;;  %v1762_v55 = vrot.slane %v1735_v33, 1 }
 0x19c   : > { %v4634_v60 = vpop.eup %4633  ;;  %v1692_v62 = vadd.f32 1.0, %v4632_v41  ;;  %v1826_v44 = vpack.c.b16 %v1824_v11, %v1823_v52  ;;  %v1386_v45 = vadd.f32 %v1320_v61, %v1136_v0  ;;  %v1387_v39 = vadd.f32 %v1359_v20, %v1137_v3 }
 0x19d   : > { %v1693_v17 = vadd.f32 1.0, %v4634_v60  ;;  %4635 = vtanh.f32 %v1646_v42  ;;  %v1838_v2 = vand.u32 %v5657_v26, %v1827_v34  ;;  %v886_v61 = vadd.f32 %v5487_v50, %v5494_v40  ;;  %v4434_v50 = vld [vmem:[%s6506_s3] sm:$0x30] }
 0x19e   : > { %v1716_v5 = vmul.f32 0.5, %v1692_v62  ;;  %4637 = vtanh.f32 %v1647_v63  ;;  %v1528_v24 = vpop.f32.mrf.mxu0  ;;  %v1567_v25 = vpop.f32.mrf.mxu1  ;;  %v925_v11 = vadd.f32 %v5492_v9, %v5496_v8  ;;  %v1388_v60 = vadd.f32 %v1323_v10, %v5591_v12 }
 0x19f   : > { %v1717_v23 = vmul.f32 0.5, %v1693_v17  ;;  %v1594_v56 = vadd.f32 %v1528_v24, %v1384_v38  ;;  %v1595_v19 = vadd.f32 %v1567_v25, %v1385_v6  ;;  %1846 = vmatpush.bf16.msra.mxu2 %v1838_v2  ;;  %v1389_v38 = vadd.f32 %v1362_v51, %v5594_v13  ;;  %v1325_v40 = vpop.f32.mrf.mxu2  ;;  %v1364_v9 = vpop.f32.mrf.mxu3 }
 0x1a1   : > { %v1736_v7 = vmax.f32 %v1716_v5, %v1717_v23  ;;  %v1624_v35 = vadd.f32 %v5615_v54, %v1594_v56  ;;  %v1625_v1 = vadd.f32 %v5617_v4, %v1595_v19  ;;  %v1140_v56 = vadd.f32 %v5596_v53, %v886_v61 }
 0x1a2   : > { %v1141_v19 = vadd.f32 %v5598_v31, %v925_v11 }
 0x1a3   : > { %v4636_v15 = vpop.eup %4635  ;;  %v1763_v28 = vrot.slane %v1736_v7, 1  ;;  %v1648_v43 = vmul.f32 0.5, %v1624_v35  ;;  %v1649_v18 = vmul.f32 0.5, %v1625_v1  ;;  %1847 = vmatpush.bf16.msra.mxu2 %v1826_v44 }
 0x1a4   : > { %v4638_v21 = vpop.eup %4637  ;;  %v1694_v59 = vadd.f32 1.0, %v4636_v15 }
 0x1a5   : > { %v1695_v22 = vadd.f32 1.0, %v4638_v21  ;;  %4639 = vtanh.f32 %v1648_v43  ;;  %v1764_v36 = vsel %vm1756_vm14, %v1762_v55, %v1763_v28 }
 0x1a6   : > { %v1718_v46 = vmul.f32 0.5, %v1694_v59  ;;  %4641 = vtanh.f32 %v1649_v18  ;;  %v1530_v16 = vpop.f32.mrf.mxu0  ;;  %v1569_v29 = vpop.f32.mrf.mxu1  ;;  %v1792_v32 = vmax.f32 %v1735_v33, %v1764_v36  ;;  %v3777_v33 = vld [vmem:[%s6506_s3] sm:$0xf]  ;;  %v1390_v18 = vadd.f32 %v1325_v40, %v1140_v56  ;;  %v6555_v40 = vld [vmem:[#allocation15_spill] sm:$0xff] }
 0x1a7   : > { %v1719_v49 = vmul.f32 0.5, %v1695_v22  ;;  %v1596_v57 = vadd.f32 %v1530_v16, %v1386_v45  ;;  %v1597_v48 = vadd.f32 %v1569_v29, %v1387_v39  ;;  %v5686_v24 = vor.u32 %v4434_v50, %v3777_v33  ;;  %v1328_v16 = vpop.f32.mrf.mxu2  ;;  %v1367_v29 = vpop.f32.mrf.mxu3  ;;  %v6553_v33 = vld [vmem:[#allocation17_spill] sm:$0xff] }
 0x1a8   : > { %v1806_v44 = vpack.c.bf16 %v1792_v32, %v1792_v32  ;;  %v1391_v45 = vadd.f32 %v1364_v9, %v1141_v19  ;;  %v6556_v9 = vld [vmem:[#allocation16_spill] sm:$0xff] }
 0x1a9   : > { %v1737_v47 = vmax.f32 %v1718_v46, %v1719_v49  ;;  %v1626_v27 = vadd.f32 %v5615_v54, %v1596_v57  ;;  %v1627_v52 = vadd.f32 %v5617_v4, %v1597_v48  ;;  %3779 = vmatmul.msk.bf16.vlgmr.msra.gmra.mxu2 %vm1829_vm0, %v5686_v24 }
 0x1ab   : > { %v4640_v20 = vpop.eup %4639  ;;  %v1765_v41 = vrot.slane %v1737_v47, 1  ;;  %v1650_v42 = vmul.f32 0.5, %v1626_v27  ;;  %v1651_v63 = vmul.f32 0.5, %v1627_v52 }
 0x1ac   : > { %v4642_v34 = vpop.eup %4641  ;;  %v1696_v62 = vadd.f32 1.0, %v4640_v20 }
 0x1ad   : > { %v1794_v8 = vmax.f32 %v1737_v47, %v1765_v41  ;;  %v1697_v6 = vadd.f32 1.0, %v4642_v34  ;;  %4643 = vtanh.f32 %v1650_v42  ;;  %v1766_v17 = vsel %vm1756_vm14, %v1763_v28, %v1765_v41 }
 0x1ae   : > { %v1720_v2 = vmul.f32 0.5, %v1696_v62  ;;  %4645 = vtanh.f32 %v1651_v63  ;;  %v1533_v58 = vpop.f32.mrf.mxu0  ;;  %v1572_v5 = vpop.f32.mrf.mxu1  ;;  %v1793_v12 = vmax.f32 %v1736_v7, %v1766_v17  ;;  %v1857_v7 = vunpack.c.l.b16 %v1806_v44 }
 0x1af   : > { %v1808_v13 = vpack.c.bf16 %v1794_v8, %v1794_v8  ;;  %v1721_v25 = vmul.f32 0.5, %v1697_v6  ;;  %v1598_v14 = vadd.f32 %v1533_v58, %v1388_v60  ;;  %v1599_v23 = vadd.f32 %v1572_v5, %v1389_v38  ;;  %v6554_v38 = vld [vmem:[#allocation18_spill] sm:$0xff]  ;;  %v1369_v56 = vpop.f32.mrf.mxu3 }
 0x1b0   : > { %v1807_v0 = vpack.c.bf16 %v1793_v12, %v1793_v12  ;;  %v891_v63 = vadd.f32 %v5586_v30, %v5510_v37  ;;  %v1392_v34 = vadd.f32 %v1328_v16, %v6553_v33  ;;  %v1393_v62 = vadd.f32 %v1367_v29, %v6554_v38  ;;  %v6557_v12 = vld [vmem:[#allocation19_spill] sm:$0xff] }
 0x1b1   : > { %v1738_v3 = vmax.f32 %v1720_v2, %v1721_v25  ;;  %v1628_v35 = vadd.f32 %v5615_v54, %v1598_v14  ;;  %v1629_v1 = vadd.f32 %v5617_v4, %v1599_v23  ;;  %v1859_v15 = vunpack.c.l.b16 %v1808_v13  ;;  %v6558_v25 = vld [vmem:[#allocation20_spill] sm:$0xff]  ;;  %v1330_v23 = vpop.f32.mrf.mxu2 }
 0x1b2   : > { %v1858_v10 = vunpack.c.l.b16 %v1807_v0  ;;  %v930_v8 = vadd.f32 %v6556_v9, %v6555_v40  ;;  %v1144_v13 = vadd.f32 %v6557_v12, %v891_v63  ;;  %v3857_v9 = vld [vmem:[%s6507_s4 + $0xf0] sm:$0xf]  ;;  %v3849_v12 = vld [vmem:[%s6507_s4 + $0xe0] sm:$0xf] }
 0x1b3   : > { %v4644_v51 = vpop.eup %4643  ;;  %v1652_v55 = vmul.f32 0.5, %v1628_v35  ;;  %v1653_v28 = vmul.f32 0.5, %v1629_v1  ;;  %v1861_v43 = vpack.c.b16 %v1859_v15, %v1859_v15  ;;  %v1767_v61 = vrot.slane %v1738_v3, 1 }
 0x1b4   : > { %v4646_v53 = vpop.eup %4645  ;;  %v1698_v31 = vadd.f32 1.0, %v4644_v51  ;;  %v1860_v21 = vpack.c.b16 %v1858_v10, %v1857_v7  ;;  %v1145_v14 = vadd.f32 %v6558_v25, %v930_v8  ;;  %v1394_v51 = vadd.f32 %v1330_v23, %v1144_v13  ;;  %v4466_v8 = vld [vmem:[%s6507_s4 + $0xf4] sm:$0xf0] }
 0x1b5   : > { %v1699_v59 = vadd.f32 1.0, %v4646_v53  ;;  %4647 = vtanh.f32 %v1652_v55  ;;  %v1864_v39 = vand.u32 %v1861_v43, %v5657_v26 }
 0x1b6   : > { %v1722_v22 = vmul.f32 0.5, %v1698_v31  ;;  %4649 = vtanh.f32 %v1653_v28  ;;  %v1535_v36 = vpop.f32.mrf.mxu0  ;;  %v1574_v46 = vpop.f32.mrf.mxu1  ;;  %v1395_v55 = vadd.f32 %v1369_v56, %v1145_v14  ;;  %v4464_v56 = vld [vmem:[%s6507_s4 + $0xe4] sm:$0xf0] }
 0x1b7   : > { %v1723_v32 = vmul.f32 0.5, %v1699_v59  ;;  %v1600_v49 = vadd.f32 %v1535_v36, %v1390_v18  ;;  %v1601_v57 = vadd.f32 %v1574_v46, %v1391_v45  ;;  %1872 = vmatpush.bf16.msra.mxu3 %v1864_v39 }
 0x1b9   : > { %v1739_v48 = vmax.f32 %v1722_v22, %v1723_v32  ;;  %v1630_v47 = vadd.f32 %v5615_v54, %v1600_v49  ;;  %v1631_v27 = vadd.f32 %v5617_v4, %v1601_v57 }
 0x1bb   : > { %v4648_v52 = vpop.eup %4647  ;;  %v1768_v20 = vrot.slane %v1739_v48, 1  ;;  %v1654_v11 = vmul.f32 0.5, %v1630_v47  ;;  %v1655_v41 = vmul.f32 0.5, %v1631_v27  ;;  %1873 = vmatpush.bf16.msra.mxu3 %v1860_v21 }
 0x1bc   : > { %v4650_v42 = vpop.eup %4649  ;;  %v1700_v60 = vadd.f32 1.0, %v4648_v52 }
 0x1bd   : > { %v1701_v44 = vadd.f32 1.0, %v4650_v42  ;;  %4651 = vtanh.f32 %v1654_v11  ;;  %v1769_v50 = vsel %vm1756_vm14, %v1767_v61, %v1768_v20 }
 0x1be   : > { %v1724_v6 = vmul.f32 0.5, %v1700_v60  ;;  %4653 = vtanh.f32 %v1655_v41  ;;  %v1538_v17 = vpop.f32.mrf.mxu0  ;;  %v1577_v2 = vpop.f32.mrf.mxu1  ;;  %v1795_v58 = vmax.f32 %v1738_v3, %v1769_v50  ;;  %3780 = vmatmul.msk.bf16.vlgmr.msra.gmra.mxu3 %vm1829_vm0, %v5686_v24  ;;  %v4007_v50 = vld [vmem:[%s6507_s4 + $0x178] sm:$0xf0] }
 0x1bf   : > { %v1725_v37 = vmul.f32 0.5, %v1701_v44  ;;  %v1602_v30 = vadd.f32 %v1538_v17, %v1392_v34  ;;  %v1603_v5 = vadd.f32 %v1577_v2, %v1393_v62  ;;  %v4481_v44 = vld [vmem:[%s6507_s4 + $0x174] sm:$0xf]  ;;  %v3858_v17 = vor.u32 %v4466_v8, %v3857_v9  ;;  %v3997_v2 = vld [vmem:[%s6507_s4 + $0x160] sm:$0xf] }
 0x1c0   : > { %v1809_v39 = vpack.c.bf16 %v1795_v58, %v1795_v58  ;;  %v4010_v40 = vor.u32 %v4481_v44, %v4007_v50  ;;  %v4480_v58 = vld [vmem:[%s6507_s4 + $0x164] sm:$0xf0]  ;;  %v3843_v44 = vld [vmem:[%s6507_s4 + $0xd8] sm:$0xf0]  ;;  %v4459_v8 = vld [vmem:[%s6507_s4 + $0xc4] sm:$0xf] }
 0x1c1   : > { %v1740_v19 = vmax.f32 %v1724_v6, %v1725_v37  ;;  %v1632_v0 = vadd.f32 %v5615_v54, %v1602_v30  ;;  %v1633_v35 = vadd.f32 %v5617_v4, %v1603_v5  ;;  %v3998_v37 = vor.u32 %v4480_v58, %v3997_v2  ;;  %v4479_v30 = vld [vmem:[%s6507_s4 + $0x164] sm:$0xf]  ;;  %v3999_v5 = vld [vmem:[%s6507_s4 + $0x168] sm:$0xf0]  ;;  %v4460_v9 = vld [vmem:[%s6507_s4 + $0xc4] sm:$0xf0] }
 0x1c2   : > { %v1883_v27 = vunpack.c.l.b16 %v1809_v39  ;;  %2429 = vmatpush.bf16.msrb.mxu1 %v4010_v40  ;;  %v4002_v23 = vor.u32 %v4479_v30, %v3999_v5  ;;  %v4476_v39 = vld [vmem:[%s6507_s4 + $0x144] sm:$0xf0]  ;;  %v3833_v40 = vld [vmem:[%s6507_s4 + $0xc0] sm:$0xf]  ;;  %v4474_v2 = vld [vmem:[%s6507_s4 + $0x134] sm:$0xf0] }
 0x1c3   : > { %v4652_v1 = vpop.eup %4651  ;;  %v1770_v15 = vrot.slane %v1740_v19, 1  ;;  %v1656_v3 = vmul.f32 0.5, %v1632_v0  ;;  %v1657_v7 = vmul.f32 0.5, %v1633_v35  ;;  %v3850_v35 = vor.u32 %v4464_v56, %v3849_v12  ;;  %v4473_v30 = vld [vmem:[%s6507_s4 + $0x134] sm:$0xf] }
 0x1c4   : > { %v4654_v10 = vpop.eup %4653  ;;  %v1702_v28 = vadd.f32 1.0, %v4652_v1  ;;  %v3989_v1 = vld [vmem:[%s6507_s4 + $0x150] sm:$0xf]  ;;  %v3975_v5 = vld [vmem:[%s6507_s4 + $0x138] sm:$0xf0] }
 0x1c5   : > { %v1797_v43 = vmax.f32 %v1740_v19, %v1770_v15  ;;  %v1703_v53 = vadd.f32 1.0, %v4654_v10  ;;  %4655 = vtanh.f32 %v1656_v3  ;;  %v1771_v18 = vsel %vm1756_vm14, %v1768_v20, %v1770_v15  ;;  %v4477_v10 = vld [vmem:[%s6507_s4 + $0x154] sm:$0xf]  ;;  %v3825_v12 = vld [vmem:[%s6507_s4 + $0xb0] sm:$0xf] }
 0x1c6   : > { %v1726_v31 = vmul.f32 0.5, %v1702_v28  ;;  %4657 = vtanh.f32 %v1657_v7  ;;  %v1540_v21 = vpop.f32.mrf.mxu0  ;;  %v1579_v45 = vpop.f32.mrf.mxu1  ;;  %v1796_v59 = vmax.f32 %v1739_v48, %v1771_v18  ;;  %v4478_v7 = vld [vmem:[%s6507_s4 + $0x154] sm:$0xf0]  ;;  %2430 = vmatpush.bf16.msrb.mxu1 %v4002_v23  ;;  %v3827_v23 = vld [vmem:[%s6507_s4 + $0xb8] sm:$0xf0] }
 0x1c7   : > { %v1811_v22 = vpack.c.bf16 %v1797_v43, %v1797_v43  ;;  %v1727_v36 = vmul.f32 0.5, %v1703_v53  ;;  %v1604_v46 = vadd.f32 %v1540_v21, %v1394_v51  ;;  %v1605_v16 = vadd.f32 %v1579_v45, %v1395_v55  ;;  %v3991_v43 = vld [vmem:[%s6507_s4 + $0x158] sm:$0xf0]  ;;  %v3841_v53 = vld [vmem:[%s6507_s4 + $0xd0] sm:$0xf] }
 0x1c8   : > { %v1810_v29 = vpack.c.bf16 %v1796_v59, %v1796_v59  ;;  %v3990_v28 = vor.u32 %v4478_v7, %v3989_v1  ;;  %v4462_v21 = vld [vmem:[%s6507_s4 + $0xd4] sm:$0xf0]  ;;  %v3981_v59 = vld [vmem:[%s6507_s4 + $0x140] sm:$0xf]  ;;  %v4471_v1 = vld [vmem:[%s6507_s4 + $0x124] sm:$0xf] }
 0x1c9   : > { %v1741_v32 = vmax.f32 %v1726_v31, %v1727_v36  ;;  %v1634_v49 = vadd.f32 %v5615_v54, %v1604_v46  ;;  %v1635_v57 = vadd.f32 %v5617_v4, %v1605_v16  ;;  %v1885_v47 = vunpack.c.l.b16 %v1811_v22  ;;  %v4005_v54 = vld [vmem:[%s6507_s4 + $0x170] sm:$0xf]  ;;  %v4482_v4 = vld [vmem:[%s6507_s4 + $0x174] sm:$0xf0]  ;;  %v4475_v46 = vld [vmem:[%s6507_s4 + $0x144] sm:$0xf] }
 0x1ca   : > { %v1884_v52 = vunpack.c.l.b16 %v1810_v29  ;;  %v4006_v62 = vor.u32 %v4482_v4, %v4005_v54  ;;  %v3994_v31 = vor.u32 %v4477_v10, %v3991_v43  ;;  %v3842_v45 = vor.u32 %v4462_v21, %v3841_v53  ;;  %v3983_v16 = vld [vmem:[%s6507_s4 + $0x148] sm:$0xf0]  ;;  %v4463_v54 = vld [vmem:[%s6507_s4 + $0xe4] sm:$0xf]  ;;  %v3817_v10 = vld [vmem:[%s6507_s4 + $0xa0] sm:$0xf] }
 0x1cb   : > { %v4656_v61 = vpop.eup %4655  ;;  %v1658_v20 = vmul.f32 0.5, %v1634_v49  ;;  %v1659_v11 = vmul.f32 0.5, %v1635_v57  ;;  %v1887_v41 = vpack.c.b16 %v1885_v47, %v1885_v47  ;;  %v1772_v25 = vrot.slane %v1741_v32, 1  ;;  %v3851_v4 = vld [vmem:[%s6507_s4 + $0xe8] sm:$0xf0] }
 0x1cc   : > { %v4658_v42 = vpop.eup %4657  ;;  %v1704_v48 = vadd.f32 1.0, %v4656_v61  ;;  %v1886_v63 = vpack.c.b16 %v1884_v52, %v1883_v27  ;;  %2410 = vmatpush.bf16.msrb.mxu0 %v4006_v62  ;;  %v3982_v36 = vor.u32 %v4476_v39, %v3981_v59  ;;  %2431 = vmatpush.bf16.msrb.mxu1 %v3994_v31  ;;  %v3986_v29 = vor.u32 %v4475_v46, %v3983_v16  ;;  %v4461_v62 = vld [vmem:[%s6507_s4 + $0xd4] sm:$0xf]  ;;  %v3819_v43 = vld [vmem:[%s6507_s4 + $0xa8] sm:$0xf0] }
 0x1cd   : > { %v1705_v33 = vadd.f32 1.0, %v4658_v42  ;;  %4659 = vtanh.f32 %v1658_v20  ;;  %v1890_v34 = vand.u32 %v1887_v41, %v5657_v26  ;;  %v3846_v50 = vor.u32 %v4461_v62, %v3843_v44  ;;  %v3957_v53 = vld [vmem:[%s6507_s4 + $0x110] sm:$0xf]  ;;  %v3959_v59 = vld [vmem:[%s6507_s4 + $0x118] sm:$0xf0] }
 0x1ce   : > { %v1728_v60 = vmul.f32 0.5, %v1704_v48  ;;  %4661 = vtanh.f32 %v1659_v11  ;;  %v3809_v39 = vld [vmem:[%s6507_s4 + $0x90] sm:$0xf]  ;;  %v4453_v46 = vld [vmem:[%s6507_s4 + $0x94] sm:$0xf] }
 0x1cf   : > { %v1729_v38 = vmul.f32 0.5, %v1705_v33  ;;  %1898 = vmatpush.bf16.msrb.mxu2 %v1890_v34  ;;  %v4465_v33 = vld [vmem:[%s6507_s4 + $0xf4] sm:$0xf]  ;;  %v3859_v34 = vld [vmem:[%s6507_s4 + $0xf8] sm:$0xf0] }
 0x1d0   : > { %2411 = vmatpush.bf16.msrb.mxu0 %v3998_v37  ;;  %2432 = vmatpush.bf16.msrb.mxu1 %v3986_v29  ;;  %v3811_v16 = vld [vmem:[%s6507_s4 + $0x98] sm:$0xf0] }
 0x1d1   : > { %v1742_v6 = vmax.f32 %v1728_v60, %v1729_v38  ;;  %v3862_v60 = vor.u32 %v4465_v33, %v3859_v34  ;;  %v3854_v38 = vor.u32 %v4463_v54, %v3851_v4 }
 0x1d3   : > { %v4660_v13 = vpop.eup %4659  ;;  %v1773_v14 = vrot.slane %v1742_v6, 1  ;;  %1899 = vmatpush.bf16.msrb.mxu2 %v1886_v63 }
 0x1d4   : > { %v4662_v19 = vpop.eup %4661  ;;  %v1706_v0 = vadd.f32 1.0, %v4660_v13  ;;  %2412 = vmatpush.bf16.msrb.mxu0 %v3990_v28  ;;  %v3978_v13 = vor.u32 %v4473_v30, %v3975_v5 }
 0x1d5   : > { %v1707_v15 = vadd.f32 1.0, %v4662_v19  ;;  %v1774_v3 = vsel %vm1756_vm14, %v1772_v25, %v1773_v14  ;;  %v4458_v25 = vld [vmem:[%s6507_s4 + $0xb4] sm:$0xf0] }
 0x1d6   : > { %v1730_v51 = vmul.f32 0.5, %v1706_v0  ;;  %v1798_v55 = vmax.f32 %v1741_v32, %v1774_v3  ;;  %3781 = vmatmul.msk.bf16.vlgmr.msrb.gmra.mxu2 %vm1829_vm0, %v5686_v24  ;;  %v3826_v56 = vor.u32 %v4458_v25, %v3825_v12  ;;  %v3965_v0 = vld [vmem:[%s6507_s4 + $0x120] sm:$0xf]  ;;  %2433 = vmatpush.bf16.msrb.mxu1 %v3978_v13  ;;  %v3967_v3 = vld [vmem:[%s6507_s4 + $0x128] sm:$0xf0] }
 0x1d7   : > { %2117 = vmatpush.bf16.msra.mxu2 %v3858_v17  ;;  %v1731_v18 = vmul.f32 0.5, %v1707_v15  ;;  %v3973_v17 = vld [vmem:[%s6507_s4 + $0x130] sm:$0xf]  ;;  %v3970_v7 = vor.u32 %v4471_v1, %v3967_v3 }
 0x1d8   : > { %2413 = vmatpush.bf16.msrb.mxu0 %v3982_v36  ;;  %v1812_v27 = vpack.c.bf16 %v1798_v55, %v1798_v55  ;;  %v3974_v37 = vor.u32 %v4474_v2, %v3973_v17  ;;  %v4455_v55 = vld [vmem:[%s6507_s4 + $0xa4] sm:$0xf]  ;;  %v4454_v36 = vld [vmem:[%s6507_s4 + $0x94] sm:$0xf0] }
 0x1d9   : > { %v1743_v22 = vmax.f32 %v1730_v51, %v1731_v18  ;;  %v4456_v51 = vld [vmem:[%s6507_s4 + $0xa4] sm:$0xf0]  ;;  %v4470_v18 = vld [vmem:[%s6507_s4 + $0x114] sm:$0xf0]  ;;  %v3822_v31 = vor.u32 %v4455_v55, %v3819_v43 }
 0x1da   : > { %v1909_v11 = vunpack.c.l.b16 %v1812_v27  ;;  %v3818_v28 = vor.u32 %v4456_v51, %v3817_v10  ;;  %v3958_v21 = vor.u32 %v4470_v18, %v3957_v53  ;;  %2434 = vmatpush.bf16.msrb.mxu1 %v3970_v7  ;;  %v3810_v27 = vor.u32 %v4454_v36, %v3809_v39  ;;  %v4053_v36 = vld [vmem:[%s6507_s4 + $0x1b0] sm:$0xf] }
 0x1db   : > { %2118 = vmatpush.bf16.msra.mxu2 %v3850_v35  ;;  %v1775_v32 = vrot.slane %v1743_v22, 1  ;;  %v4472_v35 = vld [vmem:[%s6507_s4 + $0x124] sm:$0xf0] }
 0x1dc   : > { %2414 = vmatpush.bf16.msrb.mxu0 %v3974_v37  ;;  %v3966_v15 = vor.u32 %v4472_v35, %v3965_v0 }
 0x1dd   : > { %v1800_v49 = vmax.f32 %v1743_v22, %v1775_v32  ;;  %v1776_v57 = vsel %vm1756_vm14, %v1773_v14, %v1775_v32  ;;  %v4457_v14 = vld [vmem:[%s6507_s4 + $0xb4] sm:$0xf]  ;;  %v3949_v32 = vld [vmem:[%s6507_s4 + $0x100] sm:$0xf] }
 0x1de   : > { %v1799_v47 = vmax.f32 %v1742_v6, %v1776_v57  ;;  %v3834_v6 = vor.u32 %v4460_v9, %v3833_v40  ;;  %v3830_v19 = vor.u32 %v4457_v14, %v3827_v23  ;;  %v4467_v57 = vld [vmem:[%s6507_s4 + $0x104] sm:$0xf]  ;;  %v3801_v40 = vld [vmem:[%s6507_s4 + $0x80] sm:$0xf]  ;;  %v4452_v9 = vld [vmem:[%s6507_s4 + $0x84] sm:$0xf0] }
 0x1df   : > { %2119 = vmatpush.bf16.msra.mxu2 %v3842_v45  ;;  %v1814_v52 = vpack.c.bf16 %v1800_v49, %v1800_v49  ;;  %v4469_v45 = vld [vmem:[%s6507_s4 + $0x114] sm:$0xf]  ;;  %v4468_v49 = vld [vmem:[%s6507_s4 + $0x104] sm:$0xf0]  ;;  %v3802_v5 = vor.u32 %v4452_v9, %v3801_v40 }
 0x1e0   : > { %v1813_v61 = vpack.c.bf16 %v1799_v47, %v1799_v47  ;;  %2415 = vmatpush.bf16.msrb.mxu0 %v3966_v15  ;;  %v3962_v22 = vor.u32 %v4469_v45, %v3959_v59 }
 0x1e1   : > { %v1911_v20 = vunpack.c.l.b16 %v1814_v52  ;;  %v3951_v52 = vld [vmem:[%s6507_s4 + $0x108] sm:$0xf0] }
 0x1e2   : > { %v1910_v41 = vunpack.c.l.b16 %v1813_v61  ;;  %v3814_v61 = vor.u32 %v4453_v46, %v3811_v16  ;;  %2435 = vmatpush.bf16.msrb.mxu1 %v3962_v22 }
 0x1e3   : > { %v1913_v42 = vpack.c.b16 %v1911_v20, %v1911_v20  ;;  %2120 = vmatpush.bf16.msra.mxu2 %v3834_v6  ;;  %v3950_v20 = vor.u32 %v4468_v49, %v3949_v32  ;;  %v3803_v6 = vld [vmem:[%s6507_s4 + $0x88] sm:$0xf0] }
 0x1e4   : > { %v1912_v48 = vpack.c.b16 %v1910_v41, %v1909_v11  ;;  %2416 = vmatpush.bf16.msrb.mxu0 %v3958_v21 }
 0x1e5   : > { %v1916_v63 = vand.u32 %v1913_v42, %v5657_v26  ;;  %v3954_v42 = vor.u32 %v4467_v57, %v3951_v52 }
 0x1e7   : > { %1924 = vmatpush.bf16.msrb.mxu3 %v1916_v63  ;;  %2121 = vmatpush.bf16.msra.mxu2 %v3826_v56 }
 0x1e8   : > { %2417 = vmatpush.bf16.msrb.mxu0 %v3950_v20  ;;  %2436 = vmatpush.bf16.msrb.mxu1 %v3954_v42 }
 0x1eb   : > { %1925 = vmatpush.bf16.msrb.mxu3 %v1912_v48  ;;  %2122 = vmatpush.bf16.msra.mxu2 %v3818_v28 }
 0x1ee   : > { %3782 = vmatmul.msk.bf16.vlgmr.msrb.gmra.mxu3 %vm1829_vm0, %v5686_v24  ;;  %v3835_v24 = vld [vmem:[%s6507_s4 + $0xc8] sm:$0xf0] }
 0x1ef   : > { %2136 = vmatpush.bf16.msra.mxu3 %v3862_v60  ;;  %v3838_v58 = vor.u32 %v4459_v8, %v3835_v24  ;;  %2123 = vmatpush.bf16.msra.mxu2 %v3810_v27  ;;  %v4451_v8 = vld [vmem:[%s6507_s4 + $0x84] sm:$0xf] }
 0x1f0   : > { %v3806_v14 = vor.u32 %v4451_v8, %v3803_v6  ;;  %v4171_v8 = vld [vmem:[%s6507_s4 + $0x278] sm:$0xf0] }
 0x1f3   : > { %2137 = vmatpush.bf16.msra.mxu3 %v3854_v38  ;;  %2124 = vmatpush.bf16.msra.mxu2 %v3802_v5  ;;  %v4449_v5 = vld [vmem:[%s6507_s4 + $0x74] sm:$0xf] }
 0x1f7   : > { %2138 = vmatpush.bf16.msra.mxu3 %v3846_v50 }
 0x1fb   : > { %2139 = vmatpush.bf16.msra.mxu3 %v3838_v58 }
 0x1ff   : > { %2140 = vmatpush.bf16.msra.mxu3 %v3830_v19 }
 0x203   : > { %2141 = vmatpush.bf16.msra.mxu3 %v3822_v31 }
 0x207   : > { %2142 = vmatpush.bf16.msra.mxu3 %v3814_v61 }
 0x20b   : > { %2143 = vmatpush.bf16.msra.mxu3 %v3806_v14  ;;  %v4161_v14 = vld [vmem:[%s6507_s4 + $0x260] sm:$0xf] }
 0x22c   : > { %v1849_v29 = vpop.f32.mrf.mxu2 }
 0x22d   : > { %v1932_v47 = vpack.c.bf16 %v1849_v29, %v1849_v29 }
 0x22f   : > { %v1957_v11 = vshrl.u32 %v1932_v47, 16  ;;  %v1960_v41 = vshll.u32 %v1932_v47, 16  ;;  %v4091_v4 = vrot.slane %v1932_v47, 10  ;;  %v2159_v13 = vunpack.c.l.b16 %v1932_v47 }
 0x230   : > { %v3927_v0 = vrot.slane %v1932_v47, 9 }
 0x231   : > { %v2456_v48 = vrot.slane %v1957_v11, 5  ;;  %v2457_v63 = vrot.slane %v1960_v41, 6  ;;  %v1959_v54 = vrot.slane %v1957_v11, 4  ;;  %v1962_v38 = vrot.slane %v1960_v41, 5 }
 0x233   : > { %v2458_v33 = vor.u32 %v2457_v63, %v2456_v48  ;;  %v1963_v12 = vor.u32 %v1962_v38, %v1959_v54  ;;  %v4169_v38 = vld [vmem:[%s6507_s4 + $0x270] sm:$0xf]  ;;  %v4489_v63 = vld [vmem:[%s6507_s4 + $0x1b4] sm:$0xf] }
 0x234   : > { %v1851_v34 = vpop.f32.mrf.mxu2 }
 0x235   : > { %v1933_v60 = vpack.c.bf16 %v1851_v34, %v1851_v34  ;;  %v1964_v10 = vrot.slane %v1963_v12, 4  ;;  %v2459_v59 = vrot.slane %v2458_v33, 4 }
 0x237   : > { %v1966_v62 = vshll.u32 %v1933_v60, 16  ;;  %v2460_v44 = vshrl.u32 %v1933_v60, 16  ;;  %v2649_v50 = vrot.slane %v1933_v60, 6  ;;  %v2291_v35 = vrot.slane %v1933_v60, 5 }
 0x239   : > { %v2462_v17 = vrot.slane %v2460_v44, 5  ;;  %v2463_v2 = vrot.slane %v1966_v62, 6  ;;  %v2650_v30 = vsel %vm5469_vm13, %v4091_v4, %v2649_v50  ;;  %v1968_v51 = vrot.slane %v1966_v62, 5  ;;  %v4514_v62 = vld [vmem:[%s6507_s4 + $0x274] sm:$0xf0] }
 0x23a   : > { %v2292_v21 = vsel %vm5266_vm10, %v3927_v0, %v2291_v35  ;;  %v2680_v27 = vunpack.c.l.b16 %v2650_v30  ;;  %v4513_v44 = vld [vmem:[%s6507_s4 + $0x274] sm:$0xf]  ;;  %v4170_v9 = vor.u32 %v4514_v62, %v4169_v38  ;;  %v4450_v30 = vld [vmem:[%s6507_s4 + $0x74] sm:$0xf0]  ;;  %v4511_v0 = vld [vmem:[%s6507_s4 + $0x264] sm:$0xf] }
 0x23b   : > { %v2464_v25 = vor.u32 %v2463_v2, %v2462_v17  ;;  %v1969_v46 = vsel %vm5015_vm4, %v1964_v10, %v1968_v51  ;;  %v2322_v47 = vunpack.c.l.b16 %v2292_v21  ;;  %v4174_v17 = vor.u32 %v4513_v44, %v4171_v8  ;;  %v4163_v35 = vld [vmem:[%s6507_s4 + $0x268] sm:$0xf0]  ;;  %v4447_v10 = vld [vmem:[%s6507_s4 + $0x64] sm:$0xf]  ;;  %v4510_v21 = vld [vmem:[%s6507_s4 + $0x254] sm:$0xf0] }
 0x23c   : > { %v2029_v48 = vunpack.c.l.b16 %v1969_v46  ;;  %2768 = vmatpush.bf16.msra.mxu0 %v4170_v9  ;;  %v4505_v9 = vld [vmem:[%s6507_s4 + $0x234] sm:$0xf] }
 0x23d   : > { %v2465_v33 = vsel %vm5209_vm7, %v2459_v59, %v2464_v25  ;;  %v3923_v25 = vld [vmem:[%s6507_s4 + $0x78] sm:$0xf0]  ;;  %2787 = vmatpush.bf16.msra.mxu1 %v4174_v17 }
 0x23e   : > { %v2513_v40 = vunpack.c.l.b16 %v2465_v33  ;;  %v4444_v33 = vld [vmem:[%s6507_s4 + $0x44] sm:$0xf0] }
 0x241   : > { %v1875_v24 = vpop.f32.mrf.mxu3 }
 0x242   : > { %v1934_v58 = vpack.c.bf16 %v1875_v24, %v1875_v24 }
 0x244   : > { %v1971_v23 = vshrl.u32 %v1934_v58, 16  ;;  %v1974_v56 = vshll.u32 %v1934_v58, 16  ;;  %v2160_v19 = vunpack.c.l.b16 %v1934_v58  ;;  %v3928_v18 = vrot.slane %v1934_v58, 9 }
 0x245   : > { %v4092_v22 = vrot.slane %v1934_v58, 10  ;;  %v3921_v58 = vld [vmem:[%s6507_s4 + $0x70] sm:$0xf] }
 0x246   : > { %v1973_v1 = vrot.slane %v1971_v23, 4  ;;  %v1976_v15 = vrot.slane %v1974_v56, 5  ;;  %v2466_v3 = vrot.slane %v1971_v23, 5  ;;  %v2467_v7 = vrot.slane %v1974_v56, 6  ;;  %v4512_v23 = vld [vmem:[%s6507_s4 + $0x264] sm:$0xf0] }
 0x247   : > { %v5915_v55 = vpack.c.b16 %v2160_v19, %v2159_v13  ;;  %v3922_v13 = vor.u32 %v4450_v30, %v3921_v58  ;;  %v3926_v56 = vor.u32 %v4449_v5, %v3923_v25  ;;  %v4162_v19 = vor.u32 %v4512_v23, %v4161_v14  ;;  %v3889_v58 = vld [vmem:[%s6507_s4 + $0x30] sm:$0xf]  ;;  %v4442_v30 = vld [vmem:[%s6507_s4 + $0x34] sm:$0xf0]  ;;  %v4441_v5 = vld [vmem:[%s6507_s4 + $0x34] sm:$0xf] }
 0x248   : > { %v1977_v28 = vor.u32 %v1976_v15, %v1973_v1  ;;  %v2468_v43 = vor.u32 %v2467_v7, %v2466_v3  ;;  %v4166_v15 = vor.u32 %v4511_v0, %v4163_v35  ;;  %v3913_v3 = vld [vmem:[%s6507_s4 + $0x60] sm:$0xf]  ;;  %v4448_v7 = vld [vmem:[%s6507_s4 + $0x64] sm:$0xf0]  ;;  %v4503_v23 = vld [vmem:[%s6507_s4 + $0x224] sm:$0xf] }
 0x249   : > { %v1877_v53 = vpop.f32.mrf.mxu3  ;;  %2247 = vmatpush.bf16.msrb.mxu2 %v3922_v13  ;;  %2266 = vmatpush.bf16.msrb.mxu3 %v3926_v56  ;;  %v3914_v51 = vor.u32 %v4448_v7, %v3913_v3  ;;  %v3891_v13 = vld [vmem:[%s6507_s4 + $0x38] sm:$0xf0]  ;;  %v4129_v25 = vld [vmem:[%s6507_s4 + $0x220] sm:$0xf]  ;;  %v4504_v14 = vld [vmem:[%s6507_s4 + $0x224] sm:$0xf0] }
 0x24a   : > { %v1935_v45 = vpack.c.bf16 %v1877_v53, %v1877_v53  ;;  %v1978_v39 = vrot.slane %v1977_v28, 4  ;;  %v2469_v57 = vrot.slane %v2468_v43, 4  ;;  %2769 = vmatpush.bf16.msra.mxu0 %v4162_v19  ;;  %v3915_v28 = vld [vmem:[%s6507_s4 + $0x68] sm:$0xf0]  ;;  %2788 = vmatpush.bf16.msra.mxu1 %v4166_v15  ;;  %v3894_v56 = vor.u32 %v4441_v5, %v3891_v13  ;;  %v3881_v35 = vld [vmem:[%s6507_s4 + $0x20] sm:$0xf] }
 0x24b   : > { %v3918_v53 = vor.u32 %v4447_v10, %v3915_v28  ;;  %v4130_v19 = vor.u32 %v4504_v14, %v4129_v25  ;;  %v4131_v0 = vld [vmem:[%s6507_s4 + $0x228] sm:$0xf0]  ;;  %v4440_v15 = vld [vmem:[%s6507_s4 + $0x24] sm:$0xf0]  ;;  %v4439_v10 = vld [vmem:[%s6507_s4 + $0x24] sm:$0xf] }
 0x24c   : > { %v1980_v16 = vshll.u32 %v1935_v45, 16  ;;  %v2295_v29 = vrot.slane %v1935_v45, 5  ;;  %v2470_v32 = vshrl.u32 %v1935_v45, 16  ;;  %v2653_v49 = vrot.slane %v1935_v45, 6  ;;  %v4509_v45 = vld [vmem:[%s6507_s4 + $0x254] sm:$0xf] }
 0x24d   : > { %2248 = vmatpush.bf16.msrb.mxu2 %v3914_v51  ;;  %2267 = vmatpush.bf16.msrb.mxu3 %v3918_v53  ;;  %v4134_v3 = vor.u32 %v4503_v23, %v4131_v0  ;;  %v3882_v7 = vor.u32 %v4440_v15, %v3881_v35  ;;  %v3883_v51 = vld [vmem:[%s6507_s4 + $0x28] sm:$0xf0]  ;;  %v4121_v28 = vld [vmem:[%s6507_s4 + $0x210] sm:$0xf]  ;;  %v4502_v53 = vld [vmem:[%s6507_s4 + $0x214] sm:$0xf0] }
 0x24e   : > { %v1982_v52 = vrot.slane %v1980_v16, 5  ;;  %v2296_v61 = vsel %vm5266_vm10, %v3928_v18, %v2295_v29  ;;  %v2472_v20 = vrot.slane %v2470_v32, 5  ;;  %v2473_v11 = vrot.slane %v1980_v16, 6  ;;  %v4153_v18 = vld [vmem:[%s6507_s4 + $0x250] sm:$0xf] }
 0x24f   : > { %v2323_v41 = vunpack.c.l.b16 %v2296_v61  ;;  %v2654_v42 = vsel %vm5469_vm13, %v4092_v22, %v2653_v49  ;;  %v4155_v22 = vld [vmem:[%s6507_s4 + $0x258] sm:$0xf0]  ;;  %v3905_v16 = vld [vmem:[%s6507_s4 + $0x50] sm:$0xf]  ;;  %v4446_v29 = vld [vmem:[%s6507_s4 + $0x54] sm:$0xf0] }
 0x250   : > { %v2474_v34 = vor.u32 %v2473_v11, %v2472_v20  ;;  %v2681_v60 = vunpack.c.l.b16 %v2654_v42  ;;  %v1983_v54 = vsel %vm5015_vm4, %v1978_v39, %v1982_v52  ;;  %v4154_v39 = vor.u32 %v4510_v21, %v4153_v18  ;;  %v4445_v32 = vld [vmem:[%s6507_s4 + $0x54] sm:$0xf]  ;;  %v4145_v61 = vld [vmem:[%s6507_s4 + $0x240] sm:$0xf]  ;;  %v4508_v20 = vld [vmem:[%s6507_s4 + $0x244] sm:$0xf0] }
 0x251   : > { %v2326_v4 = vpack.c.b16 %v2323_v41, %v2322_v47  ;;  %v2030_v50 = vunpack.c.l.b16 %v1983_v54  ;;  %v4158_v46 = vor.u32 %v4509_v45, %v4155_v22  ;;  %v3906_v47 = vor.u32 %v4446_v29, %v3905_v16  ;;  %v4507_v11 = vld [vmem:[%s6507_s4 + $0x244] sm:$0xf]  ;;  %v4147_v42 = vld [vmem:[%s6507_s4 + $0x248] sm:$0xf0]  ;;  %v4501_v18 = vld [vmem:[%s6507_s4 + $0x214] sm:$0xf] }
 0x252   : > { %v5941_v6 = vpack.c.b16 %v2681_v60, %v2680_v27  ;;  %v2475_v24 = vsel %vm5209_vm7, %v2469_v57, %v2474_v34  ;;  %2770 = vmatpush.bf16.msra.mxu0 %v4154_v39  ;;  %v3907_v27 = vld [vmem:[%s6507_s4 + $0x58] sm:$0xf0]  ;;  %v4146_v41 = vor.u32 %v4508_v20, %v4145_v61  ;;  %v4150_v34 = vor.u32 %v4507_v11, %v4147_v42  ;;  %v4443_v54 = vld [vmem:[%s6507_s4 + $0x44] sm:$0xf]  ;;  %v3873_v22 = vld [vmem:[%s6507_s4 + $0x10] sm:$0xf] }
 0x253   : > { %2418 = vmatmul.bf16.vlgmr.msrb.gmra.mxu0 %v2326_v4  ;;  %2437 = vmatmul.bf16.vlgmr.msrb.gmra.mxu1 %v2326_v4  ;;  %v2033_v2 = vpack.c.b16 %v2030_v50, %v2029_v48  ;;  %v2514_v12 = vunpack.c.l.b16 %v2475_v24  ;;  %v3910_v52 = vor.u32 %v4445_v32, %v3907_v27  ;;  %v3897_v48 = vld [vmem:[%s6507_s4 + $0x40] sm:$0xf]  ;;  %v3899_v4 = vld [vmem:[%s6507_s4 + $0x48] sm:$0xf0]  ;;  %v4137_v50 = vld [vmem:[%s6507_s4 + $0x230] sm:$0xf]  ;;  %v4122_v45 = vor.u32 %v4502_v53, %v4121_v28 }
 0x254   : > { %2789 = vmatpush.bf16.msra.mxu1 %v4158_v46  ;;  %2249 = vmatpush.bf16.msrb.mxu2 %v3906_v47  ;;  %v3898_v60 = vor.u32 %v4444_v33, %v3897_v48  ;;  %v3902_v38 = vor.u32 %v4443_v54, %v3899_v4  ;;  %v4139_v24 = vld [vmem:[%s6507_s4 + $0x238] sm:$0xf0]  ;;  %v4438_v46 = vld [vmem:[%s6507_s4 + $0x14] sm:$0xf0]  ;;  %v4437_v16 = vld [vmem:[%s6507_s4 + $0x14] sm:$0xf] }
 0x255   : > { %2125 = vmatmul.bf16.vlgmr.msra.gmra.mxu2 %v2033_v2  ;;  %v5969_v1 = vpack.c.b16 %v2514_v12, %v2513_v40  ;;  %2144 = vmatmul.bf16.vlgmr.msra.gmra.mxu3 %v2033_v2  ;;  %v4506_v40 = vld [vmem:[%s6507_s4 + $0x234] sm:$0xf0]  ;;  %v4142_v2 = vor.u32 %v4505_v9, %v4139_v24  ;;  %v3890_v12 = vor.u32 %v4442_v30, %v3889_v58  ;;  %v4123_v21 = vld [vmem:[%s6507_s4 + $0x218] sm:$0xf0]  ;;  %v4113_v27 = vld [vmem:[%s6507_s4 + $0x200] sm:$0xf] }
 0x256   : > { %2268 = vmatpush.bf16.msrb.mxu3 %v3910_v52  ;;  %2771 = vmatpush.bf16.msra.mxu0 %v4146_v41  ;;  %v4138_v8 = vor.u32 %v4506_v40, %v4137_v50  ;;  %v4126_v39 = vor.u32 %v4501_v18, %v4123_v21  ;;  %v3874_v32 = vor.u32 %v4438_v46, %v3873_v22  ;;  %v3875_v47 = vld [vmem:[%s6507_s4 + $0x18] sm:$0xf0]  ;;  %v4500_v52 = vld [vmem:[%s6507_s4 + $0x204] sm:$0xf0]  ;;  %v4499_v61 = vld [vmem:[%s6507_s4 + $0x204] sm:$0xf] }
 0x257   : > { %v4115_v20 = vld [vmem:[%s6507_s4 + $0x208] sm:$0xf0]  ;;  %v3865_v11 = vld [vmem:[%s6507_s4] sm:$0xf]  ;;  %v3878_v41 = vor.u32 %v4437_v16, %v3875_v47  ;;  %v4114_v42 = vor.u32 %v4500_v52, %v4113_v27  ;;  %v4436_v48 = vld [vmem:[%s6507_s4 + $0x4] sm:$0xf0] }
 0x258   : > { %2790 = vmatpush.bf16.msra.mxu1 %v4150_v34  ;;  %2250 = vmatpush.bf16.msrb.mxu2 %v3898_v60  ;;  %v4118_v34 = vor.u32 %v4499_v61, %v4115_v20  ;;  %v4435_v60 = vld [vmem:[%s6507_s4 + $0x4] sm:$0xf]  ;;  %v3867_v54 = vld [vmem:[%s6507_s4 + $0x8] sm:$0xf0]  ;;  %v3866_v4 = vor.u32 %v4436_v48, %v3865_v11  ;;  %v4497_v30 = vld [vmem:[%s6507_s4 + $0x1f4] sm:$0xf] }
 0x259   : > { %v1901_v43 = vpop.f32.mrf.mxu2  ;;  %v3870_v9 = vor.u32 %v4435_v60, %v3867_v54  ;;  %v4087_v14 = vld [vmem:[%s6507_s4 + $0x1f8] sm:$0xf0]  ;;  %v4495_v0 = vld [vmem:[%s6507_s4 + $0x1e4] sm:$0xf]  ;;  %v4069_v53 = vld [vmem:[%s6507_s4 + $0x1d0] sm:$0xf] }
 0x25a   : > { %v5992_v59 = vpack.c.bf16 %v1901_v43, %v1901_v43  ;;  %2269 = vmatpush.bf16.msrb.mxu3 %v3902_v38  ;;  %2772 = vmatpush.bf16.msra.mxu0 %v4138_v8  ;;  %v3886_v43 = vor.u32 %v4439_v10, %v3883_v51  ;;  %v4090_v23 = vor.u32 %v4497_v30, %v4087_v14  ;;  %v4079_v10 = vld [vmem:[%s6507_s4 + $0x1e8] sm:$0xf0]  ;;  %v4494_v18 = vld [vmem:[%s6507_s4 + $0x1d4] sm:$0xf0]  ;;  %v4061_v61 = vld [vmem:[%s6507_s4 + $0x1c0] sm:$0xf] }
 0x25b   : > { %v4070_v52 = vor.u32 %v4494_v18, %v4069_v53  ;;  %v4492_v20 = vld [vmem:[%s6507_s4 + $0x1c4] sm:$0xf0]  ;;  %v4047_v53 = vld [vmem:[%s6507_s4 + $0x1a8] sm:$0xf0] }
 0x25c   : > { %v1985_v49 = vshrl.u32 %v5992_v59, 16  ;;  %v1988_v57 = vshll.u32 %v5992_v59, 16  ;;  %2791 = vmatpush.bf16.msra.mxu1 %v4142_v2  ;;  %2251 = vmatpush.bf16.msrb.mxu2 %v3890_v12  ;;  %v3929_v58 = vrot.slane %v5992_v59, 9 }
 0x25e   : > { %v6037_v62 = vrot.slane %v1985_v49, 5  ;;  %v6041_v44 = vrot.slane %v1988_v57, 6  ;;  %2270 = vmatpush.bf16.msrb.mxu3 %v3894_v56  ;;  %2773 = vmatpush.bf16.msra.mxu0 %v4130_v19  ;;  %v1987_v38 = vrot.slane %v1985_v49, 4  ;;  %v1990_v50 = vrot.slane %v1988_v57, 5  ;;  %v4085_v49 = vld [vmem:[%s6507_s4 + $0x1f0] sm:$0xf] }
 0x25f   : > { %v4498_v57 = vld [vmem:[%s6507_s4 + $0x1f4] sm:$0xf0]  ;;  %v4077_v56 = vld [vmem:[%s6507_s4 + $0x1e0] sm:$0xf]  ;;  %v4496_v19 = vld [vmem:[%s6507_s4 + $0x1e4] sm:$0xf0] }
 0x260   : > { %v2478_v17 = vor.u32 %v6041_v44, %v6037_v62  ;;  %2792 = vmatpush.bf16.msra.mxu1 %v4134_v3  ;;  %2252 = vmatpush.bf16.msrb.mxu2 %v3882_v7  ;;  %v1991_v13 = vor.u32 %v1990_v50, %v1987_v38  ;;  %v4086_v25 = vor.u32 %v4498_v57, %v4085_v49  ;;  %v4491_v62 = vld [vmem:[%s6507_s4 + $0x1c4] sm:$0xf]  ;;  %v4063_v44 = vld [vmem:[%s6507_s4 + $0x1c8] sm:$0xf0] }
 0x261   : > { %v1903_v29 = vpop.f32.mrf.mxu2  ;;  %v4078_v7 = vor.u32 %v4496_v19, %v4077_v56 }
 0x262   : > { %2271 = vmatpush.bf16.msrb.mxu3 %v3886_v43  ;;  %2774 = vmatpush.bf16.msra.mxu0 %v4122_v45  ;;  %v6135_v33 = vpack.c.bf16 %v1903_v29, %v1903_v29  ;;  %v4082_v43 = vor.u32 %v4495_v0, %v4079_v10  ;;  %v1992_v21 = vrot.slane %v1991_v13, 4  ;;  %v4493_v45 = vld [vmem:[%s6507_s4 + $0x1d4] sm:$0xf]  ;;  %v4045_v10 = vld [vmem:[%s6507_s4 + $0x1a0] sm:$0xf] }
 0x264   : > { %2793 = vmatpush.bf16.msra.mxu1 %v4126_v39  ;;  %2253 = vmatpush.bf16.msrb.mxu2 %v3874_v32  ;;  %v1994_v24 = vshll.u32 %v6135_v33, 16  ;;  %v2480_v2 = vshrl.u32 %v6135_v33, 16  ;;  %v2299_v35 = vrot.slane %v6135_v33, 5  ;;  %v4071_v39 = vld [vmem:[%s6507_s4 + $0x1d8] sm:$0xf0] }
 0x265   : > { %v4074_v11 = vor.u32 %v4493_v45, %v4071_v39  ;;  %v4037_v45 = vld [vmem:[%s6507_s4 + $0x190] sm:$0xf]  ;;  %v4486_v39 = vld [vmem:[%s6507_s4 + $0x194] sm:$0xf0] }
 0x266   : > { %2272 = vmatpush.bf16.msrb.mxu3 %v3878_v41  ;;  %2775 = vmatpush.bf16.msra.mxu0 %v4114_v42  ;;  %v2482_v51 = vrot.slane %v2480_v2, 5  ;;  %v2483_v28 = vrot.slane %v1994_v24, 6  ;;  %v1996_v22 = vrot.slane %v1994_v24, 5  ;;  %v2300_v27 = vsel %vm5266_vm10, %v3929_v58, %v2299_v35  ;;  %v4490_v35 = vld [vmem:[%s6507_s4 + $0x1b4] sm:$0xf0] }
 0x267   : > { %v2479_v41 = vrot.slane %v2478_v17, 4  ;;  %v2324_v58 = vunpack.c.l.b16 %v2300_v27  ;;  %v4484_v27 = vld [vmem:[%s6507_s4 + $0x184] sm:$0xf0] }
 0x268   : > { %2794 = vmatpush.bf16.msra.mxu1 %v4118_v34  ;;  %2254 = vmatpush.bf16.msrb.mxu2 %v3866_v4  ;;  %v2484_v42 = vor.u32 %v2483_v28, %v2482_v51  ;;  %v1997_v38 = vsel %vm5015_vm4, %v1992_v21, %v1996_v22  ;;  %v4488_v51 = vld [vmem:[%s6507_s4 + $0x1a4] sm:$0xf0]  ;;  %v4485_v22 = vld [vmem:[%s6507_s4 + $0x194] sm:$0xf] }
 0x269   : > { %v2031_v14 = vunpack.c.l.b16 %v1997_v38  ;;  %v4046_v18 = vor.u32 %v4488_v51, %v4045_v10  ;;  %v2161_v38 = vunpack.c.l.b16 %v5992_v59 }
 0x26a   : > { %2273 = vmatpush.bf16.msrb.mxu3 %v3870_v9  ;;  %v2485_v57 = vsel %vm5209_vm7, %v2479_v41, %v2484_v42  ;;  %v2657_v42 = vrot.slane %v6135_v33, 6 }
 0x26b   : > { %v2515_v19 = vunpack.c.l.b16 %v2485_v57 }
 0x26c   : > { %2601 = vmatpush.bf16.msra.mxu2 %v4086_v25 }
 0x26e   : > { %2620 = vmatpush.bf16.msra.mxu3 %v4090_v23 }
 0x270   : > { %2602 = vmatpush.bf16.msra.mxu2 %v4078_v7  ;;  %v4055_v7 = vld [vmem:[%s6507_s4 + $0x1b8] sm:$0xf0] }
 0x271   : > { %v1927_v40 = vpop.f32.mrf.mxu3  ;;  %v4058_v28 = vor.u32 %v4489_v63, %v4055_v7  ;;  %v2814_v63 = vld [vmem:[%s6508_s5] sm:$0x3] }
 0x272   : > { %v6147_v8 = vpack.c.bf16 %v1927_v40, %v1927_v40  ;;  %2621 = vmatpush.bf16.msra.mxu3 %v4082_v43  ;;  %v4062_v40 = vor.u32 %v4492_v20, %v4061_v61  ;;  %v4487_v43 = vld [vmem:[%s6507_s4 + $0x1a4] sm:$0xf]  ;;  %v4031_v61 = vld [vmem:[%s6507_s4 + $0x188] sm:$0xf0] }
 0x273   : > { %v4050_v21 = vor.u32 %v4487_v43, %v4047_v53  ;;  %v6301_v53 = vperm.slane %v2814_v63, 1 }
 0x274   : > { %v1999_v5 = vshrl.u32 %v6147_v8, 16  ;;  %v2002_v12 = vshll.u32 %v6147_v8, 16  ;;  %v3930_v4 = vrot.slane %v6147_v8, 9  ;;  %2603 = vmatpush.bf16.msra.mxu2 %v4070_v52  ;;  %v4483_v52 = vld [vmem:[%s6507_s4 + $0x184] sm:$0xf] }
 0x276   : > { %v2001_v15 = vrot.slane %v1999_v5, 4  ;;  %v2004_v3 = vrot.slane %v2002_v12, 5  ;;  %v2486_v29 = vrot.slane %v1999_v5, 5  ;;  %v2487_v32 = vrot.slane %v2002_v12, 6  ;;  %2622 = vmatpush.bf16.msra.mxu3 %v4074_v11 }
 0x277   : > { %v4066_v5 = vor.u32 %v4491_v62, %v4063_v44  ;;  %v4034_v11 = vor.u32 %v4483_v52, %v4031_v61 }
 0x278   : > { %v2005_v16 = vor.u32 %v2004_v3, %v2001_v15  ;;  %v2488_v48 = vor.u32 %v2487_v32, %v2486_v29  ;;  %2604 = vmatpush.bf16.msra.mxu2 %v4062_v40  ;;  %v4054_v3 = vor.u32 %v4490_v35, %v4053_v36  ;;  %v4029_v32 = vld [vmem:[%s6507_s4 + $0x180] sm:$0xf] }
 0x279   : > { %v1929_v46 = vpop.f32.mrf.mxu3  ;;  %v4030_v20 = vor.u32 %v4484_v27, %v4029_v32 }
 0x27a   : > { %v6191_v47 = vpack.c.bf16 %v1929_v46, %v1929_v46  ;;  %v2006_v50 = vrot.slane %v2005_v16, 4  ;;  %v2489_v12 = vrot.slane %v2488_v48, 4  ;;  %2623 = vmatpush.bf16.msra.mxu3 %v4066_v5  ;;  %v4039_v46 = vld [vmem:[%s6507_s4 + $0x198] sm:$0xf0]  ;;  %v4038_v16 = vor.u32 %v4486_v39, %v4037_v45 }
 0x27b   : > { %v4042_v29 = vor.u32 %v4485_v22, %v4039_v46  ;;  %v4093_v48 = vrot.slane %v5992_v59, 10 }
 0x27c   : > { %v2008_v34 = vshll.u32 %v6191_v47, 16  ;;  %v2303_v60 = vrot.slane %v6191_v47, 5  ;;  %v2490_v54 = vshrl.u32 %v6191_v47, 16  ;;  %2605 = vmatpush.bf16.msra.mxu2 %v4054_v3  ;;  %v2661_v41 = vrot.slane %v6191_v47, 6 }
 0x27e   : > { %v2010_v17 = vrot.slane %v2008_v34, 5  ;;  %v2492_v9 = vrot.slane %v2490_v54, 5  ;;  %v2493_v24 = vrot.slane %v2008_v34, 6  ;;  %v2304_v2 = vsel %vm5266_vm10, %v3930_v4, %v2303_v60  ;;  %2624 = vmatpush.bf16.msra.mxu3 %v4058_v28 }
 0x27f   : > { %v2325_v49 = vunpack.c.l.b16 %v2304_v2  ;;  %v4094_v34 = vrot.slane %v6147_v8, 10  ;;  %v6299_v28 = vperm.slane %v2814_v63, 0 }
 0x280   : > { %v2011_v30 = vsel %vm5015_vm4, %v2006_v50, %v2010_v17  ;;  %v2494_v13 = vor.u32 %v2493_v24, %v2492_v9  ;;  %2606 = vmatpush.bf16.msra.mxu2 %v4046_v18  ;;  %vm3013_vm4 = vcmask 1043459  }
 0x281   : > { %v2327_v25 = vpack.c.b16 %v2325_v49, %v2324_v58  ;;  %v2032_v23 = vunpack.c.l.b16 %v2011_v30  ;;  %v2662_v60 = vsel %vm5469_vm13, %v4094_v34, %v2661_v41 }
 0x282   : > { %v2495_v31 = vsel %vm5209_vm7, %v2489_v12, %v2494_v13  ;;  %2625 = vmatpush.bf16.msra.mxu3 %v4050_v21  ;;  %v2683_v54 = vunpack.c.l.b16 %v2662_v60 }
 0x283   : > { %2423 = vmatmul.bf16.gmra.mxu0 %v2327_v25  ;;  %2442 = vmatmul.bf16.gmra.mxu1 %v2327_v25  ;;  %v2034_v56 = vpack.c.b16 %v2032_v23, %v2031_v14  ;;  %v2516_v0 = vunpack.c.l.b16 %v2495_v31 }
 0x284   : > { %2607 = vmatpush.bf16.msra.mxu2 %v4038_v16 }
 0x285   : > { %2130 = vmatmul.bf16.gmra.mxu2 %v2034_v56  ;;  %2149 = vmatmul.bf16.gmra.mxu3 %v2034_v56  ;;  %v2518_v15 = vpack.c.b16 %v2516_v0, %v2515_v19 }
 0x286   : > { %2626 = vmatpush.bf16.msra.mxu3 %v4042_v29 }
 0x288   : > { %2608 = vmatpush.bf16.msra.mxu2 %v4030_v20 }
 0x28a   : > { %2627 = vmatpush.bf16.msra.mxu3 %v4034_v11 }
 0x293   : > { %2776 = vmatmul.bf16.vlgmr.msra.gmra.mxu0 %v5941_v6  ;;  %2795 = vmatmul.bf16.vlgmr.msra.gmra.mxu1 %v5941_v6  ;;  %v2658_v6 = vsel %vm5469_vm13, %v4093_v48, %v2657_v42 }
 0x294   : > { %v2682_v4 = vunpack.c.l.b16 %v2658_v6 }
 0x295   : > { %2255 = vmatmul.bf16.vlgmr.msrb.gmra.mxu2 %v5915_v55  ;;  %2274 = vmatmul.bf16.vlgmr.msrb.gmra.mxu3 %v5915_v55  ;;  %v2162_v55 = vunpack.c.l.b16 %v6147_v8 }
 0x296   : > { %v2685_v47 = vpack.c.b16 %v2683_v54, %v2682_v4 }
 0x297   : > { %v2164_v33 = vpack.c.b16 %v2162_v55, %v2161_v38 }
 0x2a3   : > { %2781 = vmatmul.bf16.gmra.mxu0 %v2685_v47  ;;  %2800 = vmatmul.bf16.gmra.mxu1 %v2685_v47 }
 0x2a5   : > { %2260 = vmatmul.bf16.gmra.mxu2 %v2164_v33  ;;  %2279 = vmatmul.bf16.gmra.mxu3 %v2164_v33 }
 0x2b5   : > { %2609 = vmatmul.bf16.vlgmr.msra.gmra.mxu2 %v5969_v1  ;;  %2628 = vmatmul.bf16.vlgmr.msra.gmra.mxu3 %v5969_v1 }
 0x2c5   : > { %2614 = vmatmul.bf16.gmra.mxu2 %v2518_v15  ;;  %2633 = vmatmul.bf16.gmra.mxu3 %v2518_v15 }
 0x2d0   : > { %v2419_v17 = vpop.f32.mrf.mxu0  ;;  %v2438_v8 = vpop.f32.mrf.mxu1 }
 0x2d8   : > { %v2126_v37 = vpop.f32.mrf.mxu2  ;;  %v2145_v50 = vpop.f32.mrf.mxu3 }
 0x2d9   : > { %v2421_v2 = vpop.f32.mrf.mxu0  ;;  %v2440_v58 = vpop.f32.mrf.mxu1 }
 0x2e0   : > { %v2128_v40 = vpop.f32.mrf.mxu2  ;;  %v2147_v62 = vpop.f32.mrf.mxu3 }
 0x300   : > { %v2424_v30 = vpop.f32.mrf.mxu0  ;;  %v2443_v1 = vpop.f32.mrf.mxu1 }
 0x308   : > { %v2131_v44 = vpop.f32.mrf.mxu2  ;;  %v2150_v59 = vpop.f32.mrf.mxu3 }
 0x309   : > { %v6292_v14 = vpop.f32.mrf.mxu0  ;;  %v6294_v23 = vpop.f32.mrf.mxu1 }
 0x310   : > { %v6288_v9 = vpop.f32.mrf.mxu2  ;;  %v6290_v24 = vpop.f32.mrf.mxu3 }
 0x311   : > { %v2777_v19 = vpop.f32.mrf.mxu0  ;;  %v2796_v0 = vpop.f32.mrf.mxu1 }
 0x318   : > { %v2256_v49 = vpop.f32.mrf.mxu2  ;;  %v2275_v57 = vpop.f32.mrf.mxu3 }
 0x319   : > { %v2257_v36 = vadd.f32 %v2256_v49, %v2126_v37  ;;  %v2276_v35 = vadd.f32 %v2275_v57, %v2145_v50  ;;  %v2779_v22 = vpop.f32.mrf.mxu0  ;;  %v2798_v46 = vpop.f32.mrf.mxu1 }
 0x31b   : > { %v2448_v15 = vadd.f32 %v2419_v17, %v2257_v36  ;;  %v2449_v3 = vadd.f32 %v2438_v8, %v2276_v35 }
 0x320   : > { %v2258_v5 = vpop.f32.mrf.mxu2  ;;  %v2277_v12 = vpop.f32.mrf.mxu3 }
 0x321   : > { %v2259_v18 = vadd.f32 %v2258_v5, %v2128_v40  ;;  %v2278_v21 = vadd.f32 %v2277_v12, %v2147_v62  ;;  %v2782_v55 = vpop.f32.mrf.mxu0  ;;  %v2801_v47 = vpop.f32.mrf.mxu1 }
 0x323   : > { %v2450_v52 = vadd.f32 %v2421_v2, %v2259_v18  ;;  %v2451_v61 = vadd.f32 %v2440_v58, %v2278_v21 }
 0x328   : > { %v2261_v13 = vpop.f32.mrf.mxu2  ;;  %v2280_v25 = vpop.f32.mrf.mxu3 }
 0x329   : > { %v2262_v48 = vadd.f32 %v2261_v13, %v2131_v44  ;;  %v2281_v34 = vadd.f32 %v2280_v25, %v2150_v59  ;;  %v2803_v18 = vpop.f32.mrf.mxu1 }
 0x32b   : > { %v2452_v50 = vadd.f32 %v2424_v30, %v2262_v48  ;;  %v2453_v40 = vadd.f32 %v2443_v1, %v2281_v34  ;;  %v2880_v48 = vld [vmem:[%s6509_s6] sm:$0x3]  ;;  %v4529_v34 = vld [vmem:[%s6510_s7 + $0x70] sm:$0xff] }
 0x330   : > { %v2263_v31 = vpop.f32.mrf.mxu2  ;;  %v2282_v56 = vpop.f32.mrf.mxu3 }
 0x331   : > { %v2264_v49 = vadd.f32 %v2263_v31, %v6288_v9  ;;  %v2283_v5 = vadd.f32 %v2282_v56, %v6290_v24 }
 0x333   : > { %v2455_v9 = vadd.f32 %v6294_v23, %v2283_v5 }
 0x338   : > { %v2610_v7 = vpop.f32.mrf.mxu2  ;;  %v2629_v10 = vpop.f32.mrf.mxu3 }
 0x339   : > { %v2639_v51 = vadd.f32 %v2610_v7, %v2448_v15  ;;  %v2640_v43 = vadd.f32 %v2629_v10, %v2449_v3 }
 0x33b   : > { %v2806_v45 = vadd.f32 %v2777_v19, %v2639_v51  ;;  %v2807_v39 = vadd.f32 %v2796_v0, %v2640_v43  ;;  %v2454_v0 = vadd.f32 %v6292_v14, %v2264_v49  ;;  %v2784_v43 = vpop.f32.mrf.mxu0  ;;  %v4520_v49 = vld [vmem:[%s6510_s7 + $0x28] sm:$0xff] }
 0x33d   : > { %v2820_v16 = vadd.f32 %v6299_v28, %v2806_v45  ;;  %v2821_v29 = vadd.f32 %v6301_v53, %v2807_v39 }
 0x33f   : > { %v2828_v32 = vmul.f32 0.5, %v2820_v16  ;;  %v2829_v27 = vmul.f32 0.5, %v2821_v29 }
 0x340   : > { %v2612_v20 = vpop.f32.mrf.mxu2  ;;  %v2631_v11 = vpop.f32.mrf.mxu3 }
 0x341   : > { %4663 = vtanh.f32 %v2828_v32  ;;  %v2641_v41 = vadd.f32 %v2612_v20, %v2450_v52  ;;  %v2642_v42 = vadd.f32 %v2631_v11, %v2451_v61  ;;  %v4530_v32 = vld [vmem:[%s6510_s7 + $0x78] sm:$0xff] }
 0x342   : > { %4665 = vtanh.f32 %v2829_v27 }
 0x343   : > { %v2808_v60 = vadd.f32 %v2779_v22, %v2641_v41  ;;  %v2809_v6 = vadd.f32 %v2798_v46, %v2642_v42 }
 0x345   : > { %v2822_v54 = vadd.f32 %v6299_v28, %v2808_v60  ;;  %v2823_v4 = vadd.f32 %v6301_v53, %v2809_v6 }
 0x347   : > { %v4664_v38 = vpop.eup %4663  ;;  %v2830_v33 = vmul.f32 0.5, %v2822_v54  ;;  %v2831_v37 = vmul.f32 0.5, %v2823_v4  ;;  %v4522_v4 = vld [vmem:[%s6510_s7 + $0x38] sm:$0xff] }
 0x348   : > { %v4666_v62 = vpop.eup %4665  ;;  %v2844_v17 = vadd.f32 1.0, %v4664_v38  ;;  %v2615_v8 = vpop.f32.mrf.mxu2 }
 0x349   : > { %v2634_v2 = vpop.f32.mrf.mxu3  ;;  %v2845_v58 = vadd.f32 1.0, %v4666_v62  ;;  %4667 = vtanh.f32 %v2830_v33  ;;  %v2643_v44 = vadd.f32 %v2615_v8, %v2452_v50  ;;  %v4521_v62 = vld [vmem:[%s6510_s7 + $0x30] sm:$0xff] }
 0x34a   : > { %v2644_v59 = vadd.f32 %v2634_v2, %v2453_v40  ;;  %v2852_v57 = vmul.f32 0.5, %v2844_v17  ;;  %4669 = vtanh.f32 %v2831_v37  ;;  %v4527_v2 = vld [vmem:[%s6510_s7 + $0x60] sm:$0xff] }
 0x34b   : > { %v2853_v12 = vmul.f32 0.5, %v2845_v58  ;;  %v2810_v13 = vadd.f32 %v2782_v55, %v2643_v44 }
 0x34c   : > { %v2811_v25 = vadd.f32 %v2801_v47, %v2644_v59  ;;  %v4528_v47 = vld [vmem:[%s6510_s7 + $0x68] sm:$0xff] }
 0x34d   : > { %v2860_v19 = vmax.f32 %v2852_v57, %v2853_v12  ;;  %v2824_v30 = vadd.f32 %v6299_v28, %v2810_v13  ;;  %v4538_v57 = vld [vmem:[%s6510_s7 + $0xb8] sm:$0xff] }
 0x34e   : > { %v2825_v1 = vadd.f32 %v6301_v53, %v2811_v25  ;;  %v4526_v13 = vld [vmem:[%s6510_s7 + $0x58] sm:$0xff] }
 0x34f   : > { %v4668_v36 = vpop.eup %4667  ;;  %v2868_v35 = vrot.slane %v2860_v19, 1  ;;  %v2832_v63 = vmul.f32 0.5, %v2824_v30  ;;  %v4537_v30 = vld [vmem:[%s6510_s7 + $0xb0] sm:$0xff] }
 0x350   : > { %v2833_v15 = vmul.f32 0.5, %v2825_v1  ;;  %v4670_v31 = vpop.eup %4669  ;;  %v2846_v3 = vadd.f32 1.0, %v4668_v36  ;;  %v2617_v7 = vpop.f32.mrf.mxu2  ;;  %v4546_v36 = vld [vmem:[%s6510_s7 + $0xf8] sm:$0xff] }
 0x351   : > { %v2636_v24 = vpop.f32.mrf.mxu3  ;;  %v2847_v56 = vadd.f32 1.0, %v4670_v31  ;;  %4671 = vtanh.f32 %v2832_v63  ;;  %v2645_v10 = vadd.f32 %v2617_v7, %v2454_v0  ;;  %v2876_v45 = vmax.f32 %v2860_v19, %v2868_v35  ;;  %v4519_v19 = vld [vmem:[%s6510_s7 + $0x20] sm:$0xff]  ;;  %v4518_v35 = vld [vmem:[%s6510_s7 + $0x18] sm:$0xff]  ;;  %v4544_v31 = vld [vmem:[%s6510_s7 + $0xe8] sm:$0xff] }
 0x352   : > { %v2646_v51 = vadd.f32 %v2636_v24, %v2455_v9  ;;  %v2854_v21 = vmul.f32 0.5, %v2846_v3  ;;  %4673 = vtanh.f32 %v2833_v15  ;;  %v4536_v15 = vld [vmem:[%s6510_s7 + $0xa8] sm:$0xff]  ;;  %v4545_v9 = vld [vmem:[%s6510_s7 + $0xf0] sm:$0xff]  ;;  %v4535_v3 = vld [vmem:[%s6510_s7 + $0xa0] sm:$0xff] }
 0x353   : > { %v2855_v14 = vmul.f32 0.5, %v2847_v56  ;;  %v2812_v39 = vadd.f32 %v2784_v43, %v2645_v10  ;;  %v2881_v46 = vpack.c.bf16 %v2876_v45, %v2876_v45  ;;  %v4542_v7 = vld [vmem:[%s6510_s7 + $0xd8] sm:$0xff]  ;;  %v4541_v56 = vld [vmem:[%s6510_s7 + $0xd0] sm:$0xff]  ;;  %v4516_v45 = vld [vmem:[%s6510_s7 + $0x8] sm:$0xff] }
 0x354   : > { %v2813_v22 = vadd.f32 %v2803_v18, %v2646_v51  ;;  %v4534_v24 = vld [vmem:[%s6510_s7 + $0x98] sm:$0xff]  ;;  %v4525_v10 = vld [vmem:[%s6510_s7 + $0x50] sm:$0xff]  ;;  %v4540_v18 = vld [vmem:[%s6510_s7 + $0xc8] sm:$0xff] }
 0x355   : > { %v2861_v16 = vmax.f32 %v2854_v21, %v2855_v14  ;;  %v2826_v23 = vadd.f32 %v6299_v28, %v2812_v39  ;;  %v2890_v27 = vand.u32 %v2881_v46, %v5657_v26  ;;  %v4517_v51 = vld [vmem:[%s6510_s7 + $0x10] sm:$0xff]  ;;  %v4524_v21 = vld [vmem:[%s6510_s7 + $0x48] sm:$0xff]  ;;  %v4523_v39 = vld [vmem:[%s6510_s7 + $0x40] sm:$0xff] }
 0x356   : > { %v2827_v29 = vadd.f32 %v6301_v53, %v2813_v22  ;;  %v4533_v43 = vld [vmem:[%s6510_s7 + $0x90] sm:$0xff]  ;;  %v4532_v14 = vld [vmem:[%s6510_s7 + $0x88] sm:$0xff]  ;;  %v4515_v22 = vld [vmem:[%s6510_s7] sm:$0xff] }
 0x357   : > { %v4672_v52 = vpop.eup %4671  ;;  %v2869_v61 = vrot.slane %v2861_v16, 1  ;;  %v2834_v20 = vmul.f32 0.5, %v2826_v23  ;;  %2899 = vmatpush.bf16.msrb.mxu2 %v2890_v27  ;;  %v4539_v46 = vld [vmem:[%s6510_s7 + $0xc0] sm:$0xff]  ;;  %v3345_v23 = vld [vmem:[%s6512_s9 + $0x38] sm:$0xf] }
 0x358   : > { %v2835_v11 = vmul.f32 0.5, %v2827_v29  ;;  %v4674_v41 = vpop.eup %4673  ;;  %v2848_v42 = vadd.f32 1.0, %v4672_v52  ;;  %v3379_v29 = vunpack.c.l.b16 %v3345_v23 }
 0x359   : > { %v2849_v28 = vadd.f32 1.0, %v4674_v41  ;;  %4675 = vtanh.f32 %v2834_v20  ;;  %v2877_v53 = vmax.f32 %v2861_v16, %v2869_v61  ;;  %v4531_v16 = vld [vmem:[%s6510_s7 + $0x80] sm:$0xff]  ;;  %v4553_v20 = vld [vmem:[%s6512_s9 + $0x30] sm:$0xff] }
 0x35a   : > { %v2856_v60 = vmul.f32 0.5, %v2848_v42  ;;  %4677 = vtanh.f32 %v2835_v11  ;;  %4175 = vmatmul.msk.bf16.vlgmr.msrb.gmra.mxu2 %vm2885_vm1, %v2880_v48  ;;  %v3387_v27 = vpack.c.b16 %v3379_v29, %v3379_v29  ;;  %v4558_v29 = vld [vmem:[#allocation2 + $0x20] sm:$0xff] }
 0x35b   : > { %3065 = vmatpush.bf16.msra.mxu2 %v4530_v32  ;;  %v2857_v6 = vmul.f32 0.5, %v2849_v28  ;;  %v2882_v54 = vpack.c.bf16 %v2877_v53, %v2877_v53 }
 0x35c   : > { %v3400_v61 = vsel %vm1834_vm15, %v3387_v27, 0 }
 0x35d   : > { %v2862_v38 = vmax.f32 %v2856_v60, %v2857_v6  ;;  %v2906_v55 = vand.u32 %v2882_v54, %v5657_v26 }
 0x35f   : > { %3066 = vmatpush.bf16.msra.mxu2 %v4529_v34  ;;  %v4676_v33 = vpop.eup %4675  ;;  %v2870_v37 = vrot.slane %v2862_v38, 1  ;;  %2915 = vmatpush.bf16.msrb.mxu3 %v2906_v55 }
 0x360   : > { %v4678_v50 = vpop.eup %4677  ;;  %v2850_v40 = vadd.f32 1.0, %v4676_v33 }
 0x361   : > { %v2851_v17 = vadd.f32 1.0, %v4678_v50  ;;  %v2878_v8 = vmax.f32 %v2862_v38, %v2870_v37 }
 0x362   : > { %v2858_v58 = vmul.f32 0.5, %v2850_v40  ;;  %4176 = vmatmul.msk.bf16.vlgmr.msrb.gmra.mxu3 %vm2885_vm1, %v2880_v48 }
 0x363   : > { %3134 = vmatpush.bf16.msra.mxu3 %v4522_v4  ;;  %3067 = vmatpush.bf16.msra.mxu2 %v4528_v47  ;;  %v2859_v44 = vmul.f32 0.5, %v2851_v17  ;;  %v2883_v59 = vpack.c.bf16 %v2878_v8, %v2878_v8 }
 0x365   : > { %v2863_v5 = vmax.f32 %v2858_v58, %v2859_v44  ;;  %v2922_v12 = vand.u32 %v2883_v59, %v5657_v26 }
 0x367   : > { %3135 = vmatpush.bf16.msra.mxu3 %v4521_v62  ;;  %3068 = vmatpush.bf16.msra.mxu2 %v4527_v2  ;;  %v2871_v25 = vrot.slane %v2863_v5, 1 }
 0x368   : > { %2931 = vmatpush.bf16.msrb.mxu0 %v2922_v12 }
 0x369   : > { %v2879_v1 = vmax.f32 %v2863_v5, %v2871_v25 }
 0x36b   : > { %3136 = vmatpush.bf16.msra.mxu3 %v4520_v49  ;;  %3069 = vmatpush.bf16.msra.mxu2 %v4526_v13  ;;  %v2884_v0 = vpack.c.bf16 %v2879_v1, %v2879_v1 }
 0x36c   : > { %3220 = vmatpush.bf16.msra.mxu0 %v4538_v57 }
 0x36d   : > { %4177 = vmatmul.msk.bf16.vlgmr.msrb.gmra.mxu0 %vm2885_vm1, %v2880_v48  ;;  %v2938_v63 = vand.u32 %v2884_v0, %v5657_v26  ;;  %v4543_v26 = vld [vmem:[%s6510_s7 + $0xe0] sm:$0xff] }
 0x36f   : > { %3137 = vmatpush.bf16.msra.mxu3 %v4519_v19  ;;  %2947 = vmatpush.bf16.msrb.mxu1 %v2938_v63 }
 0x370   : > { %3221 = vmatpush.bf16.msra.mxu0 %v4537_v30  ;;  %3070 = vmatpush.bf16.msra.mxu2 %v4525_v10  ;;  %v4552_v10 = vld [vmem:[%s6512_s9 + $0x28] sm:$0xff] }
 0x372   : > { %4178 = vmatmul.msk.bf16.vlgmr.msrb.gmra.mxu1 %vm2885_vm1, %v2880_v48 }
 0x373   : > { %3307 = vmatpush.bf16.msra.mxu1 %v4546_v36  ;;  %3138 = vmatpush.bf16.msra.mxu3 %v4518_v35 }
 0x374   : > { %3222 = vmatpush.bf16.msra.mxu0 %v4536_v15  ;;  %3071 = vmatpush.bf16.msra.mxu2 %v4524_v21  ;;  %v4548_v21 = vld [vmem:[%s6512_s9 + $0x8] sm:$0xff] }
 0x377   : > { %3308 = vmatpush.bf16.msra.mxu1 %v4545_v9  ;;  %3139 = vmatpush.bf16.msra.mxu3 %v4517_v51  ;;  %v4551_v51 = vld [vmem:[%s6512_s9 + $0x20] sm:$0xff] }
 0x378   : > { %3223 = vmatpush.bf16.msra.mxu0 %v4535_v3  ;;  %3072 = vmatpush.bf16.msra.mxu2 %v4523_v39  ;;  %v3430_v39 = vld [vmem:[#allocation2 + $0x28] sm:$0x3] }
 0x37b   : > { %3309 = vmatpush.bf16.msra.mxu1 %v4544_v31  ;;  %3140 = vmatpush.bf16.msra.mxu3 %v4516_v45  ;;  %v4547_v45 = vld [vmem:[%s6512_s9] sm:$0xff] }
 0x37c   : > { %3224 = vmatpush.bf16.msra.mxu0 %v4534_v24  ;;  %3402 = vmatpush.bf16.msrb.mxu2 %v3400_v61 }
 0x37f   : > { %3310 = vmatpush.bf16.msra.mxu1 %v4543_v26  ;;  %3141 = vmatpush.bf16.msra.mxu3 %v4515_v22  ;;  %v3456_v22 = vunpack.c.l.b16 %v3430_v39 }
 0x380   : > { %3225 = vmatpush.bf16.msra.mxu0 %v4533_v43  ;;  %3403 = vmatpush.bf16.msrb.mxu2 %v4553_v20  ;;  %v4550_v43 = vld [vmem:[%s6512_s9 + $0x18] sm:$0xff] }
 0x383   : > { %3311 = vmatpush.bf16.msra.mxu1 %v4542_v7 }
 0x384   : > { %3226 = vmatpush.bf16.msra.mxu0 %v4532_v14  ;;  %3404 = vmatpush.bf16.msrb.mxu2 %v4552_v10 }
 0x387   : > { %3312 = vmatpush.bf16.msra.mxu1 %v4541_v56 }
 0x388   : > { %3227 = vmatpush.bf16.msra.mxu0 %v4531_v16  ;;  %3405 = vmatpush.bf16.msrb.mxu2 %v4551_v51  ;;  %v3462_v16 = vpack.c.b16 %v3456_v22, %v3456_v22 }
 0x38a   : > { %v3474_v23 = vsel %vm1396_vm11, %v3462_v16, 0 }
 0x38b   : > { %3313 = vmatpush.bf16.msra.mxu1 %v4540_v18  ;;  %v4549_v18 = vld [vmem:[%s6512_s9 + $0x10] sm:$0xff]  ;;  %3478 = vmatpush.bf16.msrb.mxu3 %v3474_v23 }
 0x38c   : > { %3406 = vmatpush.bf16.msrb.mxu2 %v4550_v43 }
 0x38f   : > { %3314 = vmatpush.bf16.msra.mxu1 %v4539_v46  ;;  %3479 = vmatpush.bf16.msrb.mxu3 %v4558_v29 }
 0x390   : > { %3407 = vmatpush.bf16.msrb.mxu2 %v4549_v18 }
 0x394   : > { %3408 = vmatpush.bf16.msrb.mxu2 %v4548_v21 }
 0x398   : > { %3409 = vmatpush.bf16.msrb.mxu2 %v4547_v45 }
 0x3dd   : > { %v2901_v32 = vpop.f32.mrf.mxu2 }
 0x3de   : > { %v2953_v52 = vpack.c.bf16 %v2901_v32, %v2901_v32 }
 0x3e0   : > { %v2994_v11 = vunpack.c.l.b16 %v2953_v52 }
 0x3e2   : > { %v4195_v53 = vunpack.i.l.s16 %v2994_v11  ;;  %v4612_v11 = vld [vmem:[%s6511_s8] ss:$0 sm:$0xff] }
 0x3e4   : > { %v3251_v4 = vrot.slane %v4195_v53, 3  ;;  %v3006_v33 = vrot.slane %v4195_v53, 1  ;;  %v3164_v37 = vrot.slane %v4195_v53, 2 }
 0x3e5   : > { %v2917_v41 = vpop.f32.mrf.mxu3  ;;  %v2903_v48 = vpop.f32.mrf.mxu2 }
 0x3e6   : > { %v2954_v42 = vpack.c.bf16 %v2917_v41, %v2917_v41 }
 0x3e8   : > { %v2995_v34 = vunpack.c.l.b16 %v2954_v42 }
 0x3ea   : > { %v2933_v28 = vpop.f32.mrf.mxu0  ;;  %v4196_v6 = vunpack.i.l.s16 %v2995_v34 }
 0x3eb   : > { %v2955_v60 = vpack.c.bf16 %v2933_v28, %v2933_v28 }
 0x3ec   : > { %v3252_v38 = vrot.slane %v4196_v6, 2  ;;  %v3078_v17 = vrot.slane %v4196_v6, 7  ;;  %v3165_v8 = vrot.slane %v4196_v6, 1  ;;  %v3008_v5 = vsel %vm3007_vm2, %v4196_v6, %v3006_v33  ;;  %v4554_v33 = vld [vmem:[#allocation2] sm:$0xff] }
 0x3ed   : > { %v2996_v54 = vunpack.c.l.b16 %v2955_v60  ;;  %v2919_v47 = vpop.f32.mrf.mxu3 }
 0x3ee   : > { %v3253_v58 = vsel %vm3007_vm2, %v3252_v38, %v3251_v4  ;;  %v3079_v12 = vsel %vm3007_vm2, %v3078_v17, %v4195_v53  ;;  %v3166_v13 = vsel %vm3007_vm2, %v3165_v8, %v3164_v37  ;;  %v4557_v38 = vld [vmem:[#allocation2 + $0x18] sm:$0xff]  ;;  %v4555_v47 = vld [vmem:[#allocation2 + $0x8] sm:$0xff]  ;;  %v4613_v37 = vld [vmem:[%s6513_s10] ss:$0 sm:$0xff] }
 0x3ef   : > { %v4197_v55 = vunpack.i.l.s16 %v2996_v54  ;;  %v2949_v40 = vpop.f32.mrf.mxu1  ;;  %3480 = vmatpush.bf16.msrb.mxu3 %v4557_v38 }
 0x3f0   : > { %v2956_v2 = vpack.c.bf16 %v2949_v40, %v2949_v40 }
 0x3f1   : > { %v3254_v50 = vrot.slane %v4197_v55, 1  ;;  %v3009_v59 = vrot.slane %v4197_v55, 7  ;;  %v3080_v49 = vrot.slane %v4197_v55, 6  ;;  %v3167_v63 = vsel %vm3010_vm3, %v4197_v55, %v3166_v13  ;;  %v4556_v55 = vld [vmem:[#allocation2 + $0x10] sm:$0xff] }
 0x3f2   : > { %v2935_v62 = vpop.f32.mrf.mxu0  ;;  %v2997_v44 = vunpack.c.l.b16 %v2956_v2 }
 0x3f3   : > { %v3255_v57 = vsel %vm3010_vm3, %v3254_v50, %v3253_v58  ;;  %v3011_v36 = vsel %vm3010_vm3, %v3009_v59, %v3008_v5  ;;  %v3081_v35 = vsel %vm3010_vm3, %v3080_v49, %v3079_v12  ;;  %3481 = vmatpush.bf16.msrb.mxu3 %v4556_v55  ;;  %v4614_v59 = vld [vmem:[%s6515_s12] ss:$0 sm:$0xff] }
 0x3f4   : > { %v4198_v25 = vunpack.i.l.s16 %v2997_v44 }
 0x3f6   : > { %v3012_v19 = vrot.slane %v4198_v25, 6  ;;  %v3082_v30 = vrot.slane %v4198_v25, 5  ;;  %v3168_v1 = vrot.slane %v4198_v25, 7  ;;  %v3256_v0 = vsel %vm3013_vm4, %v4198_v25, %v3255_v57 }
 0x3f7   : > { %v3257_v15 = vpack.c.b16 %v3256_v0, %v3256_v0  ;;  %v2951_v9 = vpop.f32.mrf.mxu1  ;;  %3482 = vmatpush.bf16.msrb.mxu3 %v4555_v47 }
 0x3f8   : > { %v3014_v31 = vsel %vm3013_vm4, %v3012_v19, %v3011_v36  ;;  %v3083_v26 = vsel %vm3013_vm4, %v3082_v30, %v3081_v35  ;;  %v3169_v3 = vsel %vm3013_vm4, %v3168_v1, %v3167_v63 }
 0x3f9   : > { %v3015_v7 = vpack.c.b16 %v3014_v31, %v3014_v31  ;;  %v3084_v24 = vpack.c.b16 %v3083_v26, %v3083_v26  ;;  %v3170_v56 = vpack.c.b16 %v3169_v3, %v3169_v3  ;;  %3315 = vmatmul.bf16.vlgmr.msra.gmra.mxu1 %v3257_v15 }
 0x3fb   : > { %3073 = vmatmul.bf16.vlgmr.msra.gmra.mxu2 %v3015_v7  ;;  %3142 = vmatmul.bf16.vlgmr.msra.gmra.mxu3 %v3084_v24 }
 0x3fc   : > { %3228 = vmatmul.bf16.vlgmr.msra.gmra.mxu0 %v3170_v56  ;;  %3483 = vmatpush.bf16.msrb.mxu3 %v4554_v33 }
 0x476   : > { %v3316_v14 = vpop.f32.mrf.mxu1 }
 0x479   : > { %v3229_v46 = vpop.f32.mrf.mxu0 }
 0x47e   : > { %v3074_v32 = vpop.f32.mrf.mxu2  ;;  %v3143_v27 = vpop.f32.mrf.mxu3 }
 0x47f   : > { %v3144_v52 = vadd.f32 %v3143_v27, %v3074_v32  ;;  %v3318_v61 = vpop.f32.mrf.mxu1 }
 0x481   : > { %v3233_v20 = vadd.f32 %v3229_v46, %v3144_v52  ;;  %v3231_v41 = vpop.f32.mrf.mxu0 }
 0x483   : > { %v3320_v42 = vadd.f32 %v3316_v14, %v3233_v20 }
 0x485   : > { %v3325_v48 = vadd.f32 %v4612_v11, %v3320_v42 }
 0x486   : > { %v3076_v28 = vpop.f32.mrf.mxu2  ;;  %v3145_v53 = vpop.f32.mrf.mxu3 }
 0x487   : > { %v3326_v34 = vmul.f32 0.5, %v3325_v48 }
 0x489   : > { %4679 = vtanh.f32 %v3326_v34 }
 0x48f   : > { %v4680_v60 = vpop.eup %4679 }
 0x490   : > { %v3328_v6 = vadd.f32 1.0, %v4680_v60 }
 0x492   : > { %v3329_v54 = vmul.f32 0.5, %v3328_v6 }
 0x494   : > { %v3330_v4 = vpack.c.bf16 %v3329_v54, %v3329_v54 }
 0x496   : > { %4387 = vmatmul.msk.bf16.vlgmr.msrb.gmra.mxu2 %vm3395_vm5, %v3330_v4 }
 0x519   : > { %v3411_v50 = vpop.f32.mrf.mxu2 }
 0x51a   : > { %v3412_v40 = vadd.f32 %v4613_v37, %v3411_v50 }
 0x51c   : > { %v3415_v62 = vmul.f32 0.5, %v3412_v40 }
 0x51e   : > { %4681 = vtanh.f32 %v3415_v62 }
 0x521   : > { %v3413_v17 = vpop.f32.mrf.mxu2 }
 0x524   : > { %v4682_v8 = vpop.eup %4681 }
 0x525   : > { %v3417_v2 = vadd.f32 1.0, %v4682_v8 }
 0x527   : > { %v3418_v58 = vmul.f32 0.5, %v3417_v2 }
 0x529   : > { %v3419_v44 = vpack.c.bf16 %v3418_v58, %v3418_v58 }
 0x52b   : > { %4408 = vmatmul.msk.bf16.vlgmr.msrb.gmra.mxu3 %vm3468_vm6, %v3419_v44 }
 0x5ae   : > { %v3485_v49 = vpop.f32.mrf.mxu3 }
 0x5af   : > { %v3486_v57 = vadd.f32 %v4614_v59, %v3485_v49 }
 0x5b1   : > { %v3489_v5 = vsel %vm1834_vm15, %v3486_v57, -inf }
 0x5b2   : > { %3490 = vmax.xlane.f32.xlu0 %v3489_v5 }
 0x5b6   : > { %v3487_v12 = vpop.f32.mrf.mxu3 }
 0x625   : > { %v3491_v13 = vpop.xlane.xlu0 %3490 }
 0x626   : > { %v3492_v25 = vsub.f32 %v3486_v57, %v3491_v13 }
 0x628   : > { %v3493_v19 = vmul.f32 1.442695, %v3492_v25 }
 0x62a   : > { %4683 = vpow2.f32 %v3493_v19 }
 0x630   : > { %v4684_v30 = vpop.eup %4683 }
 0x631   : > { %v3495_v1 = vsel %vm1834_vm15, %v4684_v30, 0.0 }
 0x632   : > { %3496 = vadd.xlane.f32.xlu0 %v3495_v1 }
 0x6a5   : > { %v3497_v0 = vpop.xlane.xlu0 %3496 }
 0x6a6   : > { %4685 = vrcp.f32 %v3497_v0  ;;  %v3509_v15 = vand.u32 2147483648, %v3497_v0  ;;  %v3507_v31 = vand.u32 2147483647, %v3497_v0  ;;  %vm3503_vm8 = vweird.f32 %v3497_v0 }
 0x6a8   : > { %v3510_v3 = vor.u32 1.1754944e-38, %v3509_v15  ;;  %vm3508_vm10 = vcmp.eq.f32.partialorder %v3507_v31, 8.507059e+37 }
 0x6ac   : > { %v4686_v36 = vpop.eup %4685 }
 0x6ad   : > { %v3499_v35 = vmul.f32 %v4686_v36, %v3497_v0  ;;  %vm3504_vm7 = vweird.f32 %v4686_v36 }
 0x6ae   : > { %vm3505_vm9 = vmor %vm3503_vm8, %vm3504_vm7 }
 0x6af   : > { %v3500_v63 = vsub.f32 1.0, %v3499_v35 }
 0x6b1   : > { %v3501_v9 = vmul.f32 %v4686_v36, %v3500_v63 }
 0x6b3   : > { %v3502_v26 = vadd.f32 %v4686_v36, %v3501_v9 }
 0x6b5   : > { %v3506_v7 = vsel %vm3505_vm9, %v4686_v36, %v3502_v26 }
 0x6b6   : > { %v3511_v24 = vsel %vm3508_vm10, %v3510_v3, %v3506_v7 }
 0x6b7   : > { %v3512_v56 = vmul.f32 %v4684_v30, %v3511_v24 }
 0x6b9   : > { %3513 = vst [vmem:[%s453_s17] sm:$0xf] %v3512_v56 }
 0x6ba   : > { %4744 = shalt.err (!%p4741_p8)
}
 0x6bb   : > { %4563 = dma.vmem_to_hbm [thread:$0]  (%p4897_p5), %s3528_s21, 64, %s3530_s30, %s3515_s15  }
 0x6bc PF: > { %p4575_p9 = scmp.ge.s32.totalorder %s4783_s28, 2  ;;  %s3541_s11 = sand.u32 1, %s4771_s25  }
 0x6bd   : > { %s3542_s27 = scalar_lea.sflag [#allocation4], %s3541_s11 }
 0x6be   : > { %p4570_p10 = pnand %p4575_p9, %p4901_p6 }
 0x6c0   : > { %p4571_p11 = pneg %p4570_p10 }
 0x6c2   : > { %4766 = dma.done.wait (%p4571_p11), %s3542_s27, 64  }
 0x6c3   : > { %4768 = vsyncadd (%p4571_p11), %s3542_s27, 4294967232  ;;  %s6563_s28 = sld [smem:[#allocation9_spill]]  ;;  %s6566_s25 = smov %s4775_s26 }
 0x6c4   : > { %s6564_s17 = sld [smem:[#allocation8_spill]] }
 0x6c5   : > { %s6565_s27 = sld [smem:[#allocation10_spill]] }
 0x6c9   : > { %p24_p12 = scmp.ge.s32.totalorder %s6563_s28, 4  }
 0x6ca   : > { %s6567_s26 = smov %s6564_s17 }
 0x6cb   :  { %26 = sbr.rel (!%p24_p12) target bundleno = 6 (0x6), region = 123 }
 0x6d0   :  { %3548 = vsyncpa [#allocation3], 1 }
 0x6d1   :  { %3550 = vsyncpa [#allocation3 + $0x1], 1 }
 0x6d2   :  { %3551 = vsyncpa [#allocation4], 1 }
 0x6d3   :  { %3553 = vsyncpa [#allocation4 + $0x1], 1 }

</bundles_post_ra>
